<compile_context>
chip_gen: v7x
topology: tpu7x:2x2x1
jax: 0.10.0
libtpu: 0.0.40
codegen_flags: <defaults>
</compile_context>

<pallas_src>
import jax
import jax.numpy as jnp
import numpy as np
from jax import lax
from jax.experimental import pallas as pl
from jax.experimental.pallas import tpu as pltpu

LEAKY_SLOPE = 0.01   # torch.nn.LeakyReLU default
BN_EPS = 1e-5        # torch.nn.BatchNorm2d default


# ----------------------------------------------------------------------------
# Fused Pallas kernel (per image):
#   conv1 + BN1 + LReLU -> in-kernel shifted-tap conv2 + BN2 + LReLU
#   -> full-extent conv3 + sigmoid
# ----------------------------------------------------------------------------
def _make_fused_kernel(gp, oh1, k2, c2, leaky=LEAKY_SLOPE):
    """gp: conv2-padded grid side (16); oh1: conv1 spatial (14); k2: conv2 kernel."""
    assert gp & (gp - 1) == 0, "padded grid side must be a power of two"
    shift_bits = gp.bit_length() - 1
    npos = gp * gp                                     # 256 stride-1 flat positions

    def kernel(p1_ref, w1_ref, s1_ref, b1_ref, w2_ref, s2_ref, b2_ref, w3_ref,
               o_ref, h1_ref):
        # p1_ref : (1, M_ext, K1)   conv1 im2col patches on the padded grid (bf16)
        # w1_ref : (K1, 128)        conv1 weights, Cout zero-padded 112->128 (bf16)
        # s1/b1  : (1, 128)         folded BN1 scale / shift (f32)
        # w2_ref : (k2*k2, 128, C2) per-tap conv2 weights, Cin zero-padded (bf16)
        # s2/b2  : (1, C2)          folded BN2 scale / shift (f32)
        # w3_ref : (npos, C2)       conv3 weights scattered onto the stride-1 grid (f32)
        # o_ref  : (1, 1, 128)      sigmoid(logit), lane-dense row for this image
        # h1_ref : (M_ext, 128)     f32 VMEM scratch holding the padded activation

        # ---- conv1 + BN1 + LeakyReLU over the zero-padded conv1-output grid ----
        h1 = jnp.dot(p1_ref[0], w1_ref[...], preferred_element_type=jnp.float32)
        h1 = h1 * s1_ref[...] + b1_ref[...]
        h1 = jnp.where(h1 > 0, h1, leaky * h1)
        # Zero the conv2 padding border and the extra tail rows (iota mask).
        r = lax.broadcasted_iota(jnp.int32, h1.shape, 0)
        ih = jnp.right_shift(r, shift_bits)            # row // gp   (gp = 2^shift_bits)
        iw = jnp.bitwise_and(r, gp - 1)                # row %  gp
        interior = (ih >= 1) & (ih <= oh1) & (iw >= 1) & (iw <= oh1)
        h1_ref[...] = jnp.where(interior, h1, 0.0)

        # ---- conv2: k2*k2 shifted tap matmuls at stride 1 over the padded grid ----
        acc = jnp.zeros((npos, c2), jnp.float32)
        for kh in range(k2):
            for kw in range(k2):
                t = kh * k2 + kw
                s = gp * kh + kw                        # flat row shift of this tap
                lhs = h1_ref[pl.ds(s, npos), :].astype(jnp.bfloat16)
                acc = acc + jnp.dot(lhs, w2_ref[t],
                                    preferred_element_type=jnp.float32)

        # ---- BN2 + LeakyReLU + conv3 (full spatial extent) + sigmoid ----
        h2 = acc * s2_ref[...] + b2_ref[...]
        h2 = jnp.where(h2 > 0, h2, leaky * h2)
        contrib = h2 * w3_ref[...]                      # garbage rows have zero weight
        col = jnp.sum(contrib, axis=1, keepdims=True)   # lane reduce    -> (npos, 1)
        logit = jnp.sum(col, axis=0, keepdims=True)     # sublane reduce -> (1, 1)
        prob = pl.reciprocal(1.0 + jnp.exp(-logit), approx=True)   # sigmoid (EUP)
        o_ref[0] = jnp.broadcast_to(prob, (1, 128)).astype(o_ref.dtype)

    return kernel


# ----------------------------------------------------------------------------
# Wrapper glue: im2col on the padded grid, BN folding, weight layout plumbing
# ----------------------------------------------------------------------------
def _im2col(x_nhwc, k, stride, pad):
    """Patches (N, OH, OW, k*k*C), K-order (kh, kw, ci) to match HWIO flattening."""
    N, H, W, C = x_nhwc.shape
    if pad:
        x_nhwc = jnp.pad(x_nhwc, ((0, 0), (pad, pad), (pad, pad), (0, 0)))
    OH = (H + 2 * pad - k) // stride + 1
    OW = (W + 2 * pad - k) // stride + 1
    cols = []
    for kh in range(k):
        for kw in range(k):
            cols.append(x_nhwc[:, kh:kh + stride * OH:stride,
                               kw:kw + stride * OW:stride, :])
    return jnp.concatenate(cols, axis=-1), OH, OW


def _bn_fold(bn, pad_to=None):
    gamma, beta, mean, var = bn
    scale = gamma / jnp.sqrt(var + BN_EPS)
    shift = beta - mean * scale
    if pad_to is not None and pad_to > scale.shape[0]:
        extra = pad_to - scale.shape[0]
        scale = jnp.pad(scale, (0, extra))             # padded channels -> exactly 0
        shift = jnp.pad(shift, (0, extra))
    return (scale.reshape(1, -1).astype(jnp.float32),
            shift.reshape(1, -1).astype(jnp.float32))


def discriminator_forward(x_nchw, params):
    """Width==28 branch of Discriminator_Conv, fully fused into one pallas_call."""
    w1, w2, w3 = params["w1"], params["w2"], params["w3"]
    k1, _, cin, c1 = w1.shape
    k2, _, c1b, c2 = w2.shape
    k3, _, c2b, cout = w3.shape
    # TODO(synk): width==128 branch (k=6/6/8, stride 4/4/1) is not implemented here.
    assert (k1, k2) == (4, 4) and c1b == c1 and c2b == c2 and cout == 1, \
        "fused kernel implements the width==28 branch only"
    s1_, p1_ = 2, 1       # conv1 stride / pad
    s2_, p2_ = 2, 1       # conv2 stride / pad

    N = x_nchw.shape[0]
    x = jnp.transpose(x_nchw, (0, 2, 3, 1))             # NCHW -> NHWC (channels on lanes)

    # conv1 im2col, laid out on the conv2 zero-padded output grid + zero tail rows.
    patches, oh1, ow1 = _im2col(x, k1, s1_, p1_)        # (N, 14, 14, 16)
    assert oh1 == ow1
    oh2 = (oh1 + 2 * p2_ - k2) // s2_ + 1               # 7
    assert k3 == oh2, "final conv must cover the full spatial extent"

    gp = oh1 + 2 * p2_                                  # 16 : padded grid side
    npos = gp * gp                                      # 256 stride-1 flat positions
    max_shift = gp * (k2 - 1) + (k2 - 1)                # 51  : largest tap row shift
    m1_ext = ((npos + max_shift + 7) // 8) * 8          # 312 : rows incl. zero tail
    c1p = 128                                           # conv1 Cout padded 112 -> 128
    k1_flat = k1 * k1 * cin

    pp = jnp.pad(patches, ((0, 0), (p2_, p2_), (p2_, p2_), (0, 0)))   # (N,16,16,K1)
    pp = pp.reshape(N, npos, k1_flat)
    pp = jnp.pad(pp, ((0, 0), (0, m1_ext - npos), (0, 0))).astype(jnp.bfloat16)

    w1_flat = jnp.pad(w1.reshape(k1_flat, c1),
                      ((0, 0), (0, c1p - c1))).astype(jnp.bfloat16)
    s1v, b1v = _bn_fold(params["bn1"], pad_to=c1p)

    w2_taps = jnp.pad(w2, ((0, 0), (0, 0), (0, c1p - c1), (0, 0))
                      ).reshape(k2 * k2, c1p, c2).astype(jnp.bfloat16)
    s2v, b2v = _bn_fold(params["bn2"])

    # conv3 weights scattered onto the stride-1 grid: nonzero only at the 49
    # genuine stride-2 positions (flat row = gp*(s2*oh) + s2*ow).
    w3_grid = jnp.zeros((gp, gp, c2), jnp.float32)
    w3_grid = w3_grid.at[0:s2_ * oh2:s2_, 0:s2_ * oh2:s2_, :].set(
        w3[:, :, :, 0].astype(jnp.float32))
    w3_eff = w3_grid.reshape(npos, c2)

    kernel = _make_fused_kernel(gp, oh1, k2, c2)

    out = pl.pallas_call(
        kernel,
        out_shape=jax.ShapeDtypeStruct((N, 1, 128), jnp.float32),
        grid=(N,),
        in_specs=[
            pl.BlockSpec((1, m1_ext, k1_flat), lambda n: (n, 0, 0)),
            pl.BlockSpec((k1_flat, c1p), lambda n: (0, 0)),
            pl.BlockSpec((1, c1p), lambda n: (0, 0)),
            pl.BlockSpec((1, c1p), lambda n: (0, 0)),
            pl.BlockSpec((k2 * k2, c1p, c2), lambda n: (0, 0, 0)),
            pl.BlockSpec((1, c2), lambda n: (0, 0)),
            pl.BlockSpec((1, c2), lambda n: (0, 0)),
            pl.BlockSpec((npos, c2), lambda n: (0, 0)),
        ],
        out_specs=pl.BlockSpec((1, 1, 128), lambda n: (n, 0, 0)),
        scratch_shapes=[pltpu.VMEM((m1_ext, c1p), jnp.float32)],
        compiler_params=pltpu.CompilerParams(
            dimension_semantics=("parallel",),
            vmem_limit_bytes=32 * 1024 * 1024),
    )(pp, w1_flat, s1v, b1v, w2_taps, s2v, b2v, w3_eff)

    return out[:, 0, :1]                                # (N, 1) == .view(-1, 1)


forward = jax.jit(discriminator_forward)


# ----------------------------------------------------------------------------
# Pure-JAX reference (width==28 branch) for the correctness check
# ----------------------------------------------------------------------------
def ref_forward(x_nchw, params):
    x = jnp.transpose(x_nchw, (0, 2, 3, 1))

    def conv(x, w, s, p):
        return lax.conv_general_dilated(x, w, (s, s), [(p, p), (p, p)],
                                        dimension_numbers=("NHWC", "HWIO", "NHWC"))

    def bn(x, bnp):
        gamma, beta, mean, var = bnp
        return (x - mean) / jnp.sqrt(var + BN_EPS) * gamma + beta

    x = conv(x, params["w1"], 2, 1)
    x = bn(x, params["bn1"])
    x = jnp.where(x > 0, x, LEAKY_SLOPE * x)
    x = conv(x, params["w2"], 2, 1)
    x = bn(x, params["bn2"])
    x = jnp.where(x > 0, x, LEAKY_SLOPE * x)
    x = conv(x, params["w3"], 1, 0)
    x = jax.nn.sigmoid(x)
    return x.reshape(-1, 1)


# ----------------------------------------------------------------------------
# Parameter init (deterministic, torch-like fan-in scaling; BN running stats)
# ----------------------------------------------------------------------------
def init_params(key, input_shape):
    num_channels, width, _ = input_shape
    if width == 128:
        k1, k2, k3 = 6, 6, 8
        c1, c2 = width * 2, width * 4
    elif width == 28:
        k1, k2, k3 = 4, 4, 7
        c1, c2 = width * 4, width * 8
    else:
        raise ValueError(f"unsupported width {width}")

    ks = jax.random.split(key, 11)

    def conv_w(k, kh, cin, cout):
        bound = 1.0 / np.sqrt(kh * kh * cin)
        return jax.random.uniform(k, (kh, kh, cin, cout), jnp.float32, -bound, bound)

    def bn_init(kg, kb, km, kv, c):
        return (jax.random.uniform(kg, (c,), jnp.float32, 0.5, 1.5),    # gamma
                jax.random.normal(kb, (c,), jnp.float32) * 0.1,         # beta
                jax.random.normal(km, (c,), jnp.float32) * 0.1,         # running_mean
                jax.random.uniform(kv, (c,), jnp.float32, 0.5, 1.5))    # running_var

    return {
        "w1": conv_w(ks[0], k1, num_channels, c1),
        "bn1": bn_init(ks[1], ks[2], ks[3], ks[4], c1),
        "w2": conv_w(ks[5], k2, c1, c2),
        "bn2": bn_init(ks[6], ks[7], ks[8], ks[9], c2),
        "w3": conv_w(ks[10], k3, c2, 1),
    }


if __name__ == "__main__":
    key = jax.random.PRNGKey(0)
    pkey, xkey = jax.random.split(key)

    # Small branch of the module: input_shape = (C, W, H) = (1, 28, 28).
    input_shape = (1, 28, 28)
    params = init_params(pkey, input_shape)

    x = jax.random.normal(xkey, (2, 1, 28, 28), jnp.float32)

    out = jax.block_until_ready(forward(x, params))
    assert out.shape == (2, 1), out.shape

    ref = jax.block_until_ready(ref_forward(x, params))
    np.testing.assert_allclose(np.asarray(out), np.asarray(ref), rtol=5e-2, atol=5e-2)

    print("KERNEL_OK")
</pallas_src>

<mosaic_0001>
module attributes {stable_mosaic.version = 11 : i64} {
  func.func @kernel(%arg0: i32, %arg1: memref<1x312x16xbf16, #tpu.memory_space<vmem>>, %arg2: memref<16x128xbf16, #tpu.memory_space<vmem>>, %arg3: memref<1x128xf32, #tpu.memory_space<vmem>>, %arg4: memref<1x128xf32, #tpu.memory_space<vmem>>, %arg5: memref<16x128x224xbf16, #tpu.memory_space<vmem>>, %arg6: memref<1x224xf32, #tpu.memory_space<vmem>>, %arg7: memref<1x224xf32, #tpu.memory_space<vmem>>, %arg8: memref<256x224xf32, #tpu.memory_space<vmem>>, %arg9: memref<1x1x128xf32, #tpu.memory_space<vmem>>, %arg10: memref<312x128xf32, #tpu.memory_space<vmem>>) attributes {dimension_semantics = [#tpu.dimension_semantics<parallel>], iteration_bounds = array<i64: 2>, scalar_prefetch = 0 : i64, scratch_operands = 1 : i64, tpu.core_type = #tpu.core_type<tc>, window_params = [{transform_indices = @transform_0, window_bounds = array<i64: 1, 312, 16>}, {pipeline_mode = #tpu.pipeline_mode<synchronous>, transform_indices = @transform_1, window_bounds = array<i64: 16, 128>}, {pipeline_mode = #tpu.pipeline_mode<synchronous>, transform_indices = @transform_2, window_bounds = array<i64: 1, 128>}, {pipeline_mode = #tpu.pipeline_mode<synchronous>, transform_indices = @transform_3, window_bounds = array<i64: 1, 128>}, {pipeline_mode = #tpu.pipeline_mode<synchronous>, transform_indices = @transform_4, window_bounds = array<i64: 16, 128, 224>}, {pipeline_mode = #tpu.pipeline_mode<synchronous>, transform_indices = @transform_5, window_bounds = array<i64: 1, 224>}, {pipeline_mode = #tpu.pipeline_mode<synchronous>, transform_indices = @transform_6, window_bounds = array<i64: 1, 224>}, {pipeline_mode = #tpu.pipeline_mode<synchronous>, transform_indices = @transform_7, window_bounds = array<i64: 256, 224>}, {transform_indices = @transform_8, window_bounds = array<i64: 1, 1, 128>}]} {
    %c0 = arith.constant 0 : index
    %c0_0 = arith.constant 0 : index
    %c0_1 = arith.constant 0 : index
    %0 = vector.load %arg1[%c0, %c0_0, %c0_1] : memref<1x312x16xbf16, #tpu.memory_space<vmem>>, vector<1x312x16xbf16>
    %1 = vector.shape_cast %0 : vector<1x312x16xbf16> to vector<312x16xbf16>
    %c0_2 = arith.constant 0 : index
    %c0_3 = arith.constant 0 : index
    %2 = vector.load %arg2[%c0_2, %c0_3] : memref<16x128xbf16, #tpu.memory_space<vmem>>, vector<16x128xbf16>
    %cst = arith.constant dense<0.000000e+00> : vector<312x128xf32>
    %3 = tpu.matmul %1, %2, %cst {dimension_numbers = #tpu.dot_dimension_numbers<[1], [0], [0], [1], [0, 0, 1, 1], [], []>} : vector<312x16xbf16>, vector<16x128xbf16>, vector<312x128xf32> -> vector<312x128xf32>
    %c0_4 = arith.constant 0 : index
    %c0_5 = arith.constant 0 : index
    %4 = vector.load %arg3[%c0_4, %c0_5] : memref<1x128xf32, #tpu.memory_space<vmem>>, vector<1x128xf32>
    %5 = vector.broadcast %4 : vector<1x128xf32> to vector<312x128xf32>
    %6 = arith.mulf %3, %5 : vector<312x128xf32>
    %c0_6 = arith.constant 0 : index
    %c0_7 = arith.constant 0 : index
    %7 = vector.load %arg4[%c0_6, %c0_7] : memref<1x128xf32, #tpu.memory_space<vmem>>, vector<1x128xf32>
    %8 = vector.broadcast %7 : vector<1x128xf32> to vector<312x128xf32>
    %9 = arith.addf %6, %8 : vector<312x128xf32>
    %cst_8 = arith.constant 0.000000e+00 : f32
    %10 = vector.broadcast %cst_8 : f32 to vector<312x128xf32>
    %11 = arith.cmpf ogt, %9, %10 : vector<312x128xf32>
    %cst_9 = arith.constant 0.00999999977 : f32
    %12 = vector.broadcast %cst_9 : f32 to vector<312x128xf32>
    %13 = arith.mulf %12, %9 : vector<312x128xf32>
    %14 = arith.select %11, %9, %13 : vector<312x128xi1>, vector<312x128xf32>
    %15 = tpu.iota {dimensions = array<i32: 0>} : vector<312x128xi32>
    %c4_i32 = arith.constant 4 : i32
    %16 = vector.broadcast %c4_i32 : i32 to vector<312x128xi32>
    %17 = arith.shrsi %15, %16 : vector<312x128xi32>
    %c15_i32 = arith.constant 15 : i32
    %18 = vector.broadcast %c15_i32 : i32 to vector<312x128xi32>
    %19 = arith.andi %15, %18 : vector<312x128xi32>
    %c1_i32 = arith.constant 1 : i32
    %20 = vector.broadcast %c1_i32 : i32 to vector<312x128xi32>
    %21 = arith.cmpi sge, %17, %20 : vector<312x128xi32>
    %c14_i32 = arith.constant 14 : i32
    %22 = vector.broadcast %c14_i32 : i32 to vector<312x128xi32>
    %23 = arith.cmpi sle, %17, %22 : vector<312x128xi32>
    %24 = arith.andi %21, %23 : vector<312x128xi1>
    %c1_i32_10 = arith.constant 1 : i32
    %25 = vector.broadcast %c1_i32_10 : i32 to vector<312x128xi32>
    %26 = arith.cmpi sge, %19, %25 : vector<312x128xi32>
    %27 = arith.andi %24, %26 : vector<312x128xi1>
    %c14_i32_11 = arith.constant 14 : i32
    %28 = vector.broadcast %c14_i32_11 : i32 to vector<312x128xi32>
    %29 = arith.cmpi sle, %19, %28 : vector<312x128xi32>
    %30 = arith.andi %27, %29 : vector<312x128xi1>
    %cst_12 = arith.constant 0.000000e+00 : f32
    %31 = vector.broadcast %cst_12 : f32 to vector<312x128xf32>
    %32 = arith.select %30, %14, %31 : vector<312x128xi1>, vector<312x128xf32>
    %c0_13 = arith.constant 0 : index
    %c0_14 = arith.constant 0 : index
    %33 = vector.load %arg10[%c0_13, %c0_14] : memref<312x128xf32, #tpu.memory_space<vmem>>, vector<312x128xf32>
    tpu.vector_store %arg10[%c0_13, %c0_14], %32 {strides = array<i32>} : memref<312x128xf32, #tpu.memory_space<vmem>>, vector<312x128xf32>,
    %cst_15 = arith.constant 0.000000e+00 : f32
    %34 = vector.broadcast %cst_15 : f32 to vector<256x224xf32>
    %c0_16 = arith.constant 0 : index
    %c0_17 = arith.constant 0 : index
    %35 = vector.load %arg10[%c0_16, %c0_17] : memref<312x128xf32, #tpu.memory_space<vmem>>, vector<256x128xf32>
    %36 = arith.truncf %35 : vector<256x128xf32> to vector<256x128xbf16>
    %c0_18 = arith.constant 0 : index
    %c0_19 = arith.constant 0 : index
    %c0_20 = arith.constant 0 : index
    %37 = vector.load %arg5[%c0_18, %c0_19, %c0_20] : memref<16x128x224xbf16, #tpu.memory_space<vmem>>, vector<1x128x224xbf16>
    %38 = vector.shape_cast %37 : vector<1x128x224xbf16> to vector<128x224xbf16>
    %cst_21 = arith.constant dense<0.000000e+00> : vector<256x224xf32>
    %39 = tpu.matmul %36, %38, %cst_21 {dimension_numbers = #tpu.dot_dimension_numbers<[1], [0], [0], [1], [0, 0, 1, 1], [], []>} : vector<256x128xbf16>, vector<128x224xbf16>, vector<256x224xf32> -> vector<256x224xf32>
    %40 = arith.addf %34, %39 : vector<256x224xf32>
    %c1 = arith.constant 1 : index
    %c0_22 = arith.constant 0 : index
    %41 = vector.load %arg10[%c1, %c0_22] : memref<312x128xf32, #tpu.memory_space<vmem>>, vector<256x128xf32>
    %42 = arith.truncf %41 : vector<256x128xf32> to vector<256x128xbf16>
    %c1_23 = arith.constant 1 : index
    %c0_24 = arith.constant 0 : index
    %c0_25 = arith.constant 0 : index
    %43 = vector.load %arg5[%c1_23, %c0_24, %c0_25] : memref<16x128x224xbf16, #tpu.memory_space<vmem>>, vector<1x128x224xbf16>
    %44 = vector.shape_cast %43 : vector<1x128x224xbf16> to vector<128x224xbf16>
    %cst_26 = arith.constant dense<0.000000e+00> : vector<256x224xf32>
    %45 = tpu.matmul %42, %44, %cst_26 {dimension_numbers = #tpu.dot_dimension_numbers<[1], [0], [0], [1], [0, 0, 1, 1], [], []>} : vector<256x128xbf16>, vector<128x224xbf16>, vector<256x224xf32> -> vector<256x224xf32>
    %46 = arith.addf %40, %45 : vector<256x224xf32>
    %c2 = arith.constant 2 : index
    %c0_27 = arith.constant 0 : index
    %47 = vector.load %arg10[%c2, %c0_27] : memref<312x128xf32, #tpu.memory_space<vmem>>, vector<256x128xf32>
    %48 = arith.truncf %47 : vector<256x128xf32> to vector<256x128xbf16>
    %c2_28 = arith.constant 2 : index
    %c0_29 = arith.constant 0 : index
    %c0_30 = arith.constant 0 : index
    %49 = vector.load %arg5[%c2_28, %c0_29, %c0_30] : memref<16x128x224xbf16, #tpu.memory_space<vmem>>, vector<1x128x224xbf16>
    %50 = vector.shape_cast %49 : vector<1x128x224xbf16> to vector<128x224xbf16>
    %cst_31 = arith.constant dense<0.000000e+00> : vector<256x224xf32>
    %51 = tpu.matmul %48, %50, %cst_31 {dimension_numbers = #tpu.dot_dimension_numbers<[1], [0], [0], [1], [0, 0, 1, 1], [], []>} : vector<256x128xbf16>, vector<128x224xbf16>, vector<256x224xf32> -> vector<256x224xf32>
    %52 = arith.addf %46, %51 : vector<256x224xf32>
    %c3 = arith.constant 3 : index
    %c0_32 = arith.constant 0 : index
    %53 = vector.load %arg10[%c3, %c0_32] : memref<312x128xf32, #tpu.memory_space<vmem>>, vector<256x128xf32>
    %54 = arith.truncf %53 : vector<256x128xf32> to vector<256x128xbf16>
    %c3_33 = arith.constant 3 : index
    %c0_34 = arith.constant 0 : index
    %c0_35 = arith.constant 0 : index
    %55 = vector.load %arg5[%c3_33, %c0_34, %c0_35] : memref<16x128x224xbf16, #tpu.memory_space<vmem>>, vector<1x128x224xbf16>
    %56 = vector.shape_cast %55 : vector<1x128x224xbf16> to vector<128x224xbf16>
    %cst_36 = arith.constant dense<0.000000e+00> : vector<256x224xf32>
    %57 = tpu.matmul %54, %56, %cst_36 {dimension_numbers = #tpu.dot_dimension_numbers<[1], [0], [0], [1], [0, 0, 1, 1], [], []>} : vector<256x128xbf16>, vector<128x224xbf16>, vector<256x224xf32> -> vector<256x224xf32>
    %58 = arith.addf %52, %57 : vector<256x224xf32>
    %c16 = arith.constant 16 : index
    %c0_37 = arith.constant 0 : index
    %59 = vector.load %arg10[%c16, %c0_37] : memref<312x128xf32, #tpu.memory_space<vmem>>, vector<256x128xf32>
    %60 = arith.truncf %59 : vector<256x128xf32> to vector<256x128xbf16>
    %c4 = arith.constant 4 : index
    %c0_38 = arith.constant 0 : index
    %c0_39 = arith.constant 0 : index
    %61 = vector.load %arg5[%c4, %c0_38, %c0_39] : memref<16x128x224xbf16, #tpu.memory_space<vmem>>, vector<1x128x224xbf16>
    %62 = vector.shape_cast %61 : vector<1x128x224xbf16> to vector<128x224xbf16>
    %cst_40 = arith.constant dense<0.000000e+00> : vector<256x224xf32>
    %63 = tpu.matmul %60, %62, %cst_40 {dimension_numbers = #tpu.dot_dimension_numbers<[1], [0], [0], [1], [0, 0, 1, 1], [], []>} : vector<256x128xbf16>, vector<128x224xbf16>, vector<256x224xf32> -> vector<256x224xf32>
    %64 = arith.addf %58, %63 : vector<256x224xf32>
    %c17 = arith.constant 17 : index
    %c0_41 = arith.constant 0 : index
    %65 = vector.load %arg10[%c17, %c0_41] : memref<312x128xf32, #tpu.memory_space<vmem>>, vector<256x128xf32>
    %66 = arith.truncf %65 : vector<256x128xf32> to vector<256x128xbf16>
    %c5 = arith.constant 5 : index
    %c0_42 = arith.constant 0 : index
    %c0_43 = arith.constant 0 : index
    %67 = vector.load %arg5[%c5, %c0_42, %c0_43] : memref<16x128x224xbf16, #tpu.memory_space<vmem>>, vector<1x128x224xbf16>
    %68 = vector.shape_cast %67 : vector<1x128x224xbf16> to vector<128x224xbf16>
    %cst_44 = arith.constant dense<0.000000e+00> : vector<256x224xf32>
    %69 = tpu.matmul %66, %68, %cst_44 {dimension_numbers = #tpu.dot_dimension_numbers<[1], [0], [0], [1], [0, 0, 1, 1], [], []>} : vector<256x128xbf16>, vector<128x224xbf16>, vector<256x224xf32> -> vector<256x224xf32>
    %70 = arith.addf %64, %69 : vector<256x224xf32>
    %c18 = arith.constant 18 : index
    %c0_45 = arith.constant 0 : index
    %71 = vector.load %arg10[%c18, %c0_45] : memref<312x128xf32, #tpu.memory_space<vmem>>, vector<256x128xf32>
    %72 = arith.truncf %71 : vector<256x128xf32> to vector<256x128xbf16>
    %c6 = arith.constant 6 : index
    %c0_46 = arith.constant 0 : index
    %c0_47 = arith.constant 0 : index
    %73 = vector.load %arg5[%c6, %c0_46, %c0_47] : memref<16x128x224xbf16, #tpu.memory_space<vmem>>, vector<1x128x224xbf16>
    %74 = vector.shape_cast %73 : vector<1x128x224xbf16> to vector<128x224xbf16>
    %cst_48 = arith.constant dense<0.000000e+00> : vector<256x224xf32>
    %75 = tpu.matmul %72, %74, %cst_48 {dimension_numbers = #tpu.dot_dimension_numbers<[1], [0], [0], [1], [0, 0, 1, 1], [], []>} : vector<256x128xbf16>, vector<128x224xbf16>, vector<256x224xf32> -> vector<256x224xf32>
    %76 = arith.addf %70, %75 : vector<256x224xf32>
    %c19 = arith.constant 19 : index
    %c0_49 = arith.constant 0 : index
    %77 = vector.load %arg10[%c19, %c0_49] : memref<312x128xf32, #tpu.memory_space<vmem>>, vector<256x128xf32>
    %78 = arith.truncf %77 : vector<256x128xf32> to vector<256x128xbf16>
    %c7 = arith.constant 7 : index
    %c0_50 = arith.constant 0 : index
    %c0_51 = arith.constant 0 : index
    %79 = vector.load %arg5[%c7, %c0_50, %c0_51] : memref<16x128x224xbf16, #tpu.memory_space<vmem>>, vector<1x128x224xbf16>
    %80 = vector.shape_cast %79 : vector<1x128x224xbf16> to vector<128x224xbf16>
    %cst_52 = arith.constant dense<0.000000e+00> : vector<256x224xf32>
    %81 = tpu.matmul %78, %80, %cst_52 {dimension_numbers = #tpu.dot_dimension_numbers<[1], [0], [0], [1], [0, 0, 1, 1], [], []>} : vector<256x128xbf16>, vector<128x224xbf16>, vector<256x224xf32> -> vector<256x224xf32>
    %82 = arith.addf %76, %81 : vector<256x224xf32>
    %c32 = arith.constant 32 : index
    %c0_53 = arith.constant 0 : index
    %83 = vector.load %arg10[%c32, %c0_53] : memref<312x128xf32, #tpu.memory_space<vmem>>, vector<256x128xf32>
    %84 = arith.truncf %83 : vector<256x128xf32> to vector<256x128xbf16>
    %c8 = arith.constant 8 : index
    %c0_54 = arith.constant 0 : index
    %c0_55 = arith.constant 0 : index
    %85 = vector.load %arg5[%c8, %c0_54, %c0_55] : memref<16x128x224xbf16, #tpu.memory_space<vmem>>, vector<1x128x224xbf16>
    %86 = vector.shape_cast %85 : vector<1x128x224xbf16> to vector<128x224xbf16>
    %cst_56 = arith.constant dense<0.000000e+00> : vector<256x224xf32>
    %87 = tpu.matmul %84, %86, %cst_56 {dimension_numbers = #tpu.dot_dimension_numbers<[1], [0], [0], [1], [0, 0, 1, 1], [], []>} : vector<256x128xbf16>, vector<128x224xbf16>, vector<256x224xf32> -> vector<256x224xf32>
    %88 = arith.addf %82, %87 : vector<256x224xf32>
    %c33 = arith.constant 33 : index
    %c0_57 = arith.constant 0 : index
    %89 = vector.load %arg10[%c33, %c0_57] : memref<312x128xf32, #tpu.memory_space<vmem>>, vector<256x128xf32>
    %90 = arith.truncf %89 : vector<256x128xf32> to vector<256x128xbf16>
    %c9 = arith.constant 9 : index
    %c0_58 = arith.constant 0 : index
    %c0_59 = arith.constant 0 : index
    %91 = vector.load %arg5[%c9, %c0_58, %c0_59] : memref<16x128x224xbf16, #tpu.memory_space<vmem>>, vector<1x128x224xbf16>
    %92 = vector.shape_cast %91 : vector<1x128x224xbf16> to vector<128x224xbf16>
    %cst_60 = arith.constant dense<0.000000e+00> : vector<256x224xf32>
    %93 = tpu.matmul %90, %92, %cst_60 {dimension_numbers = #tpu.dot_dimension_numbers<[1], [0], [0], [1], [0, 0, 1, 1], [], []>} : vector<256x128xbf16>, vector<128x224xbf16>, vector<256x224xf32> -> vector<256x224xf32>
    %94 = arith.addf %88, %93 : vector<256x224xf32>
    %c34 = arith.constant 34 : index
    %c0_61 = arith.constant 0 : index
    %95 = vector.load %arg10[%c34, %c0_61] : memref<312x128xf32, #tpu.memory_space<vmem>>, vector<256x128xf32>
    %96 = arith.truncf %95 : vector<256x128xf32> to vector<256x128xbf16>
    %c10 = arith.constant 10 : index
    %c0_62 = arith.constant 0 : index
    %c0_63 = arith.constant 0 : index
    %97 = vector.load %arg5[%c10, %c0_62, %c0_63] : memref<16x128x224xbf16, #tpu.memory_space<vmem>>, vector<1x128x224xbf16>
    %98 = vector.shape_cast %97 : vector<1x128x224xbf16> to vector<128x224xbf16>
    %cst_64 = arith.constant dense<0.000000e+00> : vector<256x224xf32>
    %99 = tpu.matmul %96, %98, %cst_64 {dimension_numbers = #tpu.dot_dimension_numbers<[1], [0], [0], [1], [0, 0, 1, 1], [], []>} : vector<256x128xbf16>, vector<128x224xbf16>, vector<256x224xf32> -> vector<256x224xf32>
    %100 = arith.addf %94, %99 : vector<256x224xf32>
    %c35 = arith.constant 35 : index
    %c0_65 = arith.constant 0 : index
    %101 = vector.load %arg10[%c35, %c0_65] : memref<312x128xf32, #tpu.memory_space<vmem>>, vector<256x128xf32>
    %102 = arith.truncf %101 : vector<256x128xf32> to vector<256x128xbf16>
    %c11 = arith.constant 11 : index
    %c0_66 = arith.constant 0 : index
    %c0_67 = arith.constant 0 : index
    %103 = vector.load %arg5[%c11, %c0_66, %c0_67] : memref<16x128x224xbf16, #tpu.memory_space<vmem>>, vector<1x128x224xbf16>
    %104 = vector.shape_cast %103 : vector<1x128x224xbf16> to vector<128x224xbf16>
    %cst_68 = arith.constant dense<0.000000e+00> : vector<256x224xf32>
    %105 = tpu.matmul %102, %104, %cst_68 {dimension_numbers = #tpu.dot_dimension_numbers<[1], [0], [0], [1], [0, 0, 1, 1], [], []>} : vector<256x128xbf16>, vector<128x224xbf16>, vector<256x224xf32> -> vector<256x224xf32>
    %106 = arith.addf %100, %105 : vector<256x224xf32>
    %c48 = arith.constant 48 : index
    %c0_69 = arith.constant 0 : index
    %107 = vector.load %arg10[%c48, %c0_69] : memref<312x128xf32, #tpu.memory_space<vmem>>, vector<256x128xf32>
    %108 = arith.truncf %107 : vector<256x128xf32> to vector<256x128xbf16>
    %c12 = arith.constant 12 : index
    %c0_70 = arith.constant 0 : index
    %c0_71 = arith.constant 0 : index
    %109 = vector.load %arg5[%c12, %c0_70, %c0_71] : memref<16x128x224xbf16, #tpu.memory_space<vmem>>, vector<1x128x224xbf16>
    %110 = vector.shape_cast %109 : vector<1x128x224xbf16> to vector<128x224xbf16>
    %cst_72 = arith.constant dense<0.000000e+00> : vector<256x224xf32>
    %111 = tpu.matmul %108, %110, %cst_72 {dimension_numbers = #tpu.dot_dimension_numbers<[1], [0], [0], [1], [0, 0, 1, 1], [], []>} : vector<256x128xbf16>, vector<128x224xbf16>, vector<256x224xf32> -> vector<256x224xf32>
    %112 = arith.addf %106, %111 : vector<256x224xf32>
    %c49 = arith.constant 49 : index
    %c0_73 = arith.constant 0 : index
    %113 = vector.load %arg10[%c49, %c0_73] : memref<312x128xf32, #tpu.memory_space<vmem>>, vector<256x128xf32>
    %114 = arith.truncf %113 : vector<256x128xf32> to vector<256x128xbf16>
    %c13 = arith.constant 13 : index
    %c0_74 = arith.constant 0 : index
    %c0_75 = arith.constant 0 : index
    %115 = vector.load %arg5[%c13, %c0_74, %c0_75] : memref<16x128x224xbf16, #tpu.memory_space<vmem>>, vector<1x128x224xbf16>
    %116 = vector.shape_cast %115 : vector<1x128x224xbf16> to vector<128x224xbf16>
    %cst_76 = arith.constant dense<0.000000e+00> : vector<256x224xf32>
    %117 = tpu.matmul %114, %116, %cst_76 {dimension_numbers = #tpu.dot_dimension_numbers<[1], [0], [0], [1], [0, 0, 1, 1], [], []>} : vector<256x128xbf16>, vector<128x224xbf16>, vector<256x224xf32> -> vector<256x224xf32>
    %118 = arith.addf %112, %117 : vector<256x224xf32>
    %c50 = arith.constant 50 : index
    %c0_77 = arith.constant 0 : index
    %119 = vector.load %arg10[%c50, %c0_77] : memref<312x128xf32, #tpu.memory_space<vmem>>, vector<256x128xf32>
    %120 = arith.truncf %119 : vector<256x128xf32> to vector<256x128xbf16>
    %c14 = arith.constant 14 : index
    %c0_78 = arith.constant 0 : index
    %c0_79 = arith.constant 0 : index
    %121 = vector.load %arg5[%c14, %c0_78, %c0_79] : memref<16x128x224xbf16, #tpu.memory_space<vmem>>, vector<1x128x224xbf16>
    %122 = vector.shape_cast %121 : vector<1x128x224xbf16> to vector<128x224xbf16>
    %cst_80 = arith.constant dense<0.000000e+00> : vector<256x224xf32>
    %123 = tpu.matmul %120, %122, %cst_80 {dimension_numbers = #tpu.dot_dimension_numbers<[1], [0], [0], [1], [0, 0, 1, 1], [], []>} : vector<256x128xbf16>, vector<128x224xbf16>, vector<256x224xf32> -> vector<256x224xf32>
    %124 = arith.addf %118, %123 : vector<256x224xf32>
    %c51 = arith.constant 51 : index
    %c0_81 = arith.constant 0 : index
    %125 = vector.load %arg10[%c51, %c0_81] : memref<312x128xf32, #tpu.memory_space<vmem>>, vector<256x128xf32>
    %126 = arith.truncf %125 : vector<256x128xf32> to vector<256x128xbf16>
    %c15 = arith.constant 15 : index
    %c0_82 = arith.constant 0 : index
    %c0_83 = arith.constant 0 : index
    %127 = vector.load %arg5[%c15, %c0_82, %c0_83] : memref<16x128x224xbf16, #tpu.memory_space<vmem>>, vector<1x128x224xbf16>
    %128 = vector.shape_cast %127 : vector<1x128x224xbf16> to vector<128x224xbf16>
    %cst_84 = arith.constant dense<0.000000e+00> : vector<256x224xf32>
    %129 = tpu.matmul %126, %128, %cst_84 {dimension_numbers = #tpu.dot_dimension_numbers<[1], [0], [0], [1], [0, 0, 1, 1], [], []>} : vector<256x128xbf16>, vector<128x224xbf16>, vector<256x224xf32> -> vector<256x224xf32>
    %130 = arith.addf %124, %129 : vector<256x224xf32>
    %c0_85 = arith.constant 0 : index
    %c0_86 = arith.constant 0 : index
    %131 = vector.load %arg6[%c0_85, %c0_86] : memref<1x224xf32, #tpu.memory_space<vmem>>, vector<1x224xf32>
    %132 = vector.broadcast %131 : vector<1x224xf32> to vector<256x224xf32>
    %133 = arith.mulf %130, %132 : vector<256x224xf32>
    %c0_87 = arith.constant 0 : index
    %c0_88 = arith.constant 0 : index
    %134 = vector.load %arg7[%c0_87, %c0_88] : memref<1x224xf32, #tpu.memory_space<vmem>>, vector<1x224xf32>
    %135 = vector.broadcast %134 : vector<1x224xf32> to vector<256x224xf32>
    %136 = arith.addf %133, %135 : vector<256x224xf32>
    %cst_89 = arith.constant 0.000000e+00 : f32
    %137 = vector.broadcast %cst_89 : f32 to vector<256x224xf32>
    %138 = arith.cmpf ogt, %136, %137 : vector<256x224xf32>
    %cst_90 = arith.constant 0.00999999977 : f32
    %139 = vector.broadcast %cst_90 : f32 to vector<256x224xf32>
    %140 = arith.mulf %139, %136 : vector<256x224xf32>
    %141 = arith.select %138, %136, %140 : vector<256x224xi1>, vector<256x224xf32>
    %c0_91 = arith.constant 0 : index
    %c0_92 = arith.constant 0 : index
    %142 = vector.load %arg8[%c0_91, %c0_92] : memref<256x224xf32, #tpu.memory_space<vmem>>, vector<256x224xf32>
    %143 = arith.mulf %141, %142 : vector<256x224xf32>
    %cst_93 = arith.constant dense<0.000000e+00> : vector<256xf32>
    %144 = vector.multi_reduction <add>, %143, %cst_93 [1] : vector<256x224xf32> to vector<256xf32>
    %145 = vector.shape_cast %144 : vector<256xf32> to vector<256x1xf32>
    %cst_94 = arith.constant dense<0.000000e+00> : vector<1xf32>
    %146 = vector.multi_reduction <add>, %145, %cst_94 [0] : vector<256x1xf32> to vector<1xf32>
    %147 = vector.shape_cast %146 : vector<1xf32> to vector<1x1xf32>
    %cst_95 = arith.constant 0.000000e+00 : f32
    %148 = vector.broadcast %cst_95 : f32 to vector<1x1xf32>
    %149 = arith.subf %148, %147 : vector<1x1xf32>
    %150 = math.exp %149 : vector<1x1xf32>
    %cst_96 = arith.constant 1.000000e+00 : f32
    %151 = vector.broadcast %cst_96 : f32 to vector<1x1xf32>
    %152 = arith.addf %151, %150 : vector<1x1xf32>
    %153 = tpu.reciprocal %152 {approx = true} : vector<1x1xf32> -> vector<1x1xf32>
    %154 = vector.shape_cast %153 : vector<1x1xf32> to vector<1x1xf32>
    %155 = vector.broadcast %154 : vector<1x1xf32> to vector<1x128xf32>
    %c0_97 = arith.constant 0 : index
    %c0_98 = arith.constant 0 : index
    %c0_99 = arith.constant 0 : index
    %156 = vector.load %arg9[%c0_97, %c0_98, %c0_99] : memref<1x1x128xf32, #tpu.memory_space<vmem>>, vector<1x1x128xf32>
    %157 = vector.shape_cast %156 : vector<1x1x128xf32> to vector<1x128xf32>
    %158 = vector.shape_cast %155 : vector<1x128xf32> to vector<1x1x128xf32>
    tpu.vector_store %arg9[%c0_97, %c0_98, %c0_99], %158 {strides = array<i32>} : memref<1x1x128xf32, #tpu.memory_space<vmem>>, vector<1x1x128xf32>,
    return
  }
  func.func @transform_0(%arg0: i32) -> (i32, i32, i32) {
    %c0_i32 = arith.constant 0 : i32
    %c0_i32_0 = arith.constant 0 : i32
    %c0_i32_1 = arith.constant 0 : i32
    return %arg0, %c0_i32, %c0_i32_0 : i32, i32, i32
  }
  func.func @transform_1(%arg0: i32) -> (i32, i32) {
    %c0_i32 = arith.constant 0 : i32
    %c0_i32_0 = arith.constant 0 : i32
    %c0_i32_1 = arith.constant 0 : i32
    return %c0_i32, %c0_i32_0 : i32, i32
  }
  func.func @transform_2(%arg0: i32) -> (i32, i32) {
    %c0_i32 = arith.constant 0 : i32
    %c0_i32_0 = arith.constant 0 : i32
    %c0_i32_1 = arith.constant 0 : i32
    return %c0_i32, %c0_i32_0 : i32, i32
  }
  func.func @transform_3(%arg0: i32) -> (i32, i32) {
    %c0_i32 = arith.constant 0 : i32
    %c0_i32_0 = arith.constant 0 : i32
    %c0_i32_1 = arith.constant 0 : i32
    return %c0_i32, %c0_i32_0 : i32, i32
  }
  func.func @transform_4(%arg0: i32) -> (i32, i32, i32) {
    %c0_i32 = arith.constant 0 : i32
    %c0_i32_0 = arith.constant 0 : i32
    %c0_i32_1 = arith.constant 0 : i32
    %c0_i32_2 = arith.constant 0 : i32
    return %c0_i32, %c0_i32_0, %c0_i32_1 : i32, i32, i32
  }
  func.func @transform_5(%arg0: i32) -> (i32, i32) {
    %c0_i32 = arith.constant 0 : i32
    %c0_i32_0 = arith.constant 0 : i32
    %c0_i32_1 = arith.constant 0 : i32
    return %c0_i32, %c0_i32_0 : i32, i32
  }
  func.func @transform_6(%arg0: i32) -> (i32, i32) {
    %c0_i32 = arith.constant 0 : i32
    %c0_i32_0 = arith.constant 0 : i32
    %c0_i32_1 = arith.constant 0 : i32
    return %c0_i32, %c0_i32_0 : i32, i32
  }
  func.func @transform_7(%arg0: i32) -> (i32, i32) {
    %c0_i32 = arith.constant 0 : i32
    %c0_i32_0 = arith.constant 0 : i32
    %c0_i32_1 = arith.constant 0 : i32
    return %c0_i32, %c0_i32_0 : i32, i32
  }
  func.func @transform_8(%arg0: i32) -> (i32, i32, i32) {
    %c0_i32 = arith.constant 0 : i32
    %c0_i32_0 = arith.constant 0 : i32
    %c0_i32_1 = arith.constant 0 : i32
    return %arg0, %c0_i32, %c0_i32_0 : i32, i32, i32
  }
}

</mosaic_0001>

<bundles_post_ra>
// kernel: discriminator_forward.1
= control target key start
LH: loop header
LB: loop body
LE: loop exit
PB: predicated region body
PF: predicated region fallthrough
CT: control target
= control target key end

     0   :  { %s10469_s27 = smov 0   ;;  %s14165_s0 = inlined_call_operand.vmem [shape: bf16[2,312,16], index: 0, kind: input, shape index: {}]   ;;  %s14166_s1 = inlined_call_operand.vmem [shape: bf16[16,128], index: 1, kind: input, shape index: {}]   ;;  %s14167_s2 = inlined_call_operand.vmem [shape: f32[1,128], index: 2, kind: input, shape index: {}]   ;;  %s14168_s3 = inlined_call_operand.vmem [shape: f32[1,128], index: 3, kind: input, shape index: {}]   ;;  %s14169_s4 = inlined_call_operand.vmem [shape: bf16[16,128,224], index: 4, kind: input, shape index: {}]   ;;  %s14170_s5 = inlined_call_operand.vmem [shape: f32[1,224], index: 5, kind: input, shape index: {}]   ;;  %s14171_s6 = inlined_call_operand.vmem [shape: f32[1,224], index: 6, kind: input, shape index: {}]   ;;  %s14172_s7 = inlined_call_operand.vmem [shape: f32[256,224], index: 7, kind: input, shape index: {}]   ;;  %s14173_s8 = inlined_call_operand.vmem [shape: f32[2,1,128], index: 8, kind: output, shape index: {}]  }
   0x1 LB: > { %s8373_s28 = sadd.s32 4294967295, %s10420_s27   ;;  %p8377_p0 = scmp.ge.s32.totalorder %s10420_s27, 1  ;;  %s10420_s27 = sphi %s10469_s27, %s18_s27  }
   0x2   : > { %p262_p1 = scmp.lt.s32.totalorder %s10420_s27, 3 }
   0x4   : > { %p263_p2 = pnand %p8377_p0, %p262_p1 }
   0x6   : > { %266 = sbr.rel (%p263_p2) target bundleno = 1844 (0x734), region = 52 }
   0xd   : > { %v9969_v0 = vld [vmem:[%s14166_s1] sm:$0xff]   ;;  %p294_p3 = scmp.lt.s32.totalorder %s8373_s28, 1  ;;  %vm448_vm0 = vcmask 130048   ;;  %v9995_v3 = vld [vmem:[%s14169_s4 + $0x94] ss:$8 sps:$4 sm:$0xff]   ;;  %v14180_v37 = vmov 0   ;;  %v910_v55 = vlaneseq }
   0xe   : > { %8941 = vmatprep.subr.bf16.mxu0 %v9969_v0  ;;  %v9992_v1 = vld [vmem:[%s14169_s4 + $0x84] ss:$8 sps:$4 sm:$0xff]   ;;  %v9990_v2 = vld [vmem:[%s14169_s4 + $0x80] ss:$8 sps:$4 sm:$0xff]   ;;  %v9993_v7 = vld [vmem:[%s14169_s4 + $0x90] ss:$8 sps:$4 sm:$0xff]   ;;  %4361 = vmatprep.mubr.bf16.mxu1 %v14180_v37 }
   0xf   : > { %s14746_s28 = smov (!%p294_p3, %s8373_s28), 1  ;;  %8942 = vmatpush3.bf16.msra.mxu0 %v9969_v0  ;;  %v9998_v8 = vld [vmem:[%s14169_s4 + $0xa4] ss:$8 sps:$4 sm:$0xff]   ;;  %v9996_v9 = vld [vmem:[%s14169_s4 + $0xa0] ss:$8 sps:$4 sm:$0xff]   ;;  %v10629_v56 = vshrl.u32 %v910_v55, 7 }
  0x10   : > { %s9959_s11 = smul.u32 156, %s14746_s28  ;;  %1588 = vmatprep.subr.bf16.mxu0 %v9992_v1  ;;  %v10001_v27 = vld [vmem:[%s14169_s4 + $0xb4] ss:$8 sps:$4 sm:$0xff]   ;;  %v9999_v28 = vld [vmem:[%s14169_s4 + $0xb0] ss:$8 sps:$4 sm:$0xff]   ;;  %s301_s19 = scalar_lea.vmem %s14173_s8, %s14746_s28 }
  0x11   : > { %v10004_v29 = vld [vmem:[%s14169_s4 + $0xc4] ss:$8 sps:$4 sm:$0xff]   ;;  %v10002_v30 = vld [vmem:[%s14169_s4 + $0xc0] ss:$8 sps:$4 sm:$0xff]   ;;  %v10007_v31 = vld [vmem:[%s14169_s4 + $0xd4] ss:$8 sps:$4 sm:$0xff]  }
  0x12   : > { %s10492_s16 = scalar_lea.vmem %s14165_s0, %s9959_s11  ;;  %v10005_v32 = vld [vmem:[%s14169_s4 + $0xd0] ss:$8 sps:$4 sm:$0xff]   ;;  %v10010_v33 = vld [vmem:[%s14169_s4 + $0xe4] ss:$8 sps:$4 sm:$0xff]   ;;  %v10008_v34 = vld [vmem:[%s14169_s4 + $0xe0] ss:$8 sps:$4 sm:$0xff]  }
  0x13   : > { %v9970_v4 = vld [vmem:[%s10492_s16] sm:$0xff]   ;;  %v9971_v5 = vld [vmem:[%s10492_s16 + $0x8] sm:$0xff]   ;;  %v9972_v6 = vld [vmem:[%s10492_s16 + $0x10] sm:$0xff]   ;;  %v913_v57 = vadd.s32 16, %v10629_v56  ;;  %v914_v58 = vadd.s32 24, %v10629_v56  ;;  %v950_v60 = vshra.s32 %v10629_v56, 4 }
  0x14   : > { %8943 = vmatprep.mubr.msk.bf16.mxu0 %vm448_vm0, %v9970_v4  ;;  %v9973_v10 = vld [vmem:[%s10492_s16 + $0x18] sm:$0xff]   ;;  %v9974_v11 = vld [vmem:[%s10492_s16 + $0x20] sm:$0xff]   ;;  %v9975_v12 = vld [vmem:[%s10492_s16 + $0x28] sm:$0xff]   ;;  %v912_v61 = vadd.s32 8, %v10629_v56  ;;  %v917_v0 = vadd.s32 48, %v10629_v56  ;;  %v989_v1 = vand.u32 15, %v10629_v56 }
  0x15   : > { %8944 = vmatmul.mubr.msk.bf16.vlgmr.msra.gmra.mrb[0].mxu0 %vm448_vm0, %v9971_v5  ;;  %v9976_v13 = vld [vmem:[%s10492_s16 + $0x30] sm:$0xff]   ;;  %v9977_v14 = vld [vmem:[%s10492_s16 + $0x38] sm:$0xff]   ;;  %v9978_v15 = vld [vmem:[%s10492_s16 + $0x40] sm:$0xff]   ;;  %v952_v59 = vshra.s32 %v913_v57, 4  ;;  %v991_v62 = vand.u32 15, %v913_v57  ;;  %v953_v63 = vshra.s32 %v914_v58, 4 }
  0x16   : > { %8947 = vmatprep.mubr.msk.bf16.mxu0 %vm448_vm0, %v9972_v6  ;;  %1589 = vmatpush1.bf16.msra.mxu0 %v9990_v2  ;;  %v9979_v16 = vld [vmem:[%s10492_s16 + $0x48] sm:$0xff]   ;;  %v9980_v17 = vld [vmem:[%s10492_s16 + $0x50] sm:$0xff]   ;;  %v9981_v18 = vld [vmem:[%s10492_s16 + $0x58] sm:$0xff]   ;;  %v915_v2 = vadd.s32 32, %v10629_v56  ;;  %v992_v5 = vand.u32 15, %v914_v58  ;;  %vm10649_vm3 = vcmp.ge.s32.totalorder %v950_v60, 1 }
  0x17   : > { %1590 = vmatprep.subr.bf16.mxu0 %v9995_v3  ;;  %v9982_v19 = vld [vmem:[%s10492_s16 + $0x60] sm:$0xff]   ;;  %v9983_v20 = vld [vmem:[%s10492_s16 + $0x68] sm:$0xff]   ;;  %v9984_v21 = vld [vmem:[%s10492_s16 + $0x70] sm:$0xff]   ;;  %vm10638_vm1 = vcmp.ge.s32.totalorder %v952_v59, 1  ;;  %vm10642_vm2 = vcmp.le.s32.totalorder %v952_v59, 14  ;;  %vm10659_vm4 = vcmp.ge.s32.totalorder %v991_v62, 1 }
  0x18   : > { %v9985_v22 = vld [vmem:[%s10492_s16 + $0x78] sm:$0xff]   ;;  %v9986_v23 = vld [vmem:[%s10492_s16 + $0x80] sm:$0xff]   ;;  %v9987_v24 = vld [vmem:[%s10492_s16 + $0x88] sm:$0xff]   ;;  %vm10663_vm5 = vcmp.le.s32.totalorder %v950_v60, 14  ;;  %vm10667_vm6 = vcmp.ge.s32.totalorder %v953_v63, 1  ;;  %vm10674_vm7 = vcmp.ge.s32.totalorder %v989_v1, 1 }
  0x19   : > { %v9988_v25 = vld [vmem:[%s10492_s16 + $0x90] sm:$0xff]   ;;  %v9989_v26 = vld [vmem:[%s10492_s16 + $0x98] ss:$0 sps:$4 sm:$0xff]   ;;  %v10014_v38 = vld [vmem:[%s14169_s4 + $0x384] ss:$8 sps:$4 sm:$0xff]   ;;  %vm10678_vm8 = vcmp.le.s32.totalorder %v953_v63, 14 }
  0x1a   : > { %1591 = vmatpush1.bf16.msra.mxu0 %v9993_v7  ;;  %v10013_v35 = vld [vmem:[%s14169_s4 + $0xf4] ss:$8 sps:$4 sm:$0xff]   ;;  %v10011_v36 = vld [vmem:[%s14169_s4 + $0xf0] ss:$8 sps:$4 sm:$0xff]   ;;  %v10016_v39 = vld [vmem:[%s14169_s4 + $0x380] ss:$8 sps:$4 sm:$0xff]   ;;  %8983 = vmatprep.subr.bf16.mxu1 %v10014_v38 }
  0x1b   : > { %1592 = vmatprep.subr.bf16.mxu0 %v9998_v8  ;;  %8991 = vmatpush1.bf16.msra.mxu1 %v10016_v39  ;;  %v10017_v40 = vld [vmem:[%s14169_s4 + $0x394] ss:$8 sps:$4 sm:$0xff]   ;;  %v10019_v41 = vld [vmem:[%s14169_s4 + $0x390] ss:$8 sps:$4 sm:$0xff]   ;;  %v10020_v42 = vld [vmem:[%s14169_s4 + $0x3a4] ss:$8 sps:$4 sm:$0xff]  }
  0x1c   : > { %8984 = vmatprep.subr.bf16.mxu1 %v10017_v40  ;;  %v10022_v43 = vld [vmem:[%s14169_s4 + $0x3a0] ss:$8 sps:$4 sm:$0xff]   ;;  %v10023_v44 = vld [vmem:[%s14169_s4 + $0x3b4] ss:$8 sps:$4 sm:$0xff]   ;;  %v10025_v45 = vld [vmem:[%s14169_s4 + $0x3b0] ss:$8 sps:$4 sm:$0xff]  }
  0x1d   : > { %8948 = vmatmul.mubr.msk.bf16.gmra.mrb[4].mxu0 %vm448_vm0, %v9973_v10  ;;  %v10026_v46 = vld [vmem:[%s14169_s4 + $0x3c4] ss:$8 sps:$4 sm:$0xff]   ;;  %v10028_v47 = vld [vmem:[%s14169_s4 + $0x3c0] ss:$8 sps:$4 sm:$0xff]   ;;  %v10029_v48 = vld [vmem:[%s14169_s4 + $0x3d4] ss:$8 sps:$4 sm:$0xff]  }
  0x1e   : > { %8951 = vmatprep.mubr.msk.bf16.mxu0 %vm448_vm0, %v9974_v11  ;;  %1593 = vmatpush1.bf16.msra.mxu0 %v9996_v9  ;;  %v10031_v49 = vld [vmem:[%s14169_s4 + $0x3d0] ss:$8 sps:$4 sm:$0xff]   ;;  %v10032_v50 = vld [vmem:[%s14169_s4 + $0x3e4] ss:$8 sps:$4 sm:$0xff]   ;;  %v10034_v51 = vld [vmem:[%s14169_s4 + $0x3e0] ss:$8 sps:$4 sm:$0xff]  }
  0x1f   : > { %1594 = vmatprep.subr.bf16.mxu0 %v10001_v27  ;;  %8992 = vmatpush1.bf16.msra.mxu1 %v10019_v41  ;;  %v10035_v52 = vld [vmem:[%s14169_s4 + $0x3f4] ss:$8 sps:$4 sm:$0xff]   ;;  %v10037_v53 = vld [vmem:[%s14169_s4 + $0x3f0] ss:$8 sps:$4 sm:$0xff]   ;;  %v10040_v54 = vld [vmem:[%s14169_s4 + $0x404] ss:$8 sps:$4 sm:$0xff]  }
  0x20   : > { %8985 = vmatprep.subr.bf16.mxu1 %v10020_v42  ;;  %v10067_v6 = vld [vmem:[%s14169_s4 + $0x4] ss:$8 sps:$4 sm:$0xff]   ;;  %v951_v8 = vshra.s32 %v912_v61, 4  ;;  %v10654_v9 = vadd.s32 56, %v10629_v56  ;;  %v10657_v10 = vadd.s32 40, %v10629_v56  ;;  %vm10685_vm9 = vcmp.le.s32.totalorder %v992_v5, 14 }
  0x21   : > { %v10721_v38 = vadd.s32 96, %v10629_v56  ;;  %v14265_v39 = vmov 0  ;;  %v14267_v40 = vmov 0  ;;  %v10764_v55 = vld [vmem:[%s14167_s2] ss:$0 sm:$0xff]  ;;  %v14273_v57 = vmov 0 }
  0x22   : > { %1595 = vmatpush1.bf16.msra.mxu0 %v9999_v28  ;;  %vm10695_vm10 = vcmp.ge.s32.totalorder %v951_v8, 1  ;;  %vm10699_vm11 = vcmp.le.s32.totalorder %v951_v8, 14  ;;  %v957_v28 = vshra.s32 %v10654_v9, 4  ;;  %v10783_v62 = vld [vmem:[%s14168_s3] ss:$0 sm:$0xff]  ;;  %v14275_v63 = vmov 0 }
  0x23   : > { %1596 = vmatprep.subr.bf16.mxu0 %v10004_v29  ;;  %8993 = vmatpush1.bf16.msra.mxu1 %v10022_v43  ;;  %v996_v29 = vand.u32 15, %v10654_v9  ;;  %v10734_v43 = vadd.s32 120, %v10629_v56  ;;  %v962_v59 = vshra.s32 %v10721_v38, 4  ;;  %v1001_v60 = vand.u32 15, %v10721_v38 }
  0x24   : > { %8986 = vmatprep.subr.bf16.mxu1 %v10023_v44  ;;  %v10737_v44 = vadd.s32 104, %v10629_v56  ;;  %v14279_v9 = vmov 0  ;;  %v14293_v11 = vmov 0  ;;  %v14373_v38 = vmov 0 }
  0x25   : > { %8952 = vmatmul.mubr.msk.bf16.gmra.mrb[8].mxu0 %vm448_vm0, %v9975_v12  ;;  %v965_v1 = vshra.s32 %v10734_v43, 4 }
  0x26   : > { %8955 = vmatprep.mubr.msk.bf16.mxu0 %vm448_vm0, %v9976_v13  ;;  %1597 = vmatpush1.bf16.msra.mxu0 %v10002_v30  ;;  %v955_v30 = vshra.s32 %v10657_v10, 4 }
  0x27   : > { %1598 = vmatprep.subr.bf16.mxu0 %v10007_v31  ;;  %8994 = vmatpush1.bf16.msra.mxu1 %v10025_v45  ;;  %v10707_v31 = vadd.s32 112, %v10629_v56  ;;  %v14269_v45 = vmov 0 }
  0x28   : > { %8987 = vmatprep.subr.bf16.mxu1 %v10026_v46 }
  0x29   : > { %v1003_v58 = vand.u32 15, %v10707_v31 }
  0x2a   : > { %1599 = vmatpush1.bf16.msra.mxu0 %v10005_v32  ;;  %v14261_v32 = vmov 0 }
  0x2b   : > { %1600 = vmatprep.subr.bf16.mxu0 %v10010_v33  ;;  %8995 = vmatpush1.bf16.msra.mxu1 %v10028_v47  ;;  %v14329_v33 = vmov 0 }
  0x2c   : > { %8988 = vmatprep.subr.bf16.mxu1 %v10029_v48 }
  0x2d   : > { %8956 = vmatmul.mubr.msk.bf16.gmra.mrb[12].mxu0 %vm448_vm0, %v9977_v14  ;;  %v956_v14 = vshra.s32 %v917_v0, 4 }
  0x2e   : > { %8959 = vmatprep.mubr.msk.bf16.mxu0 %vm448_vm0, %v9978_v15  ;;  %1601 = vmatpush1.bf16.msra.mxu0 %v10008_v34  ;;  %v10672_v15 = vadd.s32 80, %v10629_v56  ;;  %v994_v34 = vand.u32 15, %v10657_v10  ;;  %v14281_v10 = vmov 0 }
  0x2f   : > { %1602 = vmatprep.subr.bf16.mxu0 %v10013_v35  ;;  %8996 = vmatpush1.bf16.msra.mxu1 %v10031_v49  ;;  %vm10709_vm12 = vcmp.ge.s32.totalorder %v956_v14, 1  ;;  %vm10713_vm13 = vcmp.le.s32.totalorder %v956_v14, 14  ;;  %v10747_v49 = vadd.s32 144, %v10629_v56 }
  0x30   : > { %8989 = vmatprep.subr.bf16.mxu1 %v10032_v50  ;;  %v14262_v32 = vsel %vm10709_vm12, 4294967295, %v14261_v32  ;;  %v960_v35 = vshra.s32 %v10672_v15, 4  ;;  %v14271_v50 = vmov 0 }
  0x32   : > { %1603 = vmatpush1.bf16.msra.mxu0 %v10011_v36  ;;  %v999_v36 = vand.u32 15, %v10672_v15  ;;  %vm10837_vm12 = vcmp.le.s32.totalorder %v960_v35, 14  ;;  %v14303_v15 = vmov 0 }
  0x33   : > { %8997 = vmatpush1.bf16.msra.mxu1 %v10034_v51  ;;  %1861 = vmatprep.subr.bf16.mxu0 %v10067_v6  ;;  %v10801_v6 = vadd.s32 176, %v10629_v56 }
  0x34   : > { %8990 = vmatprep.subr.bf16.mxu1 %v10035_v52  ;;  %v964_v52 = vshra.s32 %v10707_v31, 4  ;;  %v14370_v31 = vmov 0 }
  0x35   : > { %8960 = vmatmul.mubr.msk.bf16.gmra.mrb[16].mxu0 %vm448_vm0, %v9979_v16 }
  0x36   : > { %8963 = vmatprep.mubr.msk.bf16.mxu0 %vm448_vm0, %v9980_v17  ;;  %v14300_v17 = vmov 0 }
  0x37   : > { %8998 = vmatpush1.bf16.msra.mxu1 %v10037_v53  ;;  %v10756_v53 = vadd.s32 128, %v10629_v56 }
  0x38   : > { %4611 = vmatprep.subr.bf16.mxu1 %v10040_v54  ;;  %v10759_v54 = vadd.s32 152, %v10629_v56 }
  0x3d   : > { %8964 = vmatmul.mubr.msk.bf16.gmra.mrb[20].mxu0 %vm448_vm0, %v9981_v18  ;;  %v990_v18 = vand.u32 15, %v912_v61  ;;  %v10778_v61 = vadd.s32 136, %v10629_v56 }
  0x3e   : > { %8967 = vmatprep.mubr.msk.bf16.mxu0 %vm448_vm0, %v9982_v19  ;;  %v954_v19 = vshra.s32 %v915_v2, 4 }
  0x40   : > { %vm10723_vm14 = vcmp.ge.s32.totalorder %v954_v19, 1  ;;  %vm10727_vm15 = vcmp.le.s32.totalorder %v954_v19, 14  ;;  %v14288_v19 = vmov 0 }
  0x41   : > { %v14266_v39 = vsel %vm10723_vm14, 4294967295, %v14265_v39  ;;  %v14268_v40 = vsel %vm10727_vm15, 4294967295, %v14267_v40  ;;  %vm10793_vm15 = vcmp.le.s32.totalorder %v957_v28, 14  ;;  %v14289_v19 = vsel %vm10837_vm12, 4294967295, %v14288_v19 }
  0x45   : > { %8968 = vmatmul.mubr.msk.bf16.gmra.mrb[24].mxu0 %vm448_vm0, %v9983_v20  ;;  %v10683_v20 = vadd.s32 64, %v10629_v56 }
  0x46   : > { %8971 = vmatprep.mubr.msk.bf16.mxu0 %vm448_vm0, %v9984_v21 }
  0x47   : > { %v958_v41 = vshra.s32 %v10683_v20, 4  ;;  %v997_v42 = vand.u32 15, %v10683_v20  ;;  %v14334_v20 = vmov 0 }
  0x4d   : > { %8972 = vmatmul.mubr.msk.bf16.gmra.mrb[28].mxu0 %vm448_vm0, %v9985_v22  ;;  %v995_v22 = vand.u32 15, %v917_v0  ;;  %v14277_v0 = vmov 0 }
  0x4e   : > { %8975 = vmatprep.mubr.msk.bf16.mxu0 %vm448_vm0, %v9986_v23  ;;  %v993_v23 = vand.u32 15, %v915_v2  ;;  %v14278_v0 = vsel %vm10793_vm15, 4294967295, %v14277_v0  ;;  %v1004_v2 = vand.u32 15, %v10734_v43  ;;  %vm10811_vm15 = vcmp.le.s32.totalorder %v955_v30, 14 }
  0x4f   : > { %vm10749_vm14 = vcmp.ge.s32.totalorder %v995_v22, 1  ;;  %v14282_v10 = vsel %vm10811_vm15, 4294967295, %v14281_v10  ;;  %v10819_v22 = vadd.s32 160, %v10629_v56  ;;  %vm10833_vm15 = vcmp.ge.s32.totalorder %v960_v35, 1 }
  0x50   : > { %v14272_v50 = vsel %vm10749_vm14, 4294967295, %v14271_v50  ;;  %vm14283_vm14 = vmand %vm10638_vm1, %vm10642_vm2  ;;  %v14377_v43 = vshra.s32 %v10737_v44, 4 }
  0x51   : > { %vm14290_vm1 = vmand %vm10649_vm3, %vm10663_vm5 }
  0x52   : > { %vm10852_vm2 = vmand %vm14290_vm1, %vm10674_vm7  ;;  %vm10876_vm7 = vcmp.le.s32.totalorder %v994_v34, 14  ;;  %vm14307_vm1 = vnez %v14268_v40  ;;  %v14309_v34 = vmov 0 }
  0x53   : > { %vm14295_vm3 = vmand %vm10667_vm6, %vm10678_vm8  ;;  %vm10892_vm8 = vcmp.ge.s32.totalorder %v999_v36, 1  ;;  %vm10911_vm6 = vcmp.le.s32.totalorder %v958_v41, 14  ;;  %v14305_v36 = vmov 0 }
  0x54   : > { %vm10872_vm5 = vmand %vm14295_vm3, %vm10685_vm9  ;;  %v14301_v17 = vsel %vm10892_vm8, 4294967295, %v14300_v17  ;;  %vm10905_vm3 = vcmp.ge.s32.totalorder %v958_v41, 1  ;;  %v14306_v36 = vsel %vm10911_vm6, 4294967295, %v14305_v36  ;;  %v14411_v41 = vmov 0 }
  0x55   : > { %8976 = vmatmul.mubr.msk.bf16.gmra.mrb[32].mxu0 %vm448_vm0, %v9987_v24  ;;  %v10690_v24 = vadd.s32 88, %v10629_v56  ;;  %v14304_v15 = vsel %vm10905_vm3, 4294967295, %v14303_v15 }
  0x56   : > { %8979 = vmatprep.mubr.msk.bf16.mxu0 %vm448_vm0, %v9988_v25  ;;  %v10693_v25 = vadd.s32 72, %v10629_v56 }
  0x57   : > { %v961_v46 = vshra.s32 %v10690_v24, 4  ;;  %v1000_v47 = vand.u32 15, %v10690_v24  ;;  %v14338_v24 = vmov 0 }
  0x58   : > { %v959_v48 = vshra.s32 %v10693_v25, 4  ;;  %v998_v51 = vand.u32 15, %v10693_v25  ;;  %v14342_v25 = vmov 0 }
  0x59   : > { %vm10925_vm3 = vcmp.ge.s32.totalorder %v961_v46, 1  ;;  %vm10931_vm6 = vcmp.le.s32.totalorder %v961_v46, 14  ;;  %v14317_v46 = vmov 0 }
  0x5a   : > { %v14310_v34 = vsel %vm10925_vm3, 4294967295, %v14309_v34  ;;  %vm10949_vm3 = vcmp.ge.s32.totalorder %v959_v48, 1 }
  0x5b   : > { %v14318_v46 = vsel %vm10949_vm3, 4294967295, %v14317_v46  ;;  %vm11067_vm3 = vcmp.le.s32.totalorder %v962_v59, 14 }
  0x5d   : > { %8980 = vmatmul.mubr.msk.bf16.gmra.mrb[36].mxu0 %vm448_vm0, %v9989_v26  ;;  %vm10739_vm0 = vcmp.le.s32.totalorder %v990_v18, 14 }
  0x5e   : > { %1620 = vmatprep.mubr.bf16.mxu0 %v14180_v37  ;;  %v14270_v45 = vsel %vm10739_vm0, 4294967295, %v14269_v45  ;;  %vm10770_vm0 = vcmp.ge.s32.totalorder %v993_v23, 1  ;;  %v14286_v37 = vmov 0 }
  0x5f   : > { %v14274_v57 = vsel %vm10770_vm0, 4294967295, %v14273_v57  ;;  %vm10789_vm0 = vcmp.ge.s32.totalorder %v957_v28, 1  ;;  %v14287_v37 = vsel %vm10833_vm15, 4294967295, %v14286_v37  ;;  %vm14313_vm12 = vnez %v14270_v45 }
  0x60   : > { %v14276_v63 = vsel %vm10789_vm0, 4294967295, %v14275_v63  ;;  %vm10807_vm0 = vcmp.ge.s32.totalorder %v955_v30, 1 }
  0x61   : > { %v14280_v9 = vsel %vm10807_vm0, 4294967295, %v14279_v9  ;;  %vm10829_vm0 = vmand %vm14283_vm14, %vm10659_vm4  ;;  %vm10856_vm4 = vcmp.le.s32.totalorder %v996_v29, 14  ;;  %v14296_v29 = vmov 0  ;;  %vm14302_vm14 = vnez %v14262_v32 }
  0x62   : > { %v14294_v11 = vsel %vm10856_vm4, 4294967295, %v14293_v11  ;;  %v14297_v29 = vsel %vm10872_vm5, 4294967295, %v14296_v29  ;;  %vm14314_vm4 = vmand %vm10695_vm10, %vm10699_vm11  ;;  %vm14321_vm11 = vnez %v14272_v50  ;;  %v10994_v50 = vadd.s32 208, %v10629_v56 }
  0x63   : > { %vm10943_vm5 = vmand %vm14314_vm4, %vm14313_vm12 }
  0x64   : > { %vm14322_vm12 = vmand %vm14302_vm14, %vm10713_vm13  ;;  %vm10989_vm14 = vcmp.ge.s32.totalorder %v997_v42, 1 }
  0x65   : > { %vm10969_vm4 = vmand %vm14322_vm12, %vm14321_vm11  ;;  %v14330_v33 = vsel %vm10989_vm14, 4294967295, %v14329_v33  ;;  %vm11005_vm11 = vcmp.le.s32.totalorder %v1000_v47, 14  ;;  %vm14337_vm12 = vnez %v14280_v9  ;;  %v11097_v9 = vadd.s32 216, %v10629_v56 }
  0x66   : > { %v14335_v20 = vsel %vm11005_vm11, 4294967295, %v14334_v20 }
  0xe8   : > { %v8945_v8 = vpop.f32.mrb[0].mxu0 }
  0xe9   : > { %v710_v23 = vmul.f32 %v8945_v8, %v10764_v55  ;;  %v543_v30 = vpop.f32.mrb[1].mxu0 }
  0xea   : > { %v708_v8 = vmul.f32 %v10764_v55, %v543_v30  ;;  %v8946_v14 = vpop.f32.mrb[2].mxu0  ;;  %v14298_v30 = vmov 0 }
  0xeb   : > { %v756_v7 = vadd.f32 %v10783_v62, %v710_v23  ;;  %v711_v12 = vmul.f32 %v8946_v14, %v10764_v55  ;;  %v546_v4 = vpop.f32.mrb[3].mxu0  ;;  %v14299_v30 = vsel %vm10876_vm7, 4294967295, %v14298_v30  ;;  %v10882_v14 = vadd.s32 184, %v10629_v56 }
  0xec   : > { %v754_v21 = vadd.f32 %v10783_v62, %v708_v8  ;;  %v709_v13 = vmul.f32 %v10764_v55, %v546_v4  ;;  %v10916_v4 = vadd.s32 168, %v10629_v56  ;;  %vm14308_vm7 = vnez %v14266_v39 }
  0xed   : > { %vm795_vm9 = vcmp.gt.f32.partialorder %v756_v7, 0.0  ;;  %v834_v23 = vmul.f32 0.01, %v756_v7  ;;  %v757_v8 = vadd.f32 %v10783_v62, %v711_v12  ;;  %v973_v26 = vshra.s32 %v10882_v14, 4 }
  0xee   : > { %vm793_vm8 = vcmp.gt.f32.partialorder %v754_v21, 0.0  ;;  %v832_v12 = vmul.f32 0.01, %v754_v21  ;;  %v755_v16 = vadd.f32 %v10783_v62, %v709_v13  ;;  %v1012_v42 = vand.u32 15, %v10882_v14 }
  0xef   : > { %v873_v13 = vsel %vm795_vm9, %v756_v7, %v834_v23  ;;  %vm796_vm15 = vcmp.gt.f32.partialorder %v757_v8, 0.0  ;;  %v835_v18 = vmul.f32 0.01, %v757_v8  ;;  %vm10955_vm9 = vcmp.le.s32.totalorder %v959_v48, 14 }
  0xf0   : > { %v14319_v7 = vmov 0  ;;  %v1303_v27 = vsel %vm10829_vm0, %v873_v13, 0.0  ;;  %v871_v45 = vsel %vm793_vm8, %v754_v21, %v832_v12  ;;  %vm794_vm10 = vcmp.gt.f32.partialorder %v755_v16, 0.0  ;;  %v8949_v3 = vpop.f32.mrb[4].mxu0  ;;  %vm14326_vm8 = vmand %vm14308_vm7, %vm14307_vm1 }
  0xf1   : > { %v14320_v7 = vsel %vm10955_vm9, 4294967295, %v14319_v7  ;;  %v833_v23 = vmul.f32 0.01, %v755_v16  ;;  %1342 = vst [vmem:[#allocation2 + $0x10] sm:$0xff] %v1303_v27  ;;  %v1301_v28 = vsel %vm10852_vm2, %v871_v45, 0.0  ;;  %v874_v13 = vsel %vm796_vm15, %v757_v8, %v835_v18  ;;  %v559_v12 = vpop.f32.mrb[5].mxu0 }
  0xf2   : > { %v714_v21 = vmul.f32 %v8949_v3, %v10764_v55  ;;  %vm14325_vm0 = vnez %v14274_v57  ;;  %1340 = vst [vmem:[#allocation2] sm:$0xff] %v1301_v28  ;;  %vm14331_vm15 = vnez %v14297_v29  ;;  %v712_v40 = vmul.f32 %v10764_v55, %v559_v12  ;;  %v8950_v18 = vpop.f32.mrb[6].mxu0  ;;  %v10065_v12 = vld [vmem:[%s14169_s4] ss:$8 sps:$4 sm:$0xff]  }
  0xf3   : > { %vm10983_vm13 = vmand %vm14326_vm8, %vm14325_vm0  ;;  %v1304_v39 = vsel %vm14331_vm15, %v874_v13, 0.0  ;;  %v872_v57 = vsel %vm794_vm10, %v755_v16, %v833_v23  ;;  %vm14332_vm2 = vnez %v14278_v0  ;;  %vm14333_vm7 = vnez %v14276_v63  ;;  %v562_v29 = vpop.f32.mrb[7].mxu0 }
  0xf4   : > { %1343 = vst [vmem:[#allocation2 + $0x18] sm:$0xff] %v1304_v39  ;;  %v1302_v3 = vsel %vm10943_vm5, %v872_v57, 0.0  ;;  %v760_v35 = vadd.f32 %v10783_v62, %v714_v21  ;;  %v715_v16 = vmul.f32 %v8950_v18, %v10764_v55  ;;  %vm14336_vm10 = vnez %v14282_v10 }
  0xf5   : > { %vm11020_vm8 = vcmp.le.s32.totalorder %v998_v51, 14  ;;  %v971_v47 = vshra.s32 %v10916_v4, 4  ;;  %1341 = vst [vmem:[#allocation2 + $0x8] sm:$0xff] %v1302_v3  ;;  %v758_v5 = vadd.f32 %v10783_v62, %v712_v40  ;;  %v713_v8 = vmul.f32 %v10764_v55, %v562_v29 }
  0xf6   : > { %v14339_v24 = vsel %vm11020_vm8, 4294967295, %v14338_v24  ;;  %vm14340_vm5 = vnez %v14289_v19  ;;  %vm14341_vm15 = vnez %v14287_v37  ;;  %vm11033_vm0 = vcmp.ge.s32.totalorder %v964_v52, 1 }
  0xf7   : > { %v14343_v25 = vsel %vm11033_vm0, 4294967295, %v14342_v25  ;;  %vm11039_vm8 = vcmp.le.s32.totalorder %v964_v52, 14  ;;  %v14344_v51 = vmov 0  ;;  %v1010_v27 = vand.u32 15, %v10916_v4  ;;  %vm14347_vm0 = vmand %vm14333_vm7, %vm14332_vm2 }
  0xf8   : > { %v14345_v51 = vsel %vm11039_vm8, 4294967295, %v14344_v51  ;;  %v11045_v45 = vadd.s32 192, %v10629_v56  ;;  %vm799_vm11 = vcmp.gt.f32.partialorder %v760_v35, 0.0  ;;  %v838_v23 = vmul.f32 0.01, %v760_v35  ;;  %vm14355_vm7 = vmand %vm14337_vm12, %vm14336_vm10  ;;  %v8953_v19 = vpop.f32.mrb[8].mxu0 }
  0xf9   : > { %v761_v28 = vadd.f32 %v10783_v62, %v715_v16  ;;  %vm14346_vm1 = vnez %v14294_v11  ;;  %vm11061_vm8 = vcmp.ge.s32.totalorder %v962_v59, 1  ;;  %v14350_v13 = vmov 0 }
  0xfa   : > { %vm11055_vm14 = vmand %vm14347_vm0, %vm14346_vm1  ;;  %v14351_v13 = vsel %vm11061_vm8, 4294967295, %v14350_v13  ;;  %v976_v63 = vshra.s32 %v10994_v50, 4  ;;  %vm797_vm9 = vcmp.gt.f32.partialorder %v758_v5, 0.0  ;;  %v836_v0 = vmul.f32 0.01, %v758_v5 }
  0xfb   : > { %v759_v11 = vadd.f32 %v10783_v62, %v713_v8  ;;  %vm14354_vm2 = vnez %v14299_v30  ;;  %vm11086_vm0 = vcmp.ge.s32.totalorder %v965_v1, 1  ;;  %v14358_v59 = vmov 0 }
  0xfc   : > { %vm11080_vm1 = vmand %vm14355_vm7, %vm14354_vm2  ;;  %v14359_v59 = vsel %vm11086_vm0, 4294967295, %v14358_v59  ;;  %vm11092_vm8 = vcmp.le.s32.totalorder %v965_v1, 14  ;;  %v877_v10 = vsel %vm799_vm11, %v760_v35, %v838_v23  ;;  %vm800_vm10 = vcmp.gt.f32.partialorder %v761_v28, 0.0  ;;  %v575_v35 = vpop.f32.mrb[9].mxu0 }
  0xfd   : > { %v839_v30 = vmul.f32 0.01, %v761_v28  ;;  %vm14362_vm12 = vnez %v14301_v17  ;;  %vm14363_vm2 = vmand %vm14341_vm15, %vm14340_vm5  ;;  %vm11112_vm0 = vcmp.ge.s32.totalorder %v1003_v58, 1  ;;  %v1015_v40 = vand.u32 15, %v10994_v50 }
  0xfe   : > { %vm11106_vm7 = vmand %vm14363_vm2, %vm14362_vm12  ;;  %v1307_v17 = vsel %vm10969_vm4, %v877_v10, 0.0  ;;  %v875_v18 = vsel %vm797_vm9, %v758_v5, %v836_v0  ;;  %vm798_vm11 = vcmp.gt.f32.partialorder %v759_v11, 0.0  ;;  %v837_v37 = vmul.f32 0.01, %v759_v11  ;;  %v8954_v5 = vpop.f32.mrb[10].mxu0 }
  0xff   : > { %vm14368_vm5 = vnez %v14306_v36  ;;  %vm14369_vm15 = vnez %v14304_v15  ;;  %vm11125_vm2 = vcmp.ge.s32.totalorder %v1001_v60, 1  ;;  %1346 = vst [vmem:[#allocation2 + $0x30] sm:$0xff] %v1307_v17  ;;  %v1305_v58 = vsel %vm10983_vm13, %v875_v18, 0.0  ;;  %v578_v10 = vpop.f32.mrb[11].mxu0  ;;  %v1444_v17 = vld [vmem:[#allocation2 + $0x9] sm:$0xff] }
 0x100   : > { %v14371_v31 = vsel %vm11125_vm2, 4294967295, %v14370_v31  ;;  %v878_v48 = vsel %vm800_vm10, %v761_v28, %v839_v30  ;;  %v718_v3 = vmul.f32 %v8953_v19, %v10764_v55  ;;  %vm14372_vm9 = vnez %v14310_v34  ;;  %1344 = vst [vmem:[#allocation2 + $0x20] sm:$0xff] %v1305_v58  ;;  %v1443_v30 = vld [vmem:[#allocation2 + $0x1] sm:$0xff]  ;;  %vm14390_vm4 = vmand %vm14369_vm15, %vm14368_vm5 }
 0x101   : > { %vm11138_vm12 = vcmp.le.s32.totalorder %v1004_v2, 14  ;;  %v974_v60 = vshra.s32 %v11045_v45, 4  ;;  %v1308_v32 = vsel %vm11055_vm14, %v878_v48, 0.0  ;;  %v876_v16 = vsel %vm798_vm11, %v759_v11, %v837_v37 }
 0x102   : > { %v14374_v38 = vsel %vm11138_vm12, 4294967295, %v14373_v38  ;;  %v716_v29 = vmul.f32 %v10764_v55, %v575_v35  ;;  %vm14375_vm13 = vnez %v14320_v7  ;;  %vm14376_vm10 = vnez %v14318_v46  ;;  %1347 = vst [vmem:[#allocation2 + $0x38] sm:$0xff] %v1308_v32  ;;  %v10068_v46 = vld [vmem:[%s14169_s4 + $0x10] ss:$8 sps:$4 sm:$0xff]  }
 0x103   : > { %vm11152_vm2 = vcmp.ge.s32.totalorder %v14377_v43, 1  ;;  %v14378_v2 = vmov 0  ;;  %v14380_v8 = vmov %v14377_v43  ;;  %v14381_v23 = vmov 0 }
 0x104   : > { %v14379_v2 = vsel %vm11152_vm2, 4294967295, %v14378_v2  ;;  %vm11158_vm12 = vcmp.le.s32.totalorder %v14380_v8, 14  ;;  %v11163_v28 = vadd.s32 200, %v10629_v56  ;;  %v1306_v52 = vsel %vm11080_vm1, %v876_v16, 0.0 }
 0x105   : > { %v14382_v23 = vsel %vm11158_vm12, 4294967295, %v14381_v23  ;;  %v764_v0 = vadd.f32 %v10783_v62, %v718_v3  ;;  %v719_v11 = vmul.f32 %v8954_v5, %v10764_v55  ;;  %v14383_v18 = vshra.s32 %v10747_v49, 4  ;;  %1345 = vst [vmem:[#allocation2 + $0x28] sm:$0xff] %v1306_v52 }
 0x106   : > { %v14384_v37 = vmov 0  ;;  %v14387_v58 = vmov 0  ;;  %v762_v48 = vadd.f32 %v10783_v62, %v716_v29  ;;  %vm14389_vm1 = vnez %v14330_v33  ;;  %v10070_v29 = vld [vmem:[%s14169_s4 + $0x14] ss:$8 sps:$4 sm:$0xff]  }
 0x107   : > { %vm11171_vm14 = vcmp.ge.s32.totalorder %v14383_v18, 1  ;;  %v14386_v19 = vmov %v14383_v18  ;;  %v717_v35 = vmul.f32 %v10764_v55, %v578_v10  ;;  %v1475_v32 = vpack.c.bf16 %v1444_v17, %v1443_v30 }
 0x108   : > { %v14385_v37 = vsel %vm11171_vm14, 4294967295, %v14384_v37  ;;  %vm11177_vm11 = vcmp.le.s32.totalorder %v14386_v19, 14  ;;  %vm11192_vm14 = vmand %vm14390_vm4, %vm14389_vm1  ;;  %v14393_v16 = vshra.s32 %v10756_v53, 4  ;;  %v14394_v5 = vmov 0 }
 0x109   : > { %v14388_v58 = vsel %vm11177_vm11, 4294967295, %v14387_v58  ;;  %v14397_v15 = vmov 0  ;;  %v1013_v36 = vand.u32 15, %v11045_v45  ;;  %vm803_vm5 = vcmp.gt.f32.partialorder %v764_v0, 0.0  ;;  %vm14400_vm4 = vmand %vm14372_vm9, %vm10931_vm6  ;;  %1621 = vmatmul.mubr.bf16.vlgmr.msra.gmra.mrb[40].mxu0 %v1475_v32 }
 0x10a   : > { %vm11199_vm11 = vcmp.ge.s32.totalorder %v14393_v16, 1  ;;  %v14396_v33 = vmov %v14393_v16  ;;  %v842_v43 = vmul.f32 0.01, %v764_v0  ;;  %v765_v8 = vadd.f32 %v10783_v62, %v719_v11  ;;  %vm14407_vm6 = vmand %vm14376_vm10, %vm14375_vm13  ;;  %1862 = vmatpush1.bf16.msra.mxu0 %v10065_v12 }
 0x10b   : > { %v14395_v5 = vsel %vm11199_vm11, 4294967295, %v14394_v5  ;;  %vm11205_vm2 = vcmp.le.s32.totalorder %v14396_v33, 14  ;;  %vm14399_vm15 = vnez %v14335_v20  ;;  %v14403_v10 = vand.u32 15, %v10737_v44  ;;  %1863 = vmatprep.subr.bf16.mxu0 %v10070_v29 }
 0x10c   : > { %v14398_v15 = vsel %vm11205_vm2, 4294967295, %v14397_v15  ;;  %vm11221_vm1 = vmand %vm14400_vm4, %vm14399_vm15  ;;  %v977_v17 = vshra.s32 %v11097_v9, 4  ;;  %vm801_vm2 = vcmp.gt.f32.partialorder %v762_v48, 0.0  ;;  %v840_v11 = vmul.f32 0.01, %v762_v48 }
 0x10d   : > { %vm11227_vm11 = vcmp.le.s32.totalorder %v14403_v10, 14  ;;  %v763_v20 = vadd.f32 %v10783_v62, %v717_v35  ;;  %vm14406_vm12 = vnez %v14339_v24  ;;  %v14410_v44 = vand.u32 15, %v10747_v49 }
 0x10e   : > { %vm11240_vm9 = vmand %vm14407_vm6, %vm14406_vm12  ;;  %v881_v24 = vsel %vm803_vm5, %v764_v0, %v842_v43  ;;  %v843_v7 = vmul.f32 0.01, %v765_v8  ;;  %vm14413_vm12 = vnez %v14345_v51  ;;  %vm14414_vm13 = vnez %v14343_v25  ;;  %v10076_v0 = vld [vmem:[%s14169_s4 + $0x24] ss:$8 sps:$4 sm:$0xff]   ;;  %1864 = vmatpush1.bf16.msra.mxu0 %v10068_v46 }
 0x10f   : > { %vm11246_vm15 = vcmp.ge.s32.totalorder %v14410_v44, 1  ;;  %v14415_v19 = vmov 0   ;;  %v14416_v49 = vand.u32 15, %v10756_v53  ;;  %v14417_v35 = vmov 0  ;;  %v8957_v53 = vpop.f32.mrb[12].mxu0  ;;  %vm14435_vm4 = vmand %vm14414_vm13, %vm14413_vm12  ;;  %1865 = vmatprep.subr.bf16.mxu0 %v10076_v0 }
 0x110   : > { %v14412_v41 = vsel %vm11246_vm15, 4294967295, %v14411_v41  ;;  %1630 = vmatprep.mubr.bf16.mxu0 %v14415_v19  ;;  %v11266_v32 = vadd.s32 240, %v10629_v56  ;;  %v1311_v16 = vsel %vm11106_vm7, %v881_v24, 0.0  ;;  %v879_v33 = vsel %vm801_vm2, %v762_v48, %v840_v11 }
 0x111   : > { %vm11261_vm6 = vcmp.ge.s32.totalorder %v14416_v49, 1  ;;  %v841_v43 = vmul.f32 0.01, %v763_v20  ;;  %vm14419_vm10 = vnez %v14351_v13  ;;  %v14420_v10 = vshra.s32 %v10759_v54, 4  ;;  %1350 = vst [vmem:[#allocation2 + $0x50] sm:$0xff] %v1311_v16  ;;  %v591_v49 = vpop.f32.mrb[13].mxu0 }
 0x112   : > { %v14418_v35 = vsel %vm11261_vm6, 4294967295, %v14417_v35  ;;  %v14421_v12 = vmov 0  ;;  %v1309_v48 = vsel %vm11192_vm14, %v879_v33, 0.0  ;;  %vm14426_vm7 = vcmp.gt.f32.partialorder %v765_v8, 0.0  ;;  %v10074_v13 = vld [vmem:[%s14169_s4 + $0x20] ss:$8 sps:$4 sm:$0xff]  }
 0x113   : > { %vm11280_vm6 = vcmp.ge.s32.totalorder %v14420_v10, 1  ;;  %v14423_v44 = vmov %v14420_v10  ;;  %v882_v11 = vsel %vm14426_vm7, %v765_v8, %v843_v7  ;;  %v722_v24 = vmul.f32 %v8957_v53, %v10764_v55  ;;  %v1446_v10 = vld [vmem:[#allocation2 + $0x19] sm:$0xff]  ;;  %1348 = vst [vmem:[#allocation2 + $0x40] sm:$0xff] %v1309_v48  ;;  %1866 = vmatpush1.bf16.msra.mxu0 %v10074_v13 }
 0x114   : > { %v14422_v12 = vsel %vm11280_vm6, 4294967295, %v14421_v12  ;;  %vm11286_vm15 = vcmp.le.s32.totalorder %v14423_v44, 14  ;;  %vm14427_vm2 = vnez %v14359_v59  ;;  %v14428_v44 = vshra.s32 %v10778_v61, 4  ;;  %v10079_v59 = vld [vmem:[%s14169_s4 + $0x34] ss:$8 sps:$4 sm:$0xff]  }
 0x115   : > { %v14429_v18 = vmov 0  ;;  %v14432_v29 = vmov 0  ;;  %v975_v8 = vshra.s32 %v11163_v28, 4  ;;  %v1312_v7 = vsel %vm11221_vm1, %v882_v11, 0.0  ;;  %vm14452_vm13 = vmand %vm14427_vm2, %vm11092_vm8  ;;  %1867 = vmatprep.subr.bf16.mxu0 %v10079_v59 }
 0x116   : > { %vm11300_vm5 = vcmp.ge.s32.totalorder %v14428_v44, 1  ;;  %v14431_v3 = vmov %v14428_v44  ;;  %vm14434_vm7 = vcmp.gt.f32.partialorder %v763_v20, 0.0  ;;  %v720_v53 = vmul.f32 %v10764_v55, %v591_v49  ;;  %v8958_v44 = vpop.f32.mrb[14].mxu0  ;;  %1351 = vst [vmem:[#allocation2 + $0x58] sm:$0xff] %v1312_v7  ;;  %v1445_v7 = vld [vmem:[#allocation2 + $0x11] sm:$0xff] }
 0x117   : > { %v14430_v18 = vsel %vm11300_vm5, 4294967295, %v14429_v18  ;;  %vm11306_vm14 = vcmp.le.s32.totalorder %v14431_v3, 14  ;;  %v880_v16 = vsel %vm14434_vm7, %v763_v20, %v841_v43  ;;  %vm11321_vm5 = vmand %vm14435_vm4, %vm11112_vm0  ;;  %v14438_v48 = vshra.s32 %v10801_v6, 4  ;;  %v594_v3 = vpop.f32.mrb[15].mxu0 }
 0x118   : > { %v14433_v29 = vsel %vm11306_vm14, 4294967295, %v14432_v29  ;;  %v14439_v52 = vmov 0  ;;  %v14442_v25 = vmov 0  ;;  %v1310_v20 = vsel %vm11240_vm9, %v880_v16, 0.0  ;;  %vm14445_vm4 = vmand %vm14419_vm10, %vm11067_vm3  ;;  %v8961_v13 = vpop.f32.mrb[16].mxu0 }
 0x119   : > { %vm11328_vm14 = vcmp.ge.s32.totalorder %v14438_v48, 1  ;;  %v14441_v1 = vmov %v14438_v48  ;;  %v768_v43 = vadd.f32 %v10783_v62, %v722_v24  ;;  %vm14444_vm0 = vnez %v14371_v31  ;;  %1349 = vst [vmem:[#allocation2 + $0x48] sm:$0xff] %v1310_v20  ;;  %v607_v59 = vpop.f32.mrb[17].mxu0 }
 0x11a   : > { %v14440_v52 = vsel %vm11328_vm14, 4294967295, %v14439_v52  ;;  %vm11334_vm1 = vcmp.le.s32.totalorder %v14441_v1, 14  ;;  %vm11349_vm12 = vmand %vm14445_vm4, %vm14444_vm0  ;;  %v723_v49 = vmul.f32 %v8958_v44, %v10764_v55  ;;  %v14448_v34 = vand.u32 15, %v10759_v54  ;;  %v1450_v45 = vld [vmem:[#allocation2 + $0x39] sm:$0xff] }
 0x11b   : > { %v14443_v25 = vsel %vm11334_vm1, 4294967295, %v14442_v25  ;;  %v14449_v16 = vmov 0  ;;  %v11361_v31 = vadd.s32 224, %v10629_v56  ;;  %v766_v21 = vadd.f32 %v10783_v62, %v720_v53 }
 0x11c   : > { %vm11356_vm9 = vcmp.le.s32.totalorder %v14448_v34, 14  ;;  %vm14451_vm3 = vnez %v14374_v38  ;;  %v721_v46 = vmul.f32 %v10764_v55, %v594_v3  ;;  %v1476_v24 = vpack.c.bf16 %v1446_v10, %v1445_v7 }
 0x11d   : > { %v14450_v16 = vsel %vm11356_vm9, 4294967295, %v14449_v16  ;;  %vm11374_vm10 = vmand %vm14452_vm13, %vm14451_vm3  ;;  %v14455_v44 = vand.u32 15, %v10778_v61  ;;  %v14456_v48 = vmov 0  ;;  %v980_v38 = vshra.s32 %v11266_v32, 4 }
 0x11e   : > { %vm807_vm8 = vcmp.gt.f32.partialorder %v768_v43, 0.0  ;;  %v846_v39 = vmul.f32 0.01, %v768_v43  ;;  %v769_v53 = vadd.f32 %v10783_v62, %v723_v49  ;;  %vm14458_vm2 = vnez %v14382_v23  ;;  %1631 = vmatmul.mubr.bf16.gmra.mrb[44].mxu0 %v1476_v24 }
 0x11f   : > { %vm11381_vm7 = vcmp.le.s32.totalorder %v14455_v44, 14  ;;  %vm14459_vm0 = vnez %v14379_v2  ;;  %v14460_v61 = vand.u32 15, %v10801_v6  ;;  %v14461_v10 = vmov 0  ;;  %1640 = vmatprep.mubr.bf16.mxu0 %v14415_v19 }
 0x120   : > { %v14457_v48 = vsel %vm11381_vm7, 4294967295, %v14456_v48  ;;  %v11401_v0 = vadd.s32 248, %v10629_v56  ;;  %v844_v1 = vmul.f32 0.01, %v766_v21  ;;  %v767_v20 = vadd.f32 %v10783_v62, %v721_v46  ;;  %v10077_v46 = vld [vmem:[%s14169_s4 + $0x30] ss:$8 sps:$4 sm:$0xff]   ;;  %vm14478_vm14 = vmand %vm14459_vm0, %vm14458_vm2 }
 0x121   : > { %vm11396_vm3 = vcmp.ge.s32.totalorder %v14460_v61, 1  ;;  %vm14463_vm7 = vnez %v14388_v58  ;;  %vm14464_vm9 = vnez %v14385_v37  ;;  %v14465_v49 = vshra.s32 %v10819_v22, 4  ;;  %1868 = vmatpush1.bf16.msra.mxu0 %v10077_v46 }
 0x122   : > { %v14462_v10 = vsel %vm11396_vm3, 4294967295, %v14461_v10  ;;  %v14466_v6 = vmov 0  ;;  %v14469_v7 = vmov 0  ;;  %v885_v24 = vsel %vm807_vm8, %v768_v43, %v846_v39  ;;  %v10082_v39 = vld [vmem:[%s14169_s4 + $0x44] ss:$8 sps:$4 sm:$0xff]   ;;  %vm14487_vm2 = vmand %vm14464_vm9, %vm14463_vm7 }
 0x123   : > { %vm11410_vm4 = vcmp.ge.s32.totalorder %v14465_v49, 1  ;;  %v14468_v3 = vmov %v14465_v49  ;;  %v847_v44 = vmul.f32 0.01, %v769_v53  ;;  %vm14471_vm13 = vnez %v14398_v15  ;;  %1869 = vmatprep.subr.bf16.mxu0 %v10082_v39 }
 0x124   : > { %v14467_v6 = vsel %vm11410_vm4, 4294967295, %v14466_v6  ;;  %vm11416_vm3 = vcmp.le.s32.totalorder %v14468_v3, 14  ;;  %vm14472_vm1 = vnez %v14395_v5  ;;  %vm11431_vm6 = vcmp.ge.s32.totalorder %v973_v26, 1 }
 0x125   : > { %v14470_v7 = vsel %vm11416_vm3, 4294967295, %v14469_v7  ;;  %v14473_v61 = vmov 0  ;;  %vm11437_vm3 = vcmp.le.s32.totalorder %v973_v26, 14  ;;  %v14475_v49 = vmov 0  ;;  %vm14494_vm7 = vmand %vm14472_vm1, %vm14471_vm13 }
 0x126   : > { %v14474_v61 = vsel %vm11431_vm6, 4294967295, %v14473_v61  ;;  %v14476_v49 = vsel %vm11437_vm3, 4294967295, %v14475_v49  ;;  %v978_v43 = vshra.s32 %v11361_v31, 4  ;;  %v1315_v3 = vsel %vm11321_vm5, %v885_v24, 0.0  ;;  %vm11455_vm6 = vmand %vm14478_vm14, %vm11227_vm11  ;;  %v1448_v24 = vld [vmem:[#allocation2 + $0x29] sm:$0xff] }
 0x127   : > { %vm14477_vm8 = vcmp.gt.f32.partialorder %v766_v21, 0.0  ;;  %vm806_vm4 = vcmp.gt.f32.partialorder %v767_v20, 0.0  ;;  %v845_v51 = vmul.f32 0.01, %v767_v20  ;;  %vm11461_vm3 = vcmp.ge.s32.totalorder %v971_v47, 1  ;;  %1354 = vst [vmem:[#allocation2 + $0x70] sm:$0xff] %v1315_v3 }
 0x128   : > { %v883_v34 = vsel %vm14477_vm8, %v766_v21, %v844_v1  ;;  %v14481_v33 = vmov 0  ;;  %vm11467_vm5 = vcmp.le.s32.totalorder %v971_v47, 14  ;;  %vm14485_vm11 = vcmp.gt.f32.partialorder %v769_v53, 0.0  ;;  %v1447_v1 = vld [vmem:[#allocation2 + $0x21] sm:$0xff] }
 0x129   : > { %v14482_v33 = vsel %vm11461_vm3, 4294967295, %v14481_v33  ;;  %v1313_v2 = vsel %vm11349_vm12, %v883_v34, 0.0  ;;  %v886_v23 = vsel %vm14485_vm11, %v769_v53, %v847_v44  ;;  %v726_v21 = vmul.f32 %v8961_v13, %v10764_v55  ;;  %v8962_v44 = vpop.f32.mrb[18].mxu0  ;;  %v10080_v3 = vld [vmem:[%s14169_s4 + $0x40] ss:$8 sps:$4 sm:$0xff]  }
 0x12a   : > { %vm14486_vm14 = vnez %v14412_v41  ;;  %v14490_v11 = vand.u32 15, %v10819_v22  ;;  %v14491_v53 = vmov 0  ;;  %v11493_v41 = vadd.s32 232, %v10629_v56  ;;  %1352 = vst [vmem:[#allocation2 + $0x60] sm:$0xff] %v1313_v2  ;;  %v610_v14 = vpop.f32.mrb[19].mxu0  ;;  %1870 = vmatpush1.bf16.msra.mxu0 %v10080_v3 }
 0x12b   : > { %vm11482_vm0 = vmand %vm14487_vm2, %vm14486_vm14  ;;  %v1316_v37 = vsel %vm11374_vm10, %v886_v23, 0.0  ;;  %v884_v58 = vsel %vm806_vm4, %v767_v20, %v845_v51  ;;  %v724_v34 = vmul.f32 %v10764_v55, %v607_v59  ;;  %vm14493_vm9 = vnez %v14418_v35  ;;  %v10085_v23 = vld [vmem:[%s14169_s4 + $0x54] ss:$8 sps:$4 sm:$0xff]  }
 0x12c   : > { %vm11488_vm12 = vcmp.ge.s32.totalorder %v14490_v11, 1  ;;  %vm11506_vm8 = vmand %vm14494_vm7, %vm14493_vm9  ;;  %vm11512_vm11 = vcmp.le.s32.totalorder %v1012_v42, 14  ;;  %v14497_v54 = vmov 0  ;;  %v1017_v51 = vand.u32 15, %v11361_v31  ;;  %1355 = vst [vmem:[#allocation2 + $0x78] sm:$0xff] %v1316_v37  ;;  %1871 = vmatprep.subr.bf16.mxu0 %v10085_v23 }
 0x12d   : > { %v14492_v53 = vsel %vm11488_vm12, 4294967295, %v14491_v53  ;;  %v14498_v54 = vsel %vm11512_vm11, 4294967295, %v14497_v54  ;;  %v1314_v5 = vsel %vm11455_vm6, %v884_v58, 0.0  ;;  %v772_v15 = vadd.f32 %v10783_v62, %v726_v21  ;;  %v10083_v58 = vld [vmem:[%s14169_s4 + $0x50] ss:$8 sps:$4 sm:$0xff]  }
 0x12e   : > { %v727_v35 = vmul.f32 %v8962_v44, %v10764_v55  ;;  %vm14499_vm1 = vnez %v14422_v12  ;;  %vm11527_vm4 = vcmp.le.s32.totalorder %v1010_v27, 14  ;;  %v14500_v42 = vmov 0  ;;  %1353 = vst [vmem:[#allocation2 + $0x68] sm:$0xff] %v1314_v5  ;;  %1872 = vmatpush1.bf16.msra.mxu0 %v10083_v58  ;;  %v10089_v12 = vld [vmem:[%s14169_s4 + $0x60] ss:$8 sps:$4 sm:$0xff]  }
 0x12f   : > { %v14501_v42 = vsel %vm11527_vm4, 4294967295, %v14500_v42  ;;  %v981_v20 = vshra.s32 %v11401_v0, 4  ;;  %v770_v26 = vadd.f32 %v10783_v62, %v724_v34  ;;  %v725_v13 = vmul.f32 %v10764_v55, %v610_v14 }
 0x130   : > { %vm14502_vm6 = vnez %v14433_v29  ;;  %vm14503_vm13 = vnez %v14430_v18  ;;  %v1477_v4 = vpack.c.bf16 %v1448_v24, %v1447_v1  ;;  %vm11543_vm2 = vcmp.ge.s32.totalorder %v976_v63, 1  ;;  %v10091_v18 = vld [vmem:[%s14169_s4 + $0x64] ss:$8 sps:$4 sm:$0xff]  }
 0x131   : > { %v14504_v27 = vmov 0  ;;  %vm11549_vm9 = vcmp.le.s32.totalorder %v976_v63, 14  ;;  %v14506_v46 = vmov 0  ;;  %v1020_v2 = vand.u32 15, %v11401_v0  ;;  %1873 = vmatprep.subr.bf16.mxu0 %v10091_v18 }
 0x132   : > { %v14505_v27 = vsel %vm11543_vm2, 4294967295, %v14504_v27  ;;  %v14507_v46 = vsel %vm11549_vm9, 4294967295, %v14506_v46  ;;  %vm811_vm7 = vcmp.gt.f32.partialorder %v772_v15, 0.0  ;;  %v850_v21 = vmul.f32 0.01, %v772_v15  ;;  %vm14515_vm2 = vmand %vm14499_vm1, %vm11286_vm15  ;;  %1641 = vmatmul.mubr.bf16.gmra.mrb[48].mxu0 %v1477_v4 }
 0x133   : > { %v773_v59 = vadd.f32 %v10783_v62, %v727_v35  ;;  %vm14508_vm14 = vnez %v14443_v25  ;;  %vm14509_vm10 = vnez %v14440_v52  ;;  %vm11564_vm4 = vcmp.ge.s32.totalorder %v974_v60, 1  ;;  %vm14519_vm15 = vmand %vm14503_vm13, %vm14502_vm6  ;;  %1650 = vmatprep.mubr.bf16.mxu0 %v14415_v19  ;;  %1874 = vmatpush1.bf16.msra.mxu0 %v10089_v12 }
 0x134   : > { %v14510_v63 = vmov 0  ;;  %vm11570_vm9 = vcmp.le.s32.totalorder %v974_v60, 14  ;;  %v11575_v1 = vadd.s32 256, %v10629_v56  ;;  %v848_v24 = vmul.f32 0.01, %v770_v26 }
 0x135   : > { %v14511_v63 = vsel %vm11564_vm4, 4294967295, %v14510_v63  ;;  %vm14514_vm12 = vnez %v14450_v16  ;;  %v771_v60 = vadd.f32 %v10783_v62, %v725_v13  ;;  %v979_v37 = vshra.s32 %v11493_v41, 4 }
 0x136   : > { %vm11584_vm3 = vmand %vm14515_vm2, %vm14514_vm12  ;;  %v889_v34 = vsel %vm811_vm7, %v772_v15, %v850_v21  ;;  %vm812_vm11 = vcmp.gt.f32.partialorder %v773_v59, 0.0  ;;  %v851_v16 = vmul.f32 0.01, %v773_v59  ;;  %vm14518_vm4 = vnez %v14457_v48  ;;  %v8965_v15 = vpop.f32.mrb[20].mxu0 }
 0x137   : > { %vm11600_vm12 = vmand %vm14519_vm15, %vm14518_vm4  ;;  %vm11607_vm1 = vcmp.ge.s32.totalorder %v1015_v40, 1  ;;  %v1018_v44 = vand.u32 15, %v11493_v41  ;;  %v1319_v29 = vsel %vm11482_vm0, %v889_v34, 0.0  ;;  %vm14524_vm4 = vcmp.gt.f32.partialorder %v770_v26, 0.0  ;;  %v623_v47 = vpop.f32.mrb[21].mxu0 }
 0x138   : > { %v887_v48 = vsel %vm14524_vm4, %v770_v26, %v848_v24  ;;  %vm810_vm6 = vcmp.gt.f32.partialorder %v771_v60, 0.0  ;;  %v849_v5 = vmul.f32 0.01, %v771_v60  ;;  %vm14525_vm13 = vnez %v14462_v10  ;;  %vm14526_vm2 = vmand %vm14509_vm10, %vm14508_vm14  ;;  %1358 = vst [vmem:[#allocation2 + $0x90] sm:$0xff] %v1319_v29  ;;  %v8966_v13 = vpop.f32.mrb[22].mxu0 }
 0x139   : > { %vm11625_vm7 = vmand %vm14526_vm2, %vm14525_vm13  ;;  %vm11631_vm15 = vcmp.ge.s32.totalorder %v1013_v36, 1  ;;  %v1317_v10 = vsel %vm11506_vm8, %v887_v48, 0.0  ;;  %v890_v52 = vsel %vm812_vm11, %v773_v59, %v851_v16  ;;  %v730_v25 = vmul.f32 %v8965_v15, %v10764_v55  ;;  %v626_v11 = vpop.f32.mrb[23].mxu0 }
 0x13a   : > { %vm14531_vm0 = vnez %v14470_v7  ;;  %vm14532_vm10 = vnez %v14467_v6  ;;  %vm11645_vm4 = vcmp.ge.s32.totalorder %v977_v17, 1  ;;  %v14533_v36 = vmov 0  ;;  %1356 = vst [vmem:[#allocation2 + $0x80] sm:$0xff] %v1317_v10  ;;  %v10094_v6 = vld [vmem:[%s14169_s4 + $0x74] ss:$8 sps:$4 sm:$0xff]  }
 0x13b   : > { %v14534_v36 = vsel %vm11645_vm4, 4294967295, %v14533_v36  ;;  %vm11651_vm8 = vcmp.le.s32.totalorder %v977_v17, 14  ;;  %v14535_v22 = vmov 0  ;;  %v982_v35 = vshra.s32 %v11575_v1, 4  ;;  %1875 = vmatprep.subr.bf16.mxu0 %v10094_v6 }
 0x13c   : > { %v14536_v22 = vsel %vm11651_vm8, 4294967295, %v14535_v22  ;;  %v1320_v14 = vsel %vm11584_vm3, %v890_v52, 0.0  ;;  %v888_v3 = vsel %vm810_vm6, %v771_v60, %v849_v5  ;;  %v728_v26 = vmul.f32 %v10764_v55, %v623_v47 }
 0x13d   : > { %vm14537_vm11 = vnez %v14476_v49  ;;  %vm14538_vm13 = vnez %v14474_v61  ;;  %vm11666_vm14 = vcmp.ge.s32.totalorder %v975_v8, 1  ;;  %v14539_v17 = vmov 0  ;;  %1359 = vst [vmem:[#allocation2 + $0x98] sm:$0xff] %v1320_v14 }
 0x13e   : > { %v14540_v17 = vsel %vm11666_vm14, 4294967295, %v14539_v17  ;;  %vm11672_vm4 = vcmp.le.s32.totalorder %v975_v8, 14  ;;  %v14541_v4 = vmov 0  ;;  %v11677_v23 = vadd.s32 272, %v10629_v56  ;;  %v1449_v8 = vld [vmem:[#allocation2 + $0x31] sm:$0xff] }
 0x13f   : > { %v14542_v4 = vsel %vm11672_vm4, 4294967295, %v14541_v4  ;;  %v1318_v21 = vsel %vm11600_vm12, %v888_v3, 0.0  ;;  %v776_v59 = vadd.f32 %v10783_v62, %v730_v25  ;;  %v731_v24 = vmul.f32 %v8966_v13, %v10764_v55  ;;  %v10092_v3 = vld [vmem:[%s14169_s4 + $0x70] ss:$8 sps:$4 sm:$0xff]  }
 0x140   : > { %vm14543_vm3 = vnez %v14482_v33  ;;  %vm11689_vm2 = vcmp.ge.s32.totalorder %v980_v38, 1  ;;  %v14544_v60 = vmov 0  ;;  %vm11695_vm12 = vcmp.le.s32.totalorder %v980_v38, 14  ;;  %1357 = vst [vmem:[#allocation2 + $0x88] sm:$0xff] %v1318_v21  ;;  %1876 = vmatpush1.bf16.msra.mxu0 %v10092_v3 }
 0x141   : > { %v14545_v60 = vsel %vm11689_vm2, 4294967295, %v14544_v60  ;;  %v14546_v34 = vmov 0  ;;  %v1021_v16 = vand.u32 15, %v11575_v1  ;;  %v774_v29 = vadd.f32 %v10783_v62, %v728_v26  ;;  %vm14549_vm2 = vmand %vm14532_vm10, %vm14531_vm0 }
 0x142   : > { %v14547_v34 = vsel %vm11695_vm12, 4294967295, %v14546_v34  ;;  %vm14548_vm6 = vnez %v14492_v53  ;;  %v729_v58 = vmul.f32 %v10764_v55, %v626_v11  ;;  %v1478_v48 = vpack.c.bf16 %v1450_v45, %v1449_v8 }
 0x143   : > { %vm11711_vm14 = vmand %vm14549_vm2, %vm14548_vm6  ;;  %v14552_v5 = vand.u32 15, %v11097_v9  ;;  %v14553_v15 = vmov 0  ;;  %v11723_v53 = vadd.s32 280, %v10629_v56  ;;  %vm815_vm0 = vcmp.gt.f32.partialorder %v776_v59, 0.0 }
 0x144   : > { %v854_v7 = vmul.f32 0.01, %v776_v59  ;;  %v777_v10 = vadd.f32 %v10783_v62, %v731_v24  ;;  %vm14555_vm10 = vnez %v14498_v54  ;;  %vm14556_vm2 = vmand %vm14538_vm13, %vm14537_vm11  ;;  %v14559_v18 = vand.u32 15, %v11163_v28  ;;  %1651 = vmatmul.mubr.bf16.gmra.mrb[52].mxu0 %v1478_v48 }
 0x145   : > { %vm11718_vm12 = vcmp.le.s32.totalorder %v14552_v5, 14  ;;  %vm11736_vm6 = vmand %vm14556_vm2, %vm14555_vm10  ;;  %v11747_v25 = vadd.s32 264, %v10629_v56  ;;  %v852_v54 = vmul.f32 0.01, %v774_v29  ;;  %v775_v61 = vadd.f32 %v10783_v62, %v729_v58  ;;  %1660 = vmatprep.mubr.bf16.mxu0 %v14415_v19  ;;  %v1452_v58 = vld [vmem:[#allocation2 + $0x49] sm:$0xff] }
 0x146   : > { %v14554_v15 = vsel %vm11718_vm12, 4294967295, %v14553_v15  ;;  %vm11742_vm12 = vcmp.le.s32.totalorder %v14559_v18, 14  ;;  %vm14562_vm8 = vnez %v14501_v42  ;;  %vm14563_vm11 = vmand %vm14543_vm3, %vm11467_vm5  ;;  %v14566_v49 = vand.u32 15, %v11266_v32 }
 0x147   : > { %vm11757_vm13 = vmand %vm14563_vm11, %vm14562_vm8  ;;  %v14567_v47 = vmov 0  ;;  %v984_v45 = vshra.s32 %v11677_v23, 4  ;;  %v893_v14 = vsel %vm815_vm0, %v776_v59, %v854_v7  ;;  %v855_v42 = vmul.f32 0.01, %v777_v10  ;;  %v8969_v59 = vpop.f32.mrb[24].mxu0 }
 0x148   : > { %vm11763_vm10 = vcmp.ge.s32.totalorder %v14566_v49, 1  ;;  %vm14569_vm4 = vnez %v14507_v46  ;;  %vm14570_vm5 = vnez %v14505_v27  ;;  %vm11775_vm3 = vcmp.ge.s32.totalorder %v978_v43, 1  ;;  %v639_v12 = vpop.f32.mrb[25].mxu0 }
 0x149   : > { %v14568_v47 = vsel %vm11763_vm10, 4294967295, %v14567_v47  ;;  %v14571_v32 = vmov 0  ;;  %vm11781_vm11 = vcmp.le.s32.totalorder %v978_v43, 14  ;;  %v14573_v33 = vmov 0 }
 0x14a   : > { %v14572_v32 = vsel %vm11775_vm3, 4294967295, %v14571_v32  ;;  %v14574_v33 = vsel %vm11781_vm11, 4294967295, %v14573_v33  ;;  %v1023_v30 = vand.u32 15, %v11677_v23  ;;  %v1323_v26 = vsel %vm11625_vm7, %v893_v14, 0.0 }
 0x14b   : > { %vm14575_vm0 = vcmp.gt.f32.partialorder %v774_v29, 0.0  ;;  %vm814_vm8 = vcmp.gt.f32.partialorder %v775_v61, 0.0  ;;  %v853_v21 = vmul.f32 0.01, %v775_v61  ;;  %vm14576_vm2 = vnez %v14511_v63  ;;  %1362 = vst [vmem:[#allocation2 + $0xb0] sm:$0xff] %v1323_v26 }
 0x14c   : > { %v891_v13 = vsel %vm14575_vm0, %v774_v29, %v852_v54  ;;  %vm11798_vm11 = vcmp.ge.s32.totalorder %v981_v20, 1  ;;  %v14577_v43 = vmov 0  ;;  %vm11804_vm10 = vcmp.le.s32.totalorder %v981_v20, 14  ;;  %v1451_v29 = vld [vmem:[#allocation2 + $0x41] sm:$0xff] }
 0x14d   : > { %v14578_v43 = vsel %vm11798_vm11, 4294967295, %v14577_v43  ;;  %v14579_v50 = vmov 0  ;;  %v1321_v24 = vsel %vm11711_vm14, %v891_v13, 0.0  ;;  %vm14581_vm7 = vcmp.gt.f32.partialorder %v777_v10, 0.0  ;;  %vm14586_vm14 = vmand %vm14570_vm5, %vm14569_vm4 }
 0x14e   : > { %v14580_v50 = vsel %vm11804_vm10, 4294967295, %v14579_v50  ;;  %v894_v11 = vsel %vm14581_vm7, %v777_v10, %v855_v42  ;;  %v734_v8 = vmul.f32 %v8969_v59, %v10764_v55  ;;  %vm11814_vm0 = vcmp.ge.s32.totalorder %v979_v37, 1  ;;  %1360 = vst [vmem:[#allocation2 + $0xa0] sm:$0xff] %v1321_v24  ;;  %vm11835_vm7 = vmand %vm14586_vm14, %vm11607_vm1  ;;  %v8970_v10 = vpop.f32.mrb[26].mxu0 }
 0x14f   : > { %v14582_v48 = vmov 0  ;;  %vm11820_vm3 = vcmp.le.s32.totalorder %v979_v37, 14  ;;  %v14584_v20 = vmov 0  ;;  %v985_v38 = vshra.s32 %v11723_v53, 4  ;;  %vm14591_vm1 = vmand %vm14576_vm2, %vm11570_vm9  ;;  %v642_v18 = vpop.f32.mrb[27].mxu0 }
 0x150   : > { %v14583_v48 = vsel %vm11814_vm0, 4294967295, %v14582_v48  ;;  %v14585_v20 = vsel %vm11820_vm3, 4294967295, %v14584_v20  ;;  %v1324_v5 = vsel %vm11736_vm6, %v894_v11, 0.0  ;;  %v892_v6 = vsel %vm814_vm8, %v775_v61, %v853_v21  ;;  %vm11857_vm4 = vmand %vm14591_vm1, %vm11631_vm15 }
 0x151   : > { %v732_v7 = vmul.f32 %v10764_v55, %v639_v12  ;;  %vm11842_vm0 = vcmp.ge.s32.totalorder %v1017_v51, 1  ;;  %v14589_v9 = vmov 0  ;;  %v983_v57 = vshra.s32 %v11747_v25, 4  ;;  %1363 = vst [vmem:[#allocation2 + $0xb8] sm:$0xff] %v1324_v5 }
 0x152   : > { %v14590_v9 = vsel %vm11842_vm0, 4294967295, %v14589_v9  ;;  %v1322_v27 = vsel %vm11757_vm13, %v892_v6, 0.0  ;;  %v780_v46 = vadd.f32 %v10783_v62, %v734_v8  ;;  %v14592_v31 = vmov 0  ;;  %v1454_v8 = vld [vmem:[#allocation2 + $0x59] sm:$0xff] }
 0x153   : > { %v14593_v31 = vsel %vm11857_vm4, 4294967295, %v14592_v31  ;;  %v735_v51 = vmul.f32 %v8970_v10, %v10764_v55  ;;  %vm11864_vm6 = vcmp.le.s32.totalorder %v1020_v2, 14  ;;  %v14594_v54 = vmov 0  ;;  %1361 = vst [vmem:[#allocation2 + $0xa8] sm:$0xff] %v1322_v27  ;;  %v1453_v10 = vld [vmem:[#allocation2 + $0x51] sm:$0xff] }
 0x154   : > { %v14595_v54 = vsel %vm11864_vm6, 4294967295, %v14594_v54  ;;  %v1024_v40 = vand.u32 15, %v11723_v53  ;;  %v778_v63 = vadd.f32 %v10783_v62, %v732_v7  ;;  %vm14596_vm9 = vnez %v14536_v22 }
 0x155   : > { %vm14597_vm15 = vnez %v14534_v36  ;;  %v733_v39 = vmul.f32 %v10764_v55, %v642_v18  ;;  %v1479_v61 = vpack.c.bf16 %v1452_v58, %v1451_v29  ;;  %vm11877_vm2 = vcmp.le.s32.totalorder %v1018_v44, 14 }
 0x156   : > { %v14598_v0 = vmov 0  ;;  %v1022_v2 = vand.u32 15, %v11747_v25  ;;  %vm819_vm5 = vcmp.gt.f32.partialorder %v780_v46, 0.0  ;;  %v858_v28 = vmul.f32 0.01, %v780_v46  ;;  %vm14607_vm10 = vmand %vm14597_vm15, %vm14596_vm9 }
 0x157   : > { %v14599_v0 = vsel %vm11877_vm2, 4294967295, %v14598_v0  ;;  %v781_v49 = vadd.f32 %v10783_v62, %v735_v51  ;;  %vm14600_vm8 = vnez %v14542_v4  ;;  %vm14601_vm14 = vnez %v14540_v17  ;;  %1661 = vmatmul.mubr.bf16.gmra.mrb[56].mxu0 %v1479_v61 }
 0x158   : > { %v11888_v14 = vadd.s32 288, %v10629_v56  ;;  %vm817_vm13 = vcmp.gt.f32.partialorder %v778_v63, 0.0  ;;  %v856_v41 = vmul.f32 0.01, %v778_v63  ;;  %v779_v44 = vadd.f32 %v10783_v62, %v733_v39  ;;  %1670 = vmatprep.mubr.bf16.mxu0 %v14415_v19  ;;  %vm14616_vm9 = vmand %vm14601_vm14, %vm14600_vm8 }
 0x159   : > { %vm14602_vm2 = vnez %v14547_v34  ;;  %vm14603_vm6 = vnez %v14545_v60  ;;  %vm11897_vm3 = vcmp.ge.s32.totalorder %v984_v45, 1  ;;  %v897_v3 = vsel %vm819_vm5, %v780_v46, %v858_v28  ;;  %vm11940_vm15 = vmand %vm14616_vm9, %vm11742_vm12 }
 0x15a   : > { %v859_v26 = vmul.f32 0.01, %v781_v49  ;;  %vm14606_vm11 = vnez %v14554_v15  ;;  %v14608_v13 = vmov 0  ;;  %vm11915_vm0 = vcmp.le.s32.totalorder %v984_v45, 14  ;;  %vm14624_vm8 = vmand %vm14603_vm6, %vm14602_vm2 }
 0x15b   : > { %vm11908_vm4 = vmand %vm14607_vm10, %vm14606_vm11  ;;  %vm11921_vm5 = vcmp.ge.s32.totalorder %v982_v35, 1  ;;  %v14612_v15 = vmov 0  ;;  %vm11927_vm10 = vcmp.le.s32.totalorder %v982_v35, 14  ;;  %v14614_v36 = vmov 0  ;;  %v8973_v35 = vpop.f32.mrb[28].mxu0 }
 0x15c   : > { %v14609_v13 = vsel %vm11908_vm4, 4294967295, %v14608_v13  ;;  %v14613_v15 = vsel %vm11921_vm5, 4294967295, %v14612_v15  ;;  %v14615_v36 = vsel %vm11927_vm10, 4294967295, %v14614_v36  ;;  %v1327_v22 = vsel %vm11835_vm7, %v897_v3, 0.0  ;;  %v1455_v3 = vld [vmem:[#allocation2 + $0x61] sm:$0xff] }
 0x15d   : > { %v895_v59 = vsel %vm817_vm13, %v778_v63, %v856_v41  ;;  %vm818_vm11 = vcmp.gt.f32.partialorder %v779_v44, 0.0  ;;  %v857_v45 = vmul.f32 0.01, %v779_v44  ;;  %v14617_v24 = vmov 0  ;;  %1366 = vst [vmem:[#allocation2 + $0xd0] sm:$0xff] %v1327_v22 }
 0x15e   : > { %v14618_v24 = vsel %vm11940_vm15, 4294967295, %v14617_v24  ;;  %vm11946_vm1 = vcmp.ge.s32.totalorder %v1023_v30, 1  ;;  %v14619_v11 = vmov 0  ;;  %vm14621_vm7 = vnez %v14593_v31  ;;  %v655_v30 = vpop.f32.mrb[29].mxu0 }
 0x15f   : > { %v14620_v11 = vsel %vm11946_vm1, 4294967295, %v14619_v11  ;;  %v1325_v52 = vsel %vm14621_vm7, %v895_v59, 0.0  ;;  %vm14622_vm13 = vcmp.gt.f32.partialorder %v781_v49, 0.0  ;;  %v738_v4 = vmul.f32 %v8973_v35, %v10764_v55  ;;  %v8974_v58 = vpop.f32.mrb[30].mxu0 }
 0x160   : > { %v11953_v17 = vsel %vm14622_vm13, %v781_v49, %v859_v26  ;;  %vm14623_vm12 = vnez %v14568_v47  ;;  %v14625_v23 = vmov 0  ;;  %vm11967_vm9 = vcmp.ge.s32.totalorder %v985_v38, 1  ;;  %1364 = vst [vmem:[#allocation2 + $0xc0] sm:$0xff] %v1325_v52  ;;  %v658_v7 = vpop.f32.mrb[31].mxu0  ;;  %v12100_v49 = vld [vmem:[%s14167_s2] ss:$0 sm:$0xff] }
 0x161   : > { %vm11963_vm14 = vmand %vm14624_vm8, %vm14623_vm12  ;;  %v14627_v12 = vmov 0  ;;  %vm11971_vm7 = vcmp.le.s32.totalorder %v985_v38, 14  ;;  %v14629_v29 = vmov 0  ;;  %v1328_v60 = vsel %vm11908_vm4, %v11953_v17, 0.0  ;;  %v1456_v26 = vld [vmem:[#allocation2 + $0x69] sm:$0xff] }
 0x162   : > { %v14626_v23 = vsel %vm11963_vm14, 4294967295, %v14625_v23  ;;  %v14628_v12 = vsel %vm11967_vm9, 4294967295, %v14627_v12  ;;  %v14630_v29 = vsel %vm11971_vm7, 4294967295, %v14629_v29  ;;  %v11979_v34 = vsel %vm818_vm11, %v779_v44, %v857_v45  ;;  %1367 = vst [vmem:[#allocation2 + $0xd8] sm:$0xff] %v1328_v60  ;;  %v10136_v60 = vld [vmem:[%s14169_s4 + $0x524] ss:$8 sps:$4 sm:$0xff]  }
 0x163   : > { %v736_v47 = vmul.f32 %v10764_v55, %v655_v30  ;;  %vm14631_vm6 = vnez %v14574_v33  ;;  %vm14632_vm2 = vnez %v14572_v32  ;;  %vm11988_vm12 = vcmp.ge.s32.totalorder %v983_v57, 1 }
 0x164   : > { %v14633_v38 = vmov 0  ;;  %v1326_v5 = vsel %vm11940_vm15, %v11979_v34, 0.0  ;;  %v784_v6 = vadd.f32 %v10783_v62, %v738_v4  ;;  %v739_v37 = vmul.f32 %v8974_v58, %v10764_v55  ;;  %vm14646_vm1 = vmand %vm14632_vm2, %vm14631_vm6 }
 0x165   : > { %v14634_v38 = vsel %vm11988_vm12, 4294967295, %v14633_v38  ;;  %vm14635_vm11 = vnez %v14580_v50  ;;  %vm14636_vm8 = vnez %v14578_v43  ;;  %vm12003_vm4 = vcmp.ge.s32.totalorder %v1021_v16, 1  ;;  %1365 = vst [vmem:[#allocation2 + $0xc8] sm:$0xff] %v1326_v5 }
 0x166   : > { %v14637_v27 = vmov 0  ;;  %vm12009_vm15 = vcmp.le.s32.totalorder %v983_v57, 14  ;;  %v14639_v46 = vmov 0  ;;  %v782_v31 = vadd.f32 %v10783_v62, %v736_v47 }
 0x167   : > { %v14638_v27 = vsel %vm12003_vm4, 4294967295, %v14637_v27  ;;  %v14640_v46 = vsel %vm12009_vm15, 4294967295, %v14639_v46  ;;  %v737_v51 = vmul.f32 %v10764_v55, %v658_v7  ;;  %vm14641_vm13 = vnez %v14585_v20 }
 0x168   : > { %vm14642_vm12 = vnez %v14583_v48  ;;  %v1480_v1 = vpack.c.bf16 %v1454_v8, %v1453_v10  ;;  %vm12021_vm4 = vcmp.le.s32.totalorder %v1024_v40, 14  ;;  %v14643_v16 = vmov 0  ;;  %v8977_v48 = vpop.f32.mrb[32].mxu0  ;;  %v4871_v10 = vld [vmem:[#allocation2 + $0x39] sm:$0xff] }
 0x169   : > { %v14644_v16 = vsel %vm12021_vm4, 4294967295, %v14643_v16  ;;  %v986_v57 = vshra.s32 %v11888_v14, 4  ;;  %vm823_vm15 = vcmp.gt.f32.partialorder %v784_v6, 0.0  ;;  %v862_v18 = vmul.f32 0.01, %v784_v6  ;;  %vm14656_vm2 = vmand %vm14642_vm12, %vm14641_vm13  ;;  %v671_v44 = vpop.f32.mrb[33].mxu0 }
 0x16a   : > { %vm14645_vm7 = vnez %v14590_v9  ;;  %v14647_v55 = vmov 0  ;;  %v785_v53 = vadd.f32 %v10783_v62, %v739_v37  ;;  %vm12040_vm9 = vcmp.le.s32.totalorder %v1022_v2, 14  ;;  %v12058_v62 = vld [vmem:[%s14168_s3] ss:$0 sm:$0xff]  ;;  %1671 = vmatmul.mubr.bf16.gmra.mrb[60].mxu0 %v1480_v1  ;;  %vm1140_vm13 = vmand %vm11897_vm3, %vm11915_vm0  ;;  %v8978_v52 = vpop.f32.mrb[34].mxu0 }
 0x16b   : > { %vm12033_vm5 = vmand %vm14646_vm1, %vm14645_vm7  ;;  %vm821_vm4 = vcmp.gt.f32.partialorder %v782_v31, 0.0  ;;  %v860_v63 = vmul.f32 0.01, %v782_v31  ;;  %vm14651_vm10 = vnez %v14595_v54  ;;  %v14653_v32 = vmov 0  ;;  %1680 = vmatprep.mubr.bf16.mxu0 %v14415_v19  ;;  %v674_v58 = vpop.f32.mrb[35].mxu0 }
 0x16c   : > { %v14648_v55 = vsel %vm12033_vm5, 4294967295, %v14647_v55  ;;  %vm14652_vm1 = vmand %vm14636_vm8, %vm14635_vm11  ;;  %v783_v25 = vadd.f32 %v12058_v62, %v737_v51  ;;  %v12062_v33 = vadd.s32 304, %v10629_v56  ;;  %v12064_v9 = vsel %vm823_vm15, %v784_v6, %v862_v18 }
 0x16d   : > { %vm12051_vm7 = vmand %vm14652_vm1, %vm14651_vm10  ;;  %vm824_vm6 = vcmp.gt.f32.partialorder %v785_v53, 0.0  ;;  %v863_v43 = vmul.f32 0.01, %v785_v53  ;;  %vm14655_vm10 = vnez %v14599_v0  ;;  %v14657_v50 = vmov 0 }
 0x16e   : > { %v14654_v32 = vsel %vm12051_vm7, 4294967295, %v14653_v32  ;;  %vm12073_vm11 = vmand %vm14656_vm2, %vm14655_vm10  ;;  %v1025_v54 = vand.u32 15, %v11888_v14  ;;  %v1331_v39 = vsel %vm11963_vm14, %v12064_v9, 0.0  ;;  %v12082_v61 = vsel %vm821_vm4, %v782_v31, %v860_v63  ;;  %v10041_v14 = vld [vmem:[%s14169_s4 + $0x410] ss:$8 sps:$4 sm:$0xff]  }
 0x16f   : > { %v14658_v50 = vsel %vm12073_vm11, 4294967295, %v14657_v50  ;;  %vm822_vm15 = vcmp.gt.f32.partialorder %v783_v25, 0.0  ;;  %v861_v0 = vmul.f32 0.01, %v783_v25  ;;  %vm12088_vm12 = vcmp.ge.s32.totalorder %v986_v57, 1  ;;  %1370 = vst [vmem:[#allocation2 + $0xf0] sm:$0xff] %v1331_v39 }
 0x170   : > { %v14659_v20 = vmov 0  ;;  %v1329_v2 = vsel %vm12033_vm5, %v12082_v61, 0.0  ;;  %v12095_v28 = vsel %vm824_vm6, %v785_v53, %v863_v43  ;;  %v742_v41 = vmul.f32 %v12100_v49, %v8977_v48  ;;  %v8981_v53 = vpop.f32.mrb[36].mxu0  ;;  %v1458_v39 = vld [vmem:[#allocation2 + $0x79] sm:$0xff] }
 0x171   : > { %v14660_v20 = vsel %vm12088_vm12, 4294967295, %v14659_v20  ;;  %vm12103_vm4 = vcmp.le.s32.totalorder %v986_v57, 14  ;;  %v14661_v22 = vmov 0  ;;  %1368 = vst [vmem:[#allocation2 + $0xe0] sm:$0xff] %v1329_v2  ;;  %v1332_v59 = vsel %vm12051_vm7, %v12095_v28, 0.0 }
 0x172   : > { %v14662_v22 = vsel %vm12103_vm4, 4294967295, %v14661_v22  ;;  %v12111_v45 = vsel %vm822_vm15, %v783_v25, %v861_v0  ;;  %v740_v35 = vmul.f32 %v12100_v49, %v671_v44  ;;  %vm14663_vm8 = vnez %v14615_v36  ;;  %1371 = vst [vmem:[#allocation2 + $0xf8] sm:$0xff] %v1332_v59  ;;  %v10038_v57 = vld [vmem:[%s14169_s4 + $0x400] ss:$8 sps:$4 sm:$0xff]   ;;  %v10043_v44 = vld [vmem:[%s14169_s4 + $0x414] ss:$8 sps:$4 sm:$0xff]  }
 0x173   : > { %vm14664_vm1 = vnez %v14613_v15  ;;  %v988_v4 = vshra.s32 %v12062_v33, 4  ;;  %v1330_v30 = vsel %vm12073_vm11, %v12111_v45, 0.0  ;;  %v788_v8 = vadd.f32 %v12058_v62, %v742_v41  ;;  %v1404_v15 = vld [vmem:[#allocation2 + $0xc8] sm:$0xff] }
 0x174   : > { %vm14665_vm10 = vnez %v14620_v11  ;;  %v743_v47 = vmul.f32 %v12100_v49, %v8978_v52  ;;  %v1027_v5 = vand.u32 15, %v12062_v33  ;;  %1369 = vst [vmem:[#allocation2 + $0xe8] sm:$0xff] %v1330_v30  ;;  %v786_v6 = vadd.f32 %v12058_v62, %v740_v35  ;;  %vm14673_vm7 = vmand %vm14664_vm1, %vm14663_vm8  ;;  %v1457_v35 = vld [vmem:[#allocation2 + $0x71] sm:$0xff] }
 0x175   : > { %vm12130_vm2 = vmand %vm1140_vm13, %vm14665_vm10  ;;  %vm14668_vm15 = vnez %v14630_v29  ;;  %vm14669_vm6 = vnez %v14628_v12  ;;  %v741_v42 = vmul.f32 %v12100_v49, %v674_v58  ;;  %v12142_v21 = vpack.c.bf16 %v1456_v26, %v1455_v3  ;;  %v10046_v58 = vld [vmem:[%s14169_s4 + $0x424] ss:$8 sps:$4 sm:$0xff]  }
 0x176   : > { %vm827_vm3 = vcmp.gt.f32.partialorder %v788_v8, 0.0  ;;  %v866_v11 = vmul.f32 0.01, %v788_v8  ;;  %v789_v37 = vadd.f32 %v12058_v62, %v743_v47  ;;  %vm14670_vm0 = vnez %v14640_v46  ;;  %v4088_v46 = vld [vmem:[#allocation2 + $0xd3] sm:$0xff]  ;;  %v4466_v47 = vld [vmem:[#allocation2 + $0x20] sm:$0xff] }
 0x177   : > { %vm14671_vm13 = vnez %v14634_v38  ;;  %vm825_vm14 = vcmp.gt.f32.partialorder %v786_v6, 0.0  ;;  %v864_v7 = vmul.f32 0.01, %v786_v6  ;;  %vm14672_vm11 = vnez %v14638_v27  ;;  %1681 = vmatmul.mubr.bf16.gmra.mrb[64].mxu0 %v12142_v21  ;;  %v687_v38 = vpop.f32.mrb[37].mxu0 }
 0x178   : > { %vm12156_vm5 = vmand %vm14673_vm7, %vm14672_vm11  ;;  %v787_v31 = vadd.f32 %v12058_v62, %v741_v42  ;;  %vm12162_vm12 = vcmp.ge.s32.totalorder %v988_v4, 1  ;;  %v12166_v1 = vsel %vm827_vm3, %v788_v8, %v866_v11  ;;  %vm828_vm10 = vcmp.gt.f32.partialorder %v789_v37, 0.0  ;;  %1690 = vmatprep.mubr.bf16.mxu0 %v14415_v19  ;;  %v4089_v43 = vld [vmem:[#allocation2 + $0xdb] sm:$0xff]  ;;  %v8982_v3 = vpop.f32.mrb[38].mxu0  ;;  %v10064_v8 = vld [vmem:[%s14169_s4 + $0x484] ss:$8 sps:$4 sm:$0xff]  }
 0x179   : > { %v867_v27 = vmul.f32 0.01, %v789_v37  ;;  %vm14678_vm4 = vnez %v14644_v16  ;;  %vm14679_vm7 = vmand %vm14669_vm6, %vm14668_vm15  ;;  %vm12179_vm8 = vcmp.le.s32.totalorder %v988_v4, 14  ;;  %v1335_v12 = vsel %vm12130_vm2, %v12166_v1, 0.0  ;;  %v1463_v3 = vld [vmem:[#allocation2 + $0xa1] sm:$0xff] }
 0x17a   : > { %vm12175_vm11 = vmand %vm14679_vm7, %vm14678_vm4  ;;  %v12190_v29 = vsel %vm825_vm14, %v786_v6, %v864_v7  ;;  %vm826_vm4 = vcmp.gt.f32.partialorder %v787_v31, 0.0  ;;  %v865_v16 = vmul.f32 0.01, %v787_v31  ;;  %1374 = vst [vmem:[#allocation2 + $0x110] sm:$0xff] %v1335_v12  ;;  %v746_v33 = vmul.f32 %v12100_v49, %v8981_v53  ;;  %v1459_v7 = vld [vmem:[#allocation2 + $0x81] sm:$0xff] }
 0x17b   : > { %vm14684_vm1 = vmand %vm14671_vm13, %vm14670_vm0  ;;  %v1333_v63 = vsel %vm12156_vm5, %v12190_v29, 0.0  ;;  %v12206_v25 = vsel %vm828_vm10, %v789_v37, %v867_v27  ;;  %vm12209_vm14 = vcmp.ge.s32.totalorder %v1027_v5, 1  ;;  %v744_v2 = vmul.f32 %v12100_v49, %v687_v38  ;;  %v4090_v6 = vld [vmem:[#allocation2 + $0xe3] sm:$0xff]  ;;  %v4091_v42 = vld [vmem:[#allocation2 + $0xeb] sm:$0xff] }
 0x17c   : > { %vm12199_vm6 = vmand %vm14684_vm1, %vm12040_vm9  ;;  %1372 = vst [vmem:[#allocation2 + $0x100] sm:$0xff] %v1333_v63  ;;  %v1336_v0 = vsel %vm12175_vm11, %v12206_v25, 0.0  ;;  %v12216_v48 = vsel %vm826_vm4, %v787_v31, %v865_v16  ;;  %v4108_v41 = vpack.c.bf16 %v4089_v43, %v4088_v46  ;;  %v792_v59 = vadd.f32 %v12058_v62, %v746_v33  ;;  %v10044_v37 = vld [vmem:[%s14169_s4 + $0x420] ss:$8 sps:$4 sm:$0xff]   ;;  %v10049_v27 = vld [vmem:[%s14169_s4 + $0x434] ss:$8 sps:$4 sm:$0xff]  }
 0x17d   : > { %vm1144_vm9 = vmand %vm12162_vm12, %vm12179_vm8  ;;  %1375 = vst [vmem:[#allocation2 + $0x118] sm:$0xff] %v1336_v0  ;;  %v1334_v26 = vsel %vm12199_vm6, %v12216_v48, 0.0  ;;  %vm14689_vm15 = vnez %v14662_v22  ;;  %vm14690_vm3 = vnez %v14660_v20  ;;  %vm1181_vm13 = vcmp.ge.s32.totalorder %v1025_v54, 1  ;;  %v1460_v31 = vld [vmem:[#allocation2 + $0x89] sm:$0xff]  ;;  %v4092_v63 = vld [vmem:[#allocation2 + $0xf3] sm:$0xff] }
 0x17e   : > { %vm1142_vm0 = vmand %vm14690_vm3, %vm14689_vm15  ;;  %1373 = vst [vmem:[#allocation2 + $0x108] sm:$0xff] %v1334_v26  ;;  %v790_v52 = vadd.f32 %v12058_v62, %v744_v2  ;;  %4362 = vmatmul.mubr.bf16.vlgmr.msra.gmra.mrb[0].mxu1 %v4108_v41  ;;  %v12237_v4 = vpack.c.bf16 %v1458_v39, %v1457_v35  ;;  %vm831_vm10 = vcmp.gt.f32.partialorder %v792_v59, 0.0  ;;  %v870_v30 = vmul.f32 0.01, %v792_v59  ;;  %v10052_v12 = vld [vmem:[%s14169_s4 + $0x444] ss:$8 sps:$4 sm:$0xff]  }
 0x17f   : > { %vm12246_vm7 = vmand %vm1144_vm9, %vm12209_vm14  ;;  %4612 = vmatpush1.bf16.msra.mxu1 %v10038_v57  ;;  %4371 = vmatprep.mubr.bf16.mxu1 %v14415_v19  ;;  %v4109_v51 = vpack.c.bf16 %v4091_v42, %v4090_v6  ;;  %v12278_v36 = vpack.c.bf16 %v1460_v31, %v1459_v7  ;;  %v10047_v57 = vld [vmem:[%s14169_s4 + $0x430] ss:$8 sps:$4 sm:$0xff]   ;;  %v10050_v53 = vld [vmem:[%s14169_s4 + $0x440] ss:$8 sps:$4 sm:$0xff]   ;;  %vm10423_vm12 = vmmov 1   ;;  %vm14695_vm8 = vnez %v14618_v24  ;;  %v690_v24 = vpop.f32.mrb[39].mxu0 }
 0x180   : > { %vm829_vm4 = vcmp.gt.f32.partialorder %v790_v52, 0.0  ;;  %v868_v54 = vmul.f32 0.01, %v790_v52  ;;  %vm12259_vm1 = vmand %vm1142_vm0, %vm1181_vm13  ;;  %1691 = vmatmul.mubr.bf16.gmra.mrb[68].mxu0 %v12237_v4  ;;  %4613 = vmatprep.subr.bf16.mxu1 %v10043_v44  ;;  %v909_v5 = vsel %vm831_vm10, %v792_v59, %v870_v30  ;;  %v1462_v33 = vld [vmem:[#allocation2 + $0x99] sm:$0xff]  ;;  %v1461_v46 = vld [vmem:[#allocation2 + $0x91] sm:$0xff]  ;;  %vm14696_vm9 = vnez %v14609_v13 }
 0x181   : > { %1700 = vmatprep.mubr.bf16.mxu0 %v14415_v19  ;;  %v1339_v20 = vsel %vm12246_vm7, %v909_v5, 0.0  ;;  %v10055_v38 = vld [vmem:[%s14169_s4 + $0x454] ss:$8 sps:$4 sm:$0xff]   ;;  %v12295_v43 = vpack.c.bf16 %v1462_v33, %v1461_v46  ;;  %v10053_v39 = vld [vmem:[%s14169_s4 + $0x450] ss:$8 sps:$4 sm:$0xff]   ;;  %vm10396_vm14 = vmpackc.low %vm14695_vm8, %vm10423_vm12 }
 0x182   : > { %v907_v22 = vsel %vm829_vm4, %v790_v52, %v868_v54  ;;  %1378 = vst [vmem:[#allocation2 + $0x130] sm:$0xff] %v1339_v20  ;;  %v10058_v0 = vld [vmem:[%s14169_s4 + $0x464] ss:$8 sps:$4 sm:$0xff]   ;;  %v10056_v44 = vld [vmem:[%s14169_s4 + $0x460] ss:$8 sps:$4 sm:$0xff]   ;;  %v1465_v42 = vld [vmem:[#allocation2 + $0xb1] sm:$0xff] }
 0x183   : > { %v1337_v11 = vsel %vm12259_vm1, %v907_v22, 0.0  ;;  %4614 = vmatpush1.bf16.msra.mxu1 %v10041_v14  ;;  %v4093_v16 = vld [vmem:[#allocation2 + $0xfb] sm:$0xff]  ;;  %v1464_v26 = vld [vmem:[#allocation2 + $0xa9] sm:$0xff]  ;;  %vm10399_vm15 = vmpackc.low %vm14696_vm9, %vm10423_vm12  ;;  %vm14697_vm1 = vnez %v14648_v55  ;;  %vm14698_vm12 = vnez %v14658_v50  ;;  %vm14700_vm9 = vnez %v14654_v32 }
 0x184   : > { %1376 = vst [vmem:[#allocation2 + $0x120] sm:$0xff] %v1337_v11  ;;  %4615 = vmatprep.subr.bf16.mxu1 %v10046_v58  ;;  %v4110_v40 = vpack.c.bf16 %v4093_v16, %v4092_v63  ;;  %v10061_v35 = vld [vmem:[%s14169_s4 + $0x474] ss:$8 sps:$4 sm:$0xff]   ;;  %v12312_v52 = vpack.c.bf16 %v1464_v26, %v1463_v3  ;;  %v10059_v30 = vld [vmem:[%s14169_s4 + $0x470] ss:$8 sps:$4 sm:$0xff]   ;;  %v4467_v14 = vld [vmem:[#allocation2 + $0x28] sm:$0xff]  ;;  %v10406_v55 = vpack.c.bf16 %v12095_v28, %v12064_v9 }
 0x185   : > { %v4094_v2 = vld [vmem:[#allocation2 + $0x103] sm:$0xff]  ;;  %v4095_v41 = vld [vmem:[#allocation2 + $0x10b] sm:$0xff]  ;;  %v1466_v58 = vld [vmem:[#allocation2 + $0xb9] sm:$0xff]  ;;  %v12326_v5 = vpack.c.bf16 %v4467_v14, %v4466_v47  ;;  %v10412_v32 = vpack.c.bf16 %v12206_v25, %v12166_v1 }
 0x186   : > { %4372 = vmatmul.mubr.bf16.gmra.mrb[4].mxu1 %v4109_v51  ;;  %v4111_v59 = vpack.c.bf16 %v4095_v41, %v4094_v2  ;;  %v10062_v54 = vld [vmem:[%s14169_s4 + $0x480] ss:$8 sps:$4 sm:$0xff]   ;;  %v10073_v6 = vld [vmem:[%s14169_s4 + $0x494] ss:$8 sps:$4 sm:$0xff]   ;;  %v12332_v20 = vpack.c.bf16 %v1466_v58, %v1465_v42  ;;  %v10071_v22 = vld [vmem:[%s14169_s4 + $0x490] ss:$8 sps:$4 sm:$0xff]  }
 0x187   : > { %4616 = vmatpush1.bf16.msra.mxu1 %v10044_v37  ;;  %4381 = vmatprep.mubr.bf16.mxu1 %v14415_v19  ;;  %v10088_v11 = vld [vmem:[%s14169_s4 + $0x4a4] ss:$8 sps:$4 sm:$0xff]   ;;  %v4469_v37 = vld [vmem:[#allocation2 + $0x38] sm:$0xff]  ;;  %v10086_v7 = vld [vmem:[%s14169_s4 + $0x4a0] ss:$8 sps:$4 sm:$0xff]  }
 0x188   : > { %1701 = vmatmul.mubr.bf16.gmra.mrb[72].mxu0 %v12278_v36  ;;  %4617 = vmatprep.subr.bf16.mxu1 %v10049_v27  ;;  %v4468_v31 = vld [vmem:[#allocation2 + $0x30] sm:$0xff]  ;;  %v1467_v51 = vld [vmem:[#allocation2 + $0xc1] sm:$0xff]  ;;  %v1470_v46 = vld [vmem:[#allocation2 + $0xd9] sm:$0xff] }
 0x189   : > { %1710 = vmatprep.mubr.bf16.mxu0 %v14415_v19  ;;  %v1468_v27 = vld [vmem:[#allocation2 + $0xc9] sm:$0xff]  ;;  %v10103_v2 = vld [vmem:[%s14169_s4 + $0x4d4] ss:$8 sps:$4 sm:$0xff]   ;;  %vm10402_vm8 = vmpackc.low %vm14698_vm12, %vm14697_vm1 }
 0x18a   : > { %v12352_v16 = vpack.c.bf16 %v1468_v27, %v1467_v51  ;;  %v10100_v63 = vld [vmem:[%s14169_s4 + $0x4c4] ss:$8 sps:$4 sm:$0xff]   ;;  %v1469_v41 = vld [vmem:[#allocation2 + $0xd1] sm:$0xff]  ;;  %v10104_v14 = vld [vmem:[%s14169_s4 + $0x4e0] ss:$8 sps:$4 sm:$0xff]  }
 0x18b   : > { %4618 = vmatpush1.bf16.msra.mxu1 %v10047_v57  ;;  %v12346_v57 = vpack.c.bf16 %v4469_v37, %v4468_v31  ;;  %v10115_v33 = vld [vmem:[%s14169_s4 + $0x104] ss:$8 sps:$4 sm:$0xff]   ;;  %v10101_v3 = vld [vmem:[%s14169_s4 + $0x4d0] ss:$8 sps:$4 sm:$0xff]   ;;  %v10109_v47 = vld [vmem:[%s14169_s4 + $0x4f4] ss:$8 sps:$4 sm:$0xff]  }
 0x18c   : > { %4619 = vmatprep.subr.bf16.mxu1 %v10052_v12  ;;  %v10097_v12 = vld [vmem:[%s14169_s4 + $0x4b4] ss:$8 sps:$4 sm:$0xff]   ;;  %2199 = vmatprep.subr.bf16.mxu0 %v10115_v33  ;;  %v10106_v26 = vld [vmem:[%s14169_s4 + $0x4e4] ss:$8 sps:$4 sm:$0xff]   ;;  %v10110_v50 = vld [vmem:[%s14169_s4 + $0x500] ss:$8 sps:$4 sm:$0xff]  }
 0x18d   : > { %v10112_v42 = vld [vmem:[%s14169_s4 + $0x504] ss:$8 sps:$4 sm:$0xff]   ;;  %v1474_v37 = vld [vmem:[#allocation2 + $0xf9] sm:$0xff]  ;;  %v1473_v31 = vld [vmem:[#allocation2 + $0xf1] sm:$0xff] }
 0x18e   : > { %4382 = vmatmul.mubr.bf16.gmra.mrb[8].mxu1 %v4110_v40  ;;  %v4471_v40 = vld [vmem:[#allocation2 + $0x48] sm:$0xff]  ;;  %v12409_v51 = vpack.c.bf16 %v1474_v37, %v1473_v31  ;;  %v4477_v27 = vld [vmem:[#allocation2 + $0x78] sm:$0xff]  ;;  %v1379_v33 = vld [vmem:[#allocation2] sm:$0xff] }
 0x18f   : > { %4620 = vmatpush1.bf16.msra.mxu1 %v10050_v53  ;;  %4391 = vmatprep.mubr.bf16.mxu1 %v14415_v19  ;;  %v10095_v53 = vld [vmem:[%s14169_s4 + $0x4b0] ss:$8 sps:$4 sm:$0xff]   ;;  %v10128_v37 = vld [vmem:[%s14169_s4 + $0x140] ss:$8 sps:$4 sm:$0xff]   ;;  %v10133_v31 = vld [vmem:[%s14169_s4 + $0x154] ss:$8 sps:$4 sm:$0xff]  }
 0x190   : > { %1711 = vmatmul.mubr.bf16.gmra.mrb[76].mxu0 %v12295_v43  ;;  %4621 = vmatprep.subr.bf16.mxu1 %v10055_v38  ;;  %v4470_v38 = vld [vmem:[#allocation2 + $0x40] sm:$0xff]  ;;  %v4869_v9 = vld [vmem:[#allocation2 + $0x29] sm:$0xff]  ;;  %v10121_v28 = vld [vmem:[%s14169_s4 + $0x514] ss:$8 sps:$4 sm:$0xff]  }
 0x191   : > { %1720 = vmatprep.mubr.bf16.mxu0 %v14415_v19  ;;  %v4870_v1 = vld [vmem:[#allocation2 + $0x31] sm:$0xff] }
 0x192   : > { %v4901_v18 = vpack.c.bf16 %v4871_v10, %v4870_v1  ;;  %v10145_v25 = vld [vmem:[%s14169_s4 + $0x534] ss:$8 sps:$4 sm:$0xff]  }
 0x193   : > { %4622 = vmatpush1.bf16.msra.mxu1 %v10053_v39  ;;  %v10098_v39 = vld [vmem:[%s14169_s4 + $0x4c0] ss:$8 sps:$4 sm:$0xff]   ;;  %v10190_v1 = vld [vmem:[%s14169_s4 + $0x1f4] ss:$8 sps:$4 sm:$0xff]  }
 0x194   : > { %4623 = vmatprep.subr.bf16.mxu1 %v10058_v0  ;;  %v12369_v0 = vpack.c.bf16 %v4471_v40, %v4470_v38  ;;  %v10113_v40 = vld [vmem:[%s14169_s4 + $0x100] ss:$8 sps:$4 sm:$0xff]  }
 0x196   : > { %4392 = vmatmul.mubr.bf16.gmra.mrb[12].mxu1 %v4111_v59  ;;  %v4473_v59 = vld [vmem:[#allocation2 + $0x58] sm:$0xff] }
 0x197   : > { %4624 = vmatpush1.bf16.msra.mxu1 %v10056_v44  ;;  %4643 = vmatprep.mubr.bf16.mxu1 %v14415_v19  ;;  %v12375_v44 = vpack.c.bf16 %v1470_v46, %v1469_v41  ;;  %v10118_v46 = vld [vmem:[%s14169_s4 + $0x114] ss:$8 sps:$4 sm:$0xff]   ;;  %v10124_v41 = vld [vmem:[%s14169_s4 + $0x124] ss:$8 sps:$4 sm:$0xff]  }
 0x198   : > { %1721 = vmatmul.mubr.bf16.gmra.mrb[80].mxu0 %v12312_v52  ;;  %4625 = vmatprep.subr.bf16.mxu1 %v10061_v35  ;;  %v4472_v35 = vld [vmem:[#allocation2 + $0x50] sm:$0xff] }
 0x199   : > { %1730 = vmatprep.mubr.bf16.mxu0 %v14415_v19 }
 0x19b   : > { %4626 = vmatpush1.bf16.msra.mxu1 %v10059_v30  ;;  %v1471_v30 = vld [vmem:[#allocation2 + $0xe1] sm:$0xff] }
 0x19c   : > { %5013 = vmatprep.subr.bf16.mxu1 %v10064_v8  ;;  %v1472_v8 = vld [vmem:[#allocation2 + $0xe9] sm:$0xff] }
 0x19d   : > { %v12395_v58 = vpack.c.bf16 %v1472_v8, %v1471_v30  ;;  %v10122_v30 = vld [vmem:[%s14169_s4 + $0x120] ss:$8 sps:$4 sm:$0xff]  }
 0x19e   : > { %4644 = vmatmul.mubr.bf16.vlgmr.msra.gmra.mrb[16].mxu1 %v12326_v5 }
 0x19f   : > { %5014 = vmatpush1.bf16.msra.mxu1 %v10062_v54  ;;  %4653 = vmatprep.mubr.bf16.mxu1 %v14415_v19  ;;  %v12389_v54 = vpack.c.bf16 %v4473_v59, %v4472_v35  ;;  %v1381_v35 = vld [vmem:[#allocation2 + $0x10] sm:$0xff] }
 0x1a0   : > { %1731 = vmatmul.mubr.bf16.gmra.mrb[84].mxu0 %v12332_v20  ;;  %5015 = vmatprep.subr.bf16.mxu1 %v10073_v6  ;;  %v10107_v6 = vld [vmem:[%s14169_s4 + $0x4f0] ss:$8 sps:$4 sm:$0xff]  }
 0x1a1   : > { %1740 = vmatprep.mubr.bf16.mxu0 %v14415_v19 }
 0x1a3   : > { %5016 = vmatpush1.bf16.msra.mxu1 %v10071_v22  ;;  %v4475_v22 = vld [vmem:[#allocation2 + $0x68] sm:$0xff] }
 0x1a4   : > { %5017 = vmatprep.subr.bf16.mxu1 %v10088_v11  ;;  %v4474_v11 = vld [vmem:[#allocation2 + $0x60] sm:$0xff] }
 0x1a6   : > { %4654 = vmatmul.mubr.bf16.gmra.mrb[20].mxu1 %v12346_v57 }
 0x1a7   : > { %4663 = vmatprep.mubr.bf16.mxu1 %v14415_v19  ;;  %5018 = vmatpush1.bf16.msra.mxu1 %v10086_v7  ;;  %v12406_v7 = vpack.c.bf16 %v4475_v22, %v4474_v11  ;;  %v4480_v22 = vld [vmem:[#allocation2 + $0x90] sm:$0xff] }
 0x1a8   : > { %1741 = vmatmul.mubr.bf16.gmra.mrb[88].mxu0 %v12352_v16  ;;  %5019 = vmatprep.subr.bf16.mxu1 %v10097_v12  ;;  %v4476_v12 = vld [vmem:[#allocation2 + $0x70] sm:$0xff] }
 0x1a9   : > { %1750 = vmatprep.mubr.bf16.mxu0 %v14415_v19 }
 0x1ab   : > { %5020 = vmatpush1.bf16.msra.mxu1 %v10095_v53  ;;  %v1380_v53 = vld [vmem:[#allocation2 + $0x8] sm:$0xff] }
 0x1ac   : > { %5021 = vmatprep.subr.bf16.mxu1 %v10100_v63  ;;  %v12414_v63 = vpack.c.bf16 %v4477_v27, %v4476_v12  ;;  %v1411_v38 = vpack.c.bf16 %v1380_v53, %v1379_v33  ;;  %v4483_v27 = vld [vmem:[#allocation2 + $0xa8] sm:$0xff]  ;;  %v10131_v12 = vld [vmem:[%s14169_s4 + $0x150] ss:$8 sps:$4 sm:$0xff]   ;;  %v4482_v33 = vld [vmem:[#allocation2 + $0xa0] sm:$0xff] }
 0x1ad   : > { %v10139_v53 = vld [vmem:[%s14169_s4 + $0x164] ss:$8 sps:$4 sm:$0xff]  }
 0x1ae   : > { %4664 = vmatmul.mubr.bf16.gmra.mrb[24].mxu1 %v12369_v0 }
 0x1af   : > { %4673 = vmatprep.mubr.bf16.mxu1 %v14415_v19  ;;  %5022 = vmatpush1.bf16.msra.mxu1 %v10098_v39  ;;  %v4479_v39 = vld [vmem:[#allocation2 + $0x88] sm:$0xff] }
 0x1b0   : > { %1751 = vmatmul.mubr.bf16.gmra.mrb[92].mxu0 %v12375_v44  ;;  %5023 = vmatprep.subr.bf16.mxu1 %v10103_v2  ;;  %v10116_v2 = vld [vmem:[%s14169_s4 + $0x110] ss:$8 sps:$4 sm:$0xff]  }
 0x1b1   : > { %1760 = vmatprep.mubr.bf16.mxu0 %v14415_v19 }
 0x1b3   : > { %5024 = vmatpush1.bf16.msra.mxu1 %v10101_v3  ;;  %v4478_v3 = vld [vmem:[#allocation2 + $0x80] sm:$0xff] }
 0x1b4   : > { %5025 = vmatprep.subr.bf16.mxu1 %v10106_v26  ;;  %v1382_v26 = vld [vmem:[#allocation2 + $0x18] sm:$0xff]  ;;  %v12431_v59 = vpack.c.bf16 %v4479_v39, %v4478_v3 }
 0x1b5   : > { %v1412_v8 = vpack.c.bf16 %v1382_v26, %v1381_v35  ;;  %v10140_v39 = vld [vmem:[%s14169_s4 + $0x170] ss:$8 sps:$4 sm:$0xff]   ;;  %v948_v35 = vadd.s32 296, %v10629_v56 }
 0x1b6   : > { %4674 = vmatmul.mubr.bf16.gmra.mrb[28].mxu1 %v12389_v54  ;;  %v12495_v26 = vld [vmem:[#allocation2 + $0xd0] sm:$0xff] }
 0x1b7   : > { %4683 = vmatprep.mubr.bf16.mxu1 %v14415_v19  ;;  %5026 = vmatpush1.bf16.msra.mxu1 %v10104_v14  ;;  %v10127_v14 = vld [vmem:[%s14169_s4 + $0x134] ss:$8 sps:$4 sm:$0xff]  }
 0x1b8   : > { %1761 = vmatmul.mubr.bf16.gmra.mrb[96].mxu0 %v12395_v58  ;;  %5027 = vmatprep.subr.bf16.mxu1 %v10109_v47  ;;  %v4481_v47 = vld [vmem:[#allocation2 + $0x98] sm:$0xff] }
 0x1b9   : > { %1770 = vmatprep.mubr.bf16.mxu0 %v14415_v19  ;;  %v12448_v11 = vpack.c.bf16 %v4481_v47, %v4480_v22  ;;  %v4872_v47 = vld [vmem:[#allocation2 + $0x41] sm:$0xff] }
 0x1ba   : > { %v10146_v22 = vld [vmem:[%s14169_s4 + $0x540] ss:$8 sps:$4 sm:$0xff]  }
 0x1bb   : > { %5028 = vmatpush1.bf16.msra.mxu1 %v10107_v6  ;;  %v10125_v6 = vld [vmem:[%s14169_s4 + $0x130] ss:$8 sps:$4 sm:$0xff]  }
 0x1bc   : > { %5415 = vmatprep.subr.bf16.mxu1 %v10112_v42  ;;  %v10130_v42 = vld [vmem:[%s14169_s4 + $0x144] ss:$8 sps:$4 sm:$0xff]  }
 0x1be   : > { %4684 = vmatmul.mubr.bf16.gmra.mrb[32].mxu1 %v12406_v7 }
 0x1bf   : > { %4693 = vmatprep.mubr.bf16.mxu1 %v14415_v19 }
 0x1c0   : > { %1771 = vmatmul.mubr.bf16.gmra.mrb[100].mxu0 %v12409_v51 }
 0x1c1   : > { %1893 = vmatprep.mubr.bf16.mxu0 %v14415_v19 }
 0x1c6   : > { %4694 = vmatmul.mubr.bf16.gmra.mrb[36].mxu1 %v12414_v63 }
 0x1c7   : > { %4703 = vmatprep.mubr.bf16.mxu1 %v14415_v19 }
 0x1c8   : > { %1894 = vmatmul.mubr.bf16.vlgmr.msra.gmra.mrb[40].mxu0 %v1411_v38  ;;  %v10142_v38 = vld [vmem:[%s14169_s4 + $0x174] ss:$8 sps:$4 sm:$0xff]  }
 0x1c9   : > { %1903 = vmatprep.mubr.bf16.mxu0 %v14415_v19  ;;  %2200 = vmatpush1.bf16.msra.mxu0 %v10113_v40  ;;  %v12466_v40 = vpack.c.bf16 %v4483_v27, %v4482_v33  ;;  %v10149_v27 = vld [vmem:[%s14169_s4 + $0x550] ss:$8 sps:$4 sm:$0xff]  }
 0x1ca   : > { %2201 = vmatprep.subr.bf16.mxu0 %v10118_v46  ;;  %v4485_v46 = vld [vmem:[#allocation2 + $0xb8] sm:$0xff] }
 0x1cb   : > { %v4874_v33 = vld [vmem:[#allocation2 + $0x51] sm:$0xff] }
 0x1cd   : > { %2202 = vmatpush1.bf16.msra.mxu0 %v10116_v2  ;;  %v4484_v2 = vld [vmem:[#allocation2 + $0xb0] sm:$0xff] }
 0x1ce   : > { %4704 = vmatmul.mubr.bf16.gmra.mrb[40].mxu1 %v12431_v59  ;;  %2203 = vmatprep.subr.bf16.mxu0 %v10124_v41  ;;  %v12481_v41 = vpack.c.bf16 %v4485_v46, %v4484_v2  ;;  %v10157_v46 = vld [vmem:[%s14169_s4 + $0x574] ss:$8 sps:$4 sm:$0xff]  }
 0x1cf   : > { %4713 = vmatprep.mubr.bf16.mxu1 %v14415_v19 }
 0x1d0   : > { %1904 = vmatmul.mubr.bf16.gmra.mrb[44].mxu0 %v1412_v8 }
 0x1d1   : > { %1913 = vmatprep.mubr.bf16.mxu0 %v14415_v19  ;;  %2204 = vmatpush1.bf16.msra.mxu0 %v10122_v30  ;;  %v1026_v30 = vand.u32 15, %v948_v35 }
 0x1d2   : > { %2205 = vmatprep.subr.bf16.mxu0 %v10127_v14  ;;  %v10163_v14 = vld [vmem:[%s14169_s4 + $0x184] ss:$8 sps:$4 sm:$0xff]  }
 0x1d3   : > { %vm1260_vm13 = vcmp.le.s32.totalorder %v1026_v30, 14  ;;  %v10166_v30 = vld [vmem:[%s14169_s4 + $0x194] ss:$8 sps:$4 sm:$0xff]  }
 0x1d5   : > { %2206 = vmatpush1.bf16.msra.mxu0 %v10125_v6  ;;  %v4873_v6 = vld [vmem:[#allocation2 + $0x49] sm:$0xff] }
 0x1d6   : > { %4714 = vmatmul.mubr.bf16.gmra.mrb[44].mxu1 %v12448_v11  ;;  %2207 = vmatprep.subr.bf16.mxu0 %v10130_v42  ;;  %v1406_v42 = vld [vmem:[#allocation2 + $0xd8] sm:$0xff] }
 0x1d7   : > { %4723 = vmatprep.mubr.bf16.mxu1 %v14415_v19 }
 0x1d8   : > { %1914 = vmatmul.mubr.bf16.gmra.mrb[48].mxu0 %v12326_v5  ;;  %v10137_v5 = vld [vmem:[%s14169_s4 + $0x160] ss:$8 sps:$4 sm:$0xff]  }
 0x1d9   : > { %1923 = vmatprep.mubr.bf16.mxu0 %v14415_v19  ;;  %2208 = vmatpush1.bf16.msra.mxu0 %v10128_v37  ;;  %v10151_v37 = vld [vmem:[%s14169_s4 + $0x554] ss:$8 sps:$4 sm:$0xff]  }
 0x1da   : > { %2209 = vmatprep.subr.bf16.mxu0 %v10133_v31  ;;  %v1424_v31 = vpack.c.bf16 %v1406_v42, %v12495_v26  ;;  %v2071_v42 = vld [vmem:[#allocation2 + $0x8a] sm:$0xff] }
 0x1dd   : > { %2210 = vmatpush1.bf16.msra.mxu0 %v10131_v12  ;;  %v10154_v12 = vld [vmem:[%s14169_s4 + $0x564] ss:$8 sps:$4 sm:$0xff]  }
 0x1de   : > { %4724 = vmatmul.mubr.bf16.gmra.mrb[48].mxu1 %v12466_v40  ;;  %2211 = vmatprep.subr.bf16.mxu0 %v10139_v53  ;;  %v4875_v53 = vld [vmem:[#allocation2 + $0x59] sm:$0xff] }
 0x1df   : > { %4733 = vmatprep.mubr.bf16.mxu1 %v14415_v19 }
 0x1e0   : > { %1924 = vmatmul.mubr.bf16.gmra.mrb[52].mxu0 %v12346_v57  ;;  %v12486_v57 = vld [vmem:[#allocation2 + $0xc0] sm:$0xff] }
 0x1e1   : > { %1933 = vmatprep.mubr.bf16.mxu0 %v14415_v19  ;;  %2212 = vmatpush1.bf16.msra.mxu0 %v10137_v5  ;;  %v10397_v3 = vpack.c.bf16 %v11979_v34, %v12486_v57  ;;  %v745_v34 = vmul.f32 %v12100_v49, %v690_v24  ;;  %v10403_v49 = vpack.c.bf16 %v12111_v45, %v12082_v61  ;;  %v10119_v45 = vld [vmem:[%s14169_s4 + $0x510] ss:$8 sps:$4 sm:$0xff]   ;;  %v10152_v5 = vld [vmem:[%s14169_s4 + $0x560] ss:$8 sps:$4 sm:$0xff]  }
 0x1e2   : > { %2213 = vmatprep.subr.bf16.mxu0 %v10142_v38  ;;  %v4903_v38 = vpack.c.bf16 %v4875_v53, %v4874_v33  ;;  %v2054_v24 = vld [vmem:[#allocation2 + $0x2] sm:$0xff]  ;;  %v4898_v53 = vld [vmem:[#allocation2 + $0x111] sm:$0xff] }
 0x1e3   : > { %v791_v13 = vadd.f32 %v12058_v62, %v745_v34  ;;  %v4868_v62 = vld [vmem:[#allocation2 + $0x21] sm:$0xff] }
 0x1e4   : > { %v4900_v61 = vpack.c.bf16 %v4869_v9, %v4868_v62  ;;  %v10161_v34 = vld [vmem:[%s14169_s4 + $0x180] ss:$8 sps:$4 sm:$0xff]  }
 0x1e5   : > { %2214 = vmatpush1.bf16.msra.mxu0 %v10140_v39  ;;  %vm830_vm10 = vcmp.gt.f32.partialorder %v791_v13, 0.0  ;;  %v1407_v39 = vld [vmem:[#allocation2 + $0xe0] sm:$0xff] }
 0x1e6   : > { %4734 = vmatmul.mubr.bf16.gmra.mrb[52].mxu1 %v12481_v41  ;;  %2601 = vmatprep.subr.bf16.mxu0 %v10163_v14  ;;  %v10176_v62 = vld [vmem:[%s14169_s4 + $0x1c0] ss:$8 sps:$4 sm:$0xff]  }
 0x1e7   : > { %4743 = vmatprep.mubr.bf16.mxu1 %v14415_v19  ;;  %v2074_v33 = vld [vmem:[#allocation2 + $0xa2] sm:$0xff] }
 0x1e8   : > { %1934 = vmatmul.mubr.bf16.gmra.mrb[56].mxu0 %v12369_v0  ;;  %v10400_v0 = vpack.c.bf16 %v11953_v17, %v12495_v26  ;;  %v869_v17 = vmul.f32 0.01, %v791_v13  ;;  %v1409_v26 = vld [vmem:[#allocation2 + $0xf0] sm:$0xff] }
 0x1e9   : > { %1943 = vmatprep.mubr.bf16.mxu0 %v14415_v19 }
 0x1ea   : > { %v908_v8 = vsel %vm830_vm10, %v791_v13, %v869_v17  ;;  %v2057_v13 = vld [vmem:[#allocation2 + $0x1a] sm:$0xff]  ;;  %v2056_v17 = vld [vmem:[#allocation2 + $0x12] sm:$0xff] }
 0x1ee   : > { %10398 = vmatmul.mubr.msk.bf16.gmra.mrb[56].mxu1 %vm10396_vm14, %v10397_v3  ;;  %vm14699_vm14 = vnez %v14626_v23  ;;  %v10409_v23 = vpack.c.bf16 %v12216_v48, %v12190_v29  ;;  %v10134_v29 = vld [vmem:[%s14169_s4 + $0x520] ss:$8 sps:$4 sm:$0xff]   ;;  %v1423_v48 = vpack.c.bf16 %v1404_v15, %v12486_v57  ;;  %v10160_v57 = vld [vmem:[%s14169_s4 + $0x584] ss:$8 sps:$4 sm:$0xff]   ;;  %v1410_v3 = vld [vmem:[#allocation2 + $0xf8] sm:$0xff] }
 0x1ef   : > { %4753 = vmatprep.mubr.bf16.mxu1 %v14415_v19  ;;  %v10188_v15 = vld [vmem:[%s14169_s4 + $0x1f0] ss:$8 sps:$4 sm:$0xff]  }
 0x1f0   : > { %1944 = vmatmul.mubr.bf16.gmra.mrb[60].mxu0 %v12389_v54  ;;  %v987_v54 = vshra.s32 %v948_v35, 4  ;;  %v2055_v35 = vld [vmem:[#allocation2 + $0xa] sm:$0xff] }
 0x1f1   : > { %1953 = vmatprep.mubr.bf16.mxu0 %v14415_v19 }
 0x1f2   : > { %vm1065_vm3 = vcmp.ge.s32.totalorder %v987_v54, 1  ;;  %vm1104_vm0 = vcmp.le.s32.totalorder %v987_v54, 14  ;;  %v2086_v54 = vpack.c.bf16 %v2055_v35, %v2054_v24  ;;  %v2079_v24 = vld [vmem:[#allocation2 + $0xca] sm:$0xff] }
 0x1f3   : > { %vm1143_vm7 = vmand %vm1065_vm3, %vm1104_vm0  ;;  %v10182_v35 = vld [vmem:[%s14169_s4 + $0x5a0] ss:$8 sps:$4 sm:$0xff]  }
 0x1f4   : > { %vm1299_vm4 = vmand %vm1143_vm7, %vm1260_vm13 }
 0x1f5   : > { %vm10408_vm3 = vmpackc.low %vm12199_vm6, %vm12156_vm5 }
 0x1f6   : > { %10401 = vmatmul.mubr.msk.bf16.gmra.mrb[60].mxu1 %vm10399_vm15, %v10400_v0  ;;  %vm10405_vm15 = vmpackc.low %vm14700_vm9, %vm14699_vm14  ;;  %v1426_v0 = vpack.c.bf16 %v1410_v3, %v1409_v26  ;;  %v10167_v3 = vld [vmem:[%s14169_s4 + $0x590] ss:$8 sps:$4 sm:$0xff]   ;;  %v10184_v26 = vld [vmem:[%s14169_s4 + $0x5a4] ss:$8 sps:$4 sm:$0xff]  }
 0x1f7   : > { %4763 = vmatprep.mubr.bf16.mxu1 %v14415_v19  ;;  %vm10411_vm0 = vmpackc.low %vm12175_vm11, %vm12130_vm2  ;;  %vm8154_vm11 = vcmask 785408  }
 0x1f8   : > { %1954 = vmatmul.mubr.bf16.gmra.mrb[64].mxu0 %v12406_v7  ;;  %v1338_v7 = vsel %vm1299_vm4, %v908_v8, 0.0  ;;  %v10170_v8 = vld [vmem:[%s14169_s4 + $0x1a0] ss:$8 sps:$4 sm:$0xff]  }
 0x1f9   : > { %1963 = vmatprep.mubr.bf16.mxu0 %v14415_v19  ;;  %1377 = vst [vmem:[#allocation2 + $0x128] sm:$0xff] %v1338_v7  ;;  %v10175_v7 = vld [vmem:[%s14169_s4 + $0x1b4] ss:$8 sps:$4 sm:$0xff]  }
 0x1fe   : > { %10404 = vmatmul.mubr.msk.bf16.gmra.mrb[0].mxu1 %vm10402_vm8, %v10403_v49  ;;  %v2087_v49 = vpack.c.bf16 %v2057_v13, %v2056_v17  ;;  %v2081_v13 = vld [vmem:[#allocation2 + $0xda] sm:$0xff] }
 0x1ff   : > { %4773 = vmatprep.mubr.bf16.mxu1 %v14415_v19  ;;  %v10194_v17 = vld [vmem:[%s14169_s4 + $0x5c0] ss:$8 sps:$4 sm:$0xff]  }
 0x200   : > { %1964 = vmatmul.mubr.bf16.gmra.mrb[68].mxu0 %v12414_v63  ;;  %v10143_v63 = vld [vmem:[%s14169_s4 + $0x530] ss:$8 sps:$4 sm:$0xff]  }
 0x201   : > { %1973 = vmatprep.mubr.bf16.mxu0 %v14415_v19 }
 0x206   : > { %10407 = vmatmul.mubr.msk.bf16.gmra.mrb[4].mxu1 %vm10405_vm15, %v10406_v55  ;;  %v10173_v55 = vld [vmem:[%s14169_s4 + $0x1b0] ss:$8 sps:$4 sm:$0xff]  }
 0x207   : > { %4783 = vmatprep.mubr.bf16.mxu1 %v14415_v19 }
 0x208   : > { %1974 = vmatmul.mubr.bf16.gmra.mrb[72].mxu0 %v12431_v59  ;;  %v10148_v59 = vld [vmem:[%s14169_s4 + $0x544] ss:$8 sps:$4 sm:$0xff]  }
 0x209   : > { %1983 = vmatprep.mubr.bf16.mxu0 %v14415_v19 }
 0x20e   : > { %10410 = vmatmul.mubr.msk.bf16.gmra.mrb[8].mxu1 %vm10408_vm3, %v10409_v23  ;;  %v2058_v23 = vld [vmem:[#allocation2 + $0x22] sm:$0xff] }
 0x20f   : > { %4793 = vmatprep.mubr.bf16.mxu1 %v14415_v19 }
 0x210   : > { %1984 = vmatmul.mubr.bf16.gmra.mrb[76].mxu0 %v12448_v11  ;;  %v4902_v11 = vpack.c.bf16 %v4873_v6, %v4872_v47  ;;  %v2068_v47 = vld [vmem:[#allocation2 + $0x72] sm:$0xff] }
 0x211   : > { %1993 = vmatprep.mubr.bf16.mxu0 %v14415_v19 }
 0x216   : > { %10413 = vmatmul.mubr.msk.bf16.gmra.mrb[12].mxu1 %vm10411_vm0, %v10412_v32  ;;  %v2059_v32 = vld [vmem:[#allocation2 + $0x2a] sm:$0xff] }
 0x217   : > { %5045 = vmatprep.mubr.bf16.mxu1 %v14415_v19  ;;  %v12643_v9 = vpack.c.bf16 %v2059_v32, %v2058_v23  ;;  %v2082_v23 = vld [vmem:[#allocation2 + $0xe2] sm:$0xff]  ;;  %v2083_v32 = vld [vmem:[#allocation2 + $0xea] sm:$0xff] }
 0x218   : > { %1994 = vmatmul.mubr.bf16.gmra.mrb[80].mxu0 %v12466_v40  ;;  %v1408_v40 = vld [vmem:[#allocation2 + $0xe8] sm:$0xff] }
 0x219   : > { %2003 = vmatprep.mubr.bf16.mxu0 %v14415_v19  ;;  %v1425_v2 = vpack.c.bf16 %v1408_v40, %v1407_v39  ;;  %v2075_v40 = vld [vmem:[#allocation2 + $0xaa] sm:$0xff]  ;;  %v2077_v39 = vld [vmem:[#allocation2 + $0xba] sm:$0xff] }
 0x21e   : > { %5046 = vmatmul.mubr.bf16.vlgmr.msra.gmra.mrb[16].mxu1 %v4900_v61  ;;  %v10179_v61 = vld [vmem:[%s14169_s4 + $0x1d0] ss:$8 sps:$4 sm:$0xff]  }
 0x21f   : > { %5416 = vmatpush1.bf16.msra.mxu1 %v10110_v50  ;;  %5055 = vmatprep.mubr.bf16.mxu1 %v14415_v19  ;;  %v10181_v50 = vld [vmem:[%s14169_s4 + $0x1d4] ss:$8 sps:$4 sm:$0xff]  }
 0x220   : > { %2004 = vmatmul.mubr.bf16.gmra.mrb[84].mxu0 %v12481_v41  ;;  %5417 = vmatprep.subr.bf16.mxu1 %v10121_v28  ;;  %v10155_v41 = vld [vmem:[%s14169_s4 + $0x570] ss:$8 sps:$4 sm:$0xff]  }
 0x221   : > { %2013 = vmatprep.mubr.bf16.mxu0 %v14415_v19  ;;  %v2061_v28 = vld [vmem:[#allocation2 + $0x3a] sm:$0xff] }
 0x223   : > { %5418 = vmatpush1.bf16.msra.mxu1 %v10119_v45  ;;  %v2060_v45 = vld [vmem:[#allocation2 + $0x32] sm:$0xff] }
 0x224   : > { %5419 = vmatprep.subr.bf16.mxu1 %v10136_v60  ;;  %v10185_v60 = vld [vmem:[%s14169_s4 + $0x1e0] ss:$8 sps:$4 sm:$0xff]   ;;  %v12661_v10 = vpack.c.bf16 %v2061_v28, %v2060_v45  ;;  %v2084_v45 = vld [vmem:[#allocation2 + $0xf2] sm:$0xff] }
 0x225   : > { %v2085_v28 = vld [vmem:[#allocation2 + $0xfa] sm:$0xff] }
 0x226   : > { %5056 = vmatmul.mubr.bf16.gmra.mrb[20].mxu1 %v4901_v18 }
 0x227   : > { %5065 = vmatprep.mubr.bf16.mxu1 %v14415_v19  ;;  %5420 = vmatpush1.bf16.msra.mxu1 %v10134_v29  ;;  %v2063_v29 = vld [vmem:[#allocation2 + $0x4a] sm:$0xff] }
 0x228   : > { %2014 = vmatmul.mubr.bf16.gmra.mrb[88].mxu0 %v1423_v48  ;;  %5421 = vmatprep.subr.bf16.mxu1 %v10145_v25  ;;  %v2065_v25 = vld [vmem:[#allocation2 + $0x5a] sm:$0xff]  ;;  %v2064_v48 = vld [vmem:[#allocation2 + $0x52] sm:$0xff] }
 0x229   : > { %2023 = vmatprep.mubr.bf16.mxu0 %v14415_v19 }
 0x22b   : > { %5422 = vmatpush1.bf16.msra.mxu1 %v10143_v63  ;;  %v12679_v63 = vpack.c.bf16 %v2065_v25, %v2064_v48  ;;  %v10220_v25 = vld [vmem:[%s14169_s4 + $0x224] ss:$8 sps:$4 sm:$0xff]   ;;  %v2459_v48 = vld [vmem:[#allocation2 + $0x1b] sm:$0xff] }
 0x22c   : > { %5423 = vmatprep.subr.bf16.mxu1 %v10148_v59  ;;  %v2067_v59 = vld [vmem:[#allocation2 + $0x6a] sm:$0xff] }
 0x22e   : > { %5066 = vmatmul.mubr.bf16.gmra.mrb[24].mxu1 %v4902_v11  ;;  %v4896_v11 = vld [vmem:[#allocation2 + $0x101] sm:$0xff] }
 0x22f   : > { %5075 = vmatprep.mubr.bf16.mxu1 %v14415_v19  ;;  %5424 = vmatpush1.bf16.msra.mxu1 %v10146_v22 }
 0x230   : > { %2024 = vmatmul.mubr.bf16.gmra.mrb[92].mxu0 %v1424_v31  ;;  %5425 = vmatprep.subr.bf16.mxu1 %v10151_v37  ;;  %v2073_v37 = vld [vmem:[#allocation2 + $0x9a] sm:$0xff] }
 0x231   : > { %2033 = vmatprep.mubr.bf16.mxu0 %v14415_v19 }
 0x233   : > { %5426 = vmatpush1.bf16.msra.mxu1 %v10149_v27  ;;  %v2072_v27 = vld [vmem:[#allocation2 + $0x92] sm:$0xff] }
 0x234   : > { %5427 = vmatprep.subr.bf16.mxu1 %v10154_v12  ;;  %v12702_v12 = vpack.c.bf16 %v2073_v37, %v2072_v27  ;;  %v10235_v37 = vld [vmem:[%s14169_s4 + $0x264] ss:$8 sps:$4 sm:$0xff]   ;;  %v2462_v27 = vld [vmem:[#allocation2 + $0x33] sm:$0xff] }
 0x236   : > { %5076 = vmatmul.mubr.bf16.gmra.mrb[28].mxu1 %v4903_v38  ;;  %v12707_v38 = vpack.c.bf16 %v2075_v40, %v2074_v33  ;;  %v10236_v33 = vld [vmem:[%s14169_s4 + $0x270] ss:$8 sps:$4 sm:$0xff]   ;;  %v2464_v40 = vld [vmem:[#allocation2 + $0x43] sm:$0xff] }
 0x237   : > { %5085 = vmatprep.mubr.bf16.mxu1 %v14415_v19  ;;  %5428 = vmatpush1.bf16.msra.mxu1 %v10152_v5 }
 0x238   : > { %2034 = vmatmul.mubr.bf16.gmra.mrb[96].mxu0 %v1425_v2  ;;  %5429 = vmatprep.subr.bf16.mxu1 %v10157_v46  ;;  %v10158_v46 = vld [vmem:[%s14169_s4 + $0x580] ss:$8 sps:$4 sm:$0xff]   ;;  %v10169_v2 = vld [vmem:[%s14169_s4 + $0x594] ss:$8 sps:$4 sm:$0xff]  }
 0x239   : > { %2043 = vmatprep.mubr.bf16.mxu0 %v14415_v19 }
 0x23b   : > { %5430 = vmatpush1.bf16.msra.mxu1 %v10155_v41  ;;  %v2076_v41 = vld [vmem:[#allocation2 + $0xb2] sm:$0xff] }
 0x23c   : > { %5817 = vmatprep.subr.bf16.mxu1 %v10160_v57  ;;  %v12719_v57 = vpack.c.bf16 %v2077_v39, %v2076_v41  ;;  %v2466_v39 = vld [vmem:[#allocation2 + $0x53] sm:$0xff]  ;;  %v2468_v41 = vld [vmem:[#allocation2 + $0x63] sm:$0xff] }
 0x23e   : > { %5086 = vmatmul.mubr.bf16.gmra.mrb[32].mxu1 %v12142_v21  ;;  %v10164_v21 = vld [vmem:[%s14169_s4 + $0x190] ss:$8 sps:$4 sm:$0xff]  }
 0x23f   : > { %5095 = vmatprep.mubr.bf16.mxu1 %v14415_v19 }
 0x240   : > { %2044 = vmatmul.mubr.bf16.gmra.mrb[100].mxu0 %v1426_v0  ;;  %v2078_v0 = vld [vmem:[#allocation2 + $0xc2] sm:$0xff] }
 0x241   : > { %2231 = vmatprep.mubr.bf16.mxu0 %v14415_v19 }
 0x246   : > { %5096 = vmatmul.mubr.bf16.gmra.mrb[36].mxu1 %v12237_v4  ;;  %v10172_v4 = vld [vmem:[%s14169_s4 + $0x1a4] ss:$8 sps:$4 sm:$0xff]  }
 0x247   : > { %5105 = vmatprep.mubr.bf16.mxu1 %v14415_v19 }
 0x248   : > { %2232 = vmatmul.mubr.bf16.vlgmr.msra.gmra.mrb[40].mxu0 %v2086_v54  ;;  %v12737_v54 = vpack.c.bf16 %v2079_v24, %v2078_v0  ;;  %v2470_v0 = vld [vmem:[#allocation2 + $0x73] sm:$0xff] }
 0x249   : > { %2241 = vmatprep.mubr.bf16.mxu0 %v14415_v19  ;;  %2602 = vmatpush1.bf16.msra.mxu0 %v10161_v34  ;;  %v10193_v34 = vld [vmem:[%s14169_s4 + $0x5b4] ss:$8 sps:$4 sm:$0xff]  }
 0x24a   : > { %2603 = vmatprep.subr.bf16.mxu0 %v10166_v30  ;;  %v10191_v30 = vld [vmem:[%s14169_s4 + $0x5b0] ss:$8 sps:$4 sm:$0xff]  }
 0x24d   : > { %2604 = vmatpush1.bf16.msra.mxu0 %v10164_v21  ;;  %v10196_v21 = vld [vmem:[%s14169_s4 + $0x5c4] ss:$8 sps:$4 sm:$0xff]  }
 0x24e   : > { %5106 = vmatmul.mubr.bf16.gmra.mrb[40].mxu1 %v12278_v36  ;;  %2605 = vmatprep.subr.bf16.mxu0 %v10172_v4  ;;  %v10178_v36 = vld [vmem:[%s14169_s4 + $0x1c4] ss:$8 sps:$4 sm:$0xff]  }
 0x24f   : > { %5115 = vmatprep.mubr.bf16.mxu1 %v14415_v19  ;;  %v10211_v4 = vld [vmem:[%s14169_s4 + $0x204] ss:$8 sps:$4 sm:$0xff]  }
 0x250   : > { %2242 = vmatmul.mubr.bf16.gmra.mrb[44].mxu0 %v2087_v49  ;;  %v2080_v49 = vld [vmem:[#allocation2 + $0xd2] sm:$0xff] }
 0x251   : > { %2251 = vmatprep.mubr.bf16.mxu0 %v14415_v19  ;;  %2606 = vmatpush1.bf16.msra.mxu0 %v10170_v8  ;;  %v10199_v8 = vld [vmem:[%s14169_s4 + $0x5d4] ss:$8 sps:$4 sm:$0xff]  }
 0x252   : > { %2607 = vmatprep.subr.bf16.mxu0 %v10175_v7  ;;  %v12758_v7 = vpack.c.bf16 %v2081_v13, %v2080_v49  ;;  %v5301_v49 = vld [vmem:[#allocation2 + $0x11a] sm:$0xff] }
 0x255   : > { %2608 = vmatpush1.bf16.msra.mxu0 %v10173_v55  ;;  %v10197_v55 = vld [vmem:[%s14169_s4 + $0x5d0] ss:$8 sps:$4 sm:$0xff]  }
 0x256   : > { %5116 = vmatmul.mubr.bf16.gmra.mrb[44].mxu1 %v12295_v43  ;;  %2609 = vmatprep.subr.bf16.mxu0 %v10178_v36  ;;  %v10187_v43 = vld [vmem:[%s14169_s4 + $0x1e4] ss:$8 sps:$4 sm:$0xff]  }
 0x257   : > { %5125 = vmatprep.mubr.bf16.mxu1 %v14415_v19  ;;  %v10202_v36 = vld [vmem:[%s14169_s4 + $0x5e4] ss:$8 sps:$4 sm:$0xff]  }
 0x258   : > { %2252 = vmatmul.mubr.bf16.gmra.mrb[48].mxu0 %v12643_v9 }
 0x259   : > { %2261 = vmatprep.mubr.bf16.mxu0 %v14415_v19  ;;  %2610 = vmatpush1.bf16.msra.mxu0 %v10176_v62  ;;  %v10200_v62 = vld [vmem:[%s14169_s4 + $0x5e0] ss:$8 sps:$4 sm:$0xff]  }
 0x25a   : > { %2611 = vmatprep.subr.bf16.mxu0 %v10181_v50  ;;  %v12776_v50 = vpack.c.bf16 %v2083_v32, %v2082_v23 }
 0x25d   : > { %2612 = vmatpush1.bf16.msra.mxu0 %v10179_v61  ;;  %v10203_v61 = vld [vmem:[%s14169_s4 + $0x5f0] ss:$8 sps:$4 sm:$0xff]  }
 0x25e   : > { %5126 = vmatmul.mubr.bf16.gmra.mrb[48].mxu1 %v12312_v52  ;;  %2613 = vmatprep.subr.bf16.mxu0 %v10187_v43  ;;  %v2062_v52 = vld [vmem:[#allocation2 + $0x42] sm:$0xff] }
 0x25f   : > { %5135 = vmatprep.mubr.bf16.mxu1 %v14415_v19  ;;  %v12673_v18 = vpack.c.bf16 %v2063_v29, %v2062_v52  ;;  %v10208_v43 = vld [vmem:[%s14169_s4 + $0x604] ss:$8 sps:$4 sm:$0xff]   ;;  %v10214_v29 = vld [vmem:[%s14169_s4 + $0x214] ss:$8 sps:$4 sm:$0xff]  }
 0x260   : > { %2262 = vmatmul.mubr.bf16.gmra.mrb[52].mxu0 %v12661_v10 }
 0x261   : > { %2271 = vmatprep.mubr.bf16.mxu0 %v14415_v19  ;;  %2614 = vmatpush1.bf16.msra.mxu0 %v10185_v60  ;;  %v12788_v60 = vpack.c.bf16 %v2085_v28, %v2084_v45  ;;  %v10215_v28 = vld [vmem:[%s14169_s4 + $0x610] ss:$8 sps:$4 sm:$0xff]   ;;  %v10232_v45 = vld [vmem:[%s14169_s4 + $0x624] ss:$8 sps:$4 sm:$0xff]  }
 0x262   : > { %2615 = vmatprep.subr.bf16.mxu0 %v10190_v1  ;;  %v2457_v1 = vld [vmem:[#allocation2 + $0xb] sm:$0xff] }
 0x265   : > { %2616 = vmatpush1.bf16.msra.mxu0 %v10188_v15  ;;  %v10209_v15 = vld [vmem:[%s14169_s4 + $0x200] ss:$8 sps:$4 sm:$0xff]  }
 0x266   : > { %5136 = vmatmul.mubr.bf16.gmra.mrb[52].mxu1 %v12332_v20  ;;  %v2066_v20 = vld [vmem:[#allocation2 + $0x62] sm:$0xff]  ;;  %3003 = vmatprep.subr.bf16.mxu0 %v10211_v4 }
 0x267   : > { %5145 = vmatprep.mubr.bf16.mxu1 %v14415_v19  ;;  %v12685_v14 = vpack.c.bf16 %v2067_v59, %v2066_v20  ;;  %v10218_v20 = vld [vmem:[%s14169_s4 + $0x220] ss:$8 sps:$4 sm:$0xff]  }
 0x268   : > { %2272 = vmatmul.mubr.bf16.gmra.mrb[56].mxu0 %v12673_v18  ;;  %v2475_v4 = vld [vmem:[#allocation2 + $0x9b] sm:$0xff] }
 0x269   : > { %2281 = vmatprep.mubr.bf16.mxu0 %v14415_v19 }
 0x26e   : > { %5146 = vmatmul.mubr.bf16.gmra.mrb[56].mxu1 %v12352_v16  ;;  %v2069_v16 = vld [vmem:[#allocation2 + $0x7a] sm:$0xff] }
 0x26f   : > { %5155 = vmatprep.mubr.bf16.mxu1 %v14415_v19  ;;  %v12691_v6 = vpack.c.bf16 %v2069_v16, %v2068_v47  ;;  %v10221_v16 = vld [vmem:[%s14169_s4 + $0x230] ss:$8 sps:$4 sm:$0xff]   ;;  %v10226_v47 = vld [vmem:[%s14169_s4 + $0x244] ss:$8 sps:$4 sm:$0xff]  }
 0x270   : > { %2282 = vmatmul.mubr.bf16.gmra.mrb[60].mxu0 %v12679_v63 }
 0x271   : > { %2291 = vmatprep.mubr.bf16.mxu0 %v14415_v19 }
 0x276   : > { %5156 = vmatmul.mubr.bf16.gmra.mrb[60].mxu1 %v12375_v44  ;;  %v2070_v44 = vld [vmem:[#allocation2 + $0x82] sm:$0xff] }
 0x277   : > { %5165 = vmatprep.mubr.bf16.mxu1 %v14415_v19  ;;  %v12697_v22 = vpack.c.bf16 %v2071_v42, %v2070_v44  ;;  %v2461_v44 = vld [vmem:[#allocation2 + $0x2b] sm:$0xff] }
 0x278   : > { %2292 = vmatmul.mubr.bf16.gmra.mrb[64].mxu0 %v12685_v14  ;;  %v10224_v42 = vld [vmem:[%s14169_s4 + $0x240] ss:$8 sps:$4 sm:$0xff]  }
 0x279   : > { %2301 = vmatprep.mubr.bf16.mxu0 %v14415_v19 }
 0x27e   : > { %5166 = vmatmul.mubr.bf16.gmra.mrb[0].mxu1 %v12395_v58  ;;  %v4897_v58 = vld [vmem:[#allocation2 + $0x109] sm:$0xff] }
 0x27f   : > { %5175 = vmatprep.mubr.bf16.mxu1 %v14415_v19  ;;  %v4914_v31 = vpack.c.bf16 %v4897_v58, %v4896_v11  ;;  %v10229_v11 = vld [vmem:[%s14169_s4 + $0x254] ss:$8 sps:$4 sm:$0xff]   ;;  %v10227_v58 = vld [vmem:[%s14169_s4 + $0x250] ss:$8 sps:$4 sm:$0xff]  }
 0x280   : > { %2302 = vmatmul.mubr.bf16.gmra.mrb[68].mxu0 %v12691_v6 }
 0x281   : > { %2311 = vmatprep.mubr.bf16.mxu0 %v14415_v19 }
 0x286   : > { %5176 = vmatmul.mubr.bf16.gmra.mrb[4].mxu1 %v12409_v51  ;;  %v4899_v51 = vld [vmem:[#allocation2 + $0x119] sm:$0xff] }
 0x287   : > { %5185 = vmatprep.mubr.bf16.mxu1 %v14415_v19  ;;  %v4915_v5 = vpack.c.bf16 %v4899_v51, %v4898_v53  ;;  %v10238_v53 = vld [vmem:[%s14169_s4 + $0x274] ss:$8 sps:$4 sm:$0xff]  }
 0x288   : > { %2312 = vmatmul.mubr.bf16.gmra.mrb[72].mxu0 %v12697_v22 }
 0x289   : > { %2321 = vmatprep.mubr.bf16.mxu0 %v14415_v19 }
 0x28e   : > { %5186 = vmatmul.mubr.bf16.gmra.mrb[8].mxu1 %v4914_v31  ;;  %v2463_v31 = vld [vmem:[#allocation2 + $0x3b] sm:$0xff] }
 0x28f   : > { %5195 = vmatprep.mubr.bf16.mxu1 %v14415_v19  ;;  %v12845_v51 = vpack.c.bf16 %v2463_v31, %v2462_v27  ;;  %v2487_v31 = vld [vmem:[#allocation2 + $0xfb] sm:$0xff]  ;;  %v2486_v27 = vld [vmem:[#allocation2 + $0xf3] sm:$0xff] }
 0x290   : > { %2322 = vmatmul.mubr.bf16.gmra.mrb[76].mxu0 %v12702_v12 }
 0x291   : > { %2331 = vmatprep.mubr.bf16.mxu0 %v14415_v19 }
 0x296   : > { %5196 = vmatmul.mubr.bf16.gmra.mrb[12].mxu1 %v4915_v5  ;;  %v2465_v5 = vld [vmem:[#allocation2 + $0x4b] sm:$0xff] }
 0x297   : > { %5447 = vmatprep.mubr.bf16.mxu1 %v14415_v19 }
 0x298   : > { %2332 = vmatmul.mubr.bf16.gmra.mrb[80].mxu0 %v12707_v38 }
 0x299   : > { %2341 = vmatprep.mubr.bf16.mxu0 %v14415_v19 }
 0x29e   : > { %5448 = vmatmul.mubr.bf16.vlgmr.msra.gmra.mrb[16].mxu1 %v12643_v9  ;;  %v10205_v9 = vld [vmem:[%s14169_s4 + $0x5f4] ss:$8 sps:$4 sm:$0xff]  }
 0x29f   : > { %5818 = vmatpush1.bf16.msra.mxu1 %v10158_v46  ;;  %5457 = vmatprep.mubr.bf16.mxu1 %v14415_v19  ;;  %v2467_v46 = vld [vmem:[#allocation2 + $0x5b] sm:$0xff] }
 0x2a0   : > { %2342 = vmatmul.mubr.bf16.gmra.mrb[84].mxu0 %v12719_v57  ;;  %5819 = vmatprep.subr.bf16.mxu1 %v10169_v2  ;;  %v12863_v2 = vpack.c.bf16 %v2467_v46, %v2466_v39  ;;  %v10268_v46 = vld [vmem:[%s14169_s4 + $0x2a4] ss:$8 sps:$4 sm:$0xff]  }
 0x2a1   : > { %2351 = vmatprep.mubr.bf16.mxu0 %v14415_v19  ;;  %v2861_v39 = vld [vmem:[#allocation2 + $0x28] sm:$0xff] }
 0x2a3   : > { %5820 = vmatpush1.bf16.msra.mxu1 %v10167_v3 }
 0x2a4   : > { %5821 = vmatprep.subr.bf16.mxu1 %v10184_v26  ;;  %v2471_v26 = vld [vmem:[#allocation2 + $0x7b] sm:$0xff] }
 0x2a5   : > { %v12875_v24 = vpack.c.bf16 %v2471_v26, %v2470_v0  ;;  %v10269_v26 = vld [vmem:[%s14169_s4 + $0x2b0] ss:$8 sps:$4 sm:$0xff]   ;;  %v10274_v0 = vld [vmem:[%s14169_s4 + $0x2c4] ss:$8 sps:$4 sm:$0xff]  }
 0x2a6   : > { %5458 = vmatmul.mubr.bf16.gmra.mrb[20].mxu1 %v12661_v10  ;;  %v2456_v10 = vld [vmem:[#allocation2 + $0x3] sm:$0xff] }
 0x2a7   : > { %5467 = vmatprep.mubr.bf16.mxu1 %v14415_v19  ;;  %5822 = vmatpush1.bf16.msra.mxu1 %v10182_v35  ;;  %v2488_v52 = vpack.c.bf16 %v2457_v1, %v2456_v10  ;;  %v2472_v35 = vld [vmem:[#allocation2 + $0x83] sm:$0xff]  ;;  %v2481_v10 = vld [vmem:[#allocation2 + $0xcb] sm:$0xff] }
 0x2a8   : > { %2352 = vmatmul.mubr.bf16.gmra.mrb[88].mxu0 %v12737_v54  ;;  %5823 = vmatprep.subr.bf16.mxu1 %v10193_v34  ;;  %v2473_v34 = vld [vmem:[#allocation2 + $0x8b] sm:$0xff] }
 0x2a9   : > { %2361 = vmatprep.mubr.bf16.mxu0 %v14415_v19  ;;  %v10230_v1 = vld [vmem:[%s14169_s4 + $0x620] ss:$8 sps:$4 sm:$0xff]  }
 0x2ab   : > { %5824 = vmatpush1.bf16.msra.mxu1 %v10191_v30  ;;  %v5298_v30 = vld [vmem:[#allocation2 + $0x102] sm:$0xff] }
 0x2ac   : > { %5825 = vmatprep.subr.bf16.mxu1 %v10196_v21  ;;  %v5299_v21 = vld [vmem:[#allocation2 + $0x10a] sm:$0xff] }
 0x2ad   : > { %v5316_v13 = vpack.c.bf16 %v5299_v21, %v5298_v30  ;;  %v10277_v30 = vld [vmem:[%s14169_s4 + $0x2d4] ss:$8 sps:$4 sm:$0xff]   ;;  %v10275_v21 = vld [vmem:[%s14169_s4 + $0x2d0] ss:$8 sps:$4 sm:$0xff]  }
 0x2ae   : > { %5468 = vmatmul.mubr.bf16.gmra.mrb[24].mxu1 %v12673_v18  ;;  %v10212_v18 = vld [vmem:[%s14169_s4 + $0x210] ss:$8 sps:$4 sm:$0xff]  }
 0x2af   : > { %5477 = vmatprep.mubr.bf16.mxu1 %v14415_v19  ;;  %5826 = vmatpush1.bf16.msra.mxu1 %v10194_v17  ;;  %v2474_v17 = vld [vmem:[#allocation2 + $0x93] sm:$0xff] }
 0x2b0   : > { %2362 = vmatmul.mubr.bf16.gmra.mrb[92].mxu0 %v12758_v7  ;;  %5827 = vmatprep.subr.bf16.mxu1 %v10199_v8  ;;  %v12886_v8 = vpack.c.bf16 %v2475_v4, %v2474_v17  ;;  %v10283_v4 = vld [vmem:[%s14169_s4 + $0x2e4] ss:$8 sps:$4 sm:$0xff]  }
 0x2b1   : > { %2371 = vmatprep.mubr.bf16.mxu0 %v14415_v19  ;;  %v2864_v17 = vld [vmem:[#allocation2 + $0x40] sm:$0xff] }
 0x2b3   : > { %5828 = vmatpush1.bf16.msra.mxu1 %v10197_v55  ;;  %v2476_v55 = vld [vmem:[#allocation2 + $0xa3] sm:$0xff] }
 0x2b4   : > { %5829 = vmatprep.subr.bf16.mxu1 %v10202_v36  ;;  %v2477_v36 = vld [vmem:[#allocation2 + $0xab] sm:$0xff] }
 0x2b5   : > { %v12891_v32 = vpack.c.bf16 %v2477_v36, %v2476_v55  ;;  %v10284_v55 = vld [vmem:[%s14169_s4 + $0x2f0] ss:$8 sps:$4 sm:$0xff]  }
 0x2b6   : > { %5478 = vmatmul.mubr.bf16.gmra.mrb[28].mxu1 %v12679_v63  ;;  %v2458_v63 = vld [vmem:[#allocation2 + $0x13] sm:$0xff] }
 0x2b7   : > { %5487 = vmatprep.mubr.bf16.mxu1 %v14415_v19  ;;  %5830 = vmatpush1.bf16.msra.mxu1 %v10200_v62  ;;  %v2489_v59 = vpack.c.bf16 %v2459_v48, %v2458_v63  ;;  %v10206_v62 = vld [vmem:[%s14169_s4 + $0x600] ss:$8 sps:$4 sm:$0xff]   ;;  %v2867_v36 = vld [vmem:[#allocation2 + $0x58] sm:$0xff] }
 0x2b8   : > { %2372 = vmatmul.mubr.bf16.gmra.mrb[96].mxu0 %v12776_v50  ;;  %5831 = vmatprep.subr.bf16.mxu1 %v10205_v9  ;;  %v2479_v9 = vld [vmem:[#allocation2 + $0xbb] sm:$0xff] }
 0x2b9   : > { %2381 = vmatprep.mubr.bf16.mxu0 %v14415_v19  ;;  %v2483_v48 = vld [vmem:[#allocation2 + $0xdb] sm:$0xff] }
 0x2ba   : > { %v10242_v63 = vld [vmem:[%s14169_s4 + $0x640] ss:$8 sps:$4 sm:$0xff]  }
 0x2bb   : > { %5832 = vmatpush1.bf16.msra.mxu1 %v10203_v61  ;;  %v2478_v61 = vld [vmem:[#allocation2 + $0xb3] sm:$0xff] }
 0x2bc   : > { %6219 = vmatprep.subr.bf16.mxu1 %v10208_v43  ;;  %v12903_v43 = vpack.c.bf16 %v2479_v9, %v2478_v61  ;;  %v2868_v9 = vld [vmem:[#allocation2 + $0x60] sm:$0xff]  ;;  %v2871_v61 = vld [vmem:[#allocation2 + $0x78] sm:$0xff] }
 0x2be   : > { %5488 = vmatmul.mubr.bf16.gmra.mrb[32].mxu1 %v12685_v14  ;;  %v10223_v14 = vld [vmem:[%s14169_s4 + $0x234] ss:$8 sps:$4 sm:$0xff]  }
 0x2bf   : > { %5497 = vmatprep.mubr.bf16.mxu1 %v14415_v19 }
 0x2c0   : > { %2382 = vmatmul.mubr.bf16.gmra.mrb[100].mxu0 %v12788_v60 }
 0x2c1   : > { %2633 = vmatprep.mubr.bf16.mxu0 %v14415_v19 }
 0x2c6   : > { %5498 = vmatmul.mubr.bf16.gmra.mrb[36].mxu1 %v12691_v6  ;;  %v2460_v6 = vld [vmem:[#allocation2 + $0x23] sm:$0xff] }
 0x2c7   : > { %5507 = vmatprep.mubr.bf16.mxu1 %v14415_v19 }
 0x2c8   : > { %2634 = vmatmul.mubr.bf16.vlgmr.msra.gmra.mrb[40].mxu0 %v2488_v52 }
 0x2c9   : > { %2643 = vmatprep.mubr.bf16.mxu0 %v14415_v19  ;;  %3004 = vmatpush1.bf16.msra.mxu0 %v10209_v15  ;;  %v10241_v15 = vld [vmem:[%s14169_s4 + $0x634] ss:$8 sps:$4 sm:$0xff]  }
 0x2ca   : > { %3005 = vmatprep.subr.bf16.mxu0 %v10214_v29  ;;  %v10239_v29 = vld [vmem:[%s14169_s4 + $0x630] ss:$8 sps:$4 sm:$0xff]  }
 0x2cd   : > { %3006 = vmatpush1.bf16.msra.mxu0 %v10212_v18  ;;  %v10244_v18 = vld [vmem:[%s14169_s4 + $0x644] ss:$8 sps:$4 sm:$0xff]  }
 0x2ce   : > { %5508 = vmatmul.mubr.bf16.gmra.mrb[40].mxu1 %v12697_v22  ;;  %3007 = vmatprep.subr.bf16.mxu0 %v10220_v25  ;;  %v12827_v22 = vpack.c.bf16 %v2461_v44, %v2460_v6  ;;  %v10259_v25 = vld [vmem:[%s14169_s4 + $0x284] ss:$8 sps:$4 sm:$0xff]  }
 0x2cf   : > { %5517 = vmatprep.mubr.bf16.mxu1 %v14415_v19  ;;  %v2484_v6 = vld [vmem:[#allocation2 + $0xe3] sm:$0xff]  ;;  %v2485_v44 = vld [vmem:[#allocation2 + $0xeb] sm:$0xff] }
 0x2d0   : > { %2644 = vmatmul.mubr.bf16.gmra.mrb[44].mxu0 %v2489_v59  ;;  %v2482_v59 = vld [vmem:[#allocation2 + $0xd3] sm:$0xff] }
 0x2d1   : > { %2653 = vmatprep.mubr.bf16.mxu0 %v14415_v19  ;;  %3008 = vmatpush1.bf16.msra.mxu0 %v10218_v20  ;;  %v10247_v20 = vld [vmem:[%s14169_s4 + $0x654] ss:$8 sps:$4 sm:$0xff]  }
 0x2d2   : > { %3009 = vmatprep.subr.bf16.mxu0 %v10223_v14  ;;  %v12942_v14 = vpack.c.bf16 %v2483_v48, %v2482_v59  ;;  %v5703_v59 = vld [vmem:[#allocation2 + $0x11b] sm:$0xff] }
 0x2d5   : > { %3010 = vmatpush1.bf16.msra.mxu0 %v10221_v16  ;;  %v10245_v16 = vld [vmem:[%s14169_s4 + $0x650] ss:$8 sps:$4 sm:$0xff]  }
 0x2d6   : > { %5518 = vmatmul.mubr.bf16.gmra.mrb[44].mxu1 %v12702_v12  ;;  %3011 = vmatprep.subr.bf16.mxu0 %v10226_v47  ;;  %v10233_v12 = vld [vmem:[%s14169_s4 + $0x260] ss:$8 sps:$4 sm:$0xff]   ;;  %v10250_v47 = vld [vmem:[%s14169_s4 + $0x664] ss:$8 sps:$4 sm:$0xff]  }
 0x2d7   : > { %5527 = vmatprep.mubr.bf16.mxu1 %v14415_v19 }
 0x2d8   : > { %2654 = vmatmul.mubr.bf16.gmra.mrb[48].mxu0 %v12827_v22 }
 0x2d9   : > { %2663 = vmatprep.mubr.bf16.mxu0 %v14415_v19  ;;  %3012 = vmatpush1.bf16.msra.mxu0 %v10224_v42  ;;  %v10248_v42 = vld [vmem:[%s14169_s4 + $0x660] ss:$8 sps:$4 sm:$0xff]  }
 0x2da   : > { %3013 = vmatprep.subr.bf16.mxu0 %v10229_v11  ;;  %v12960_v11 = vpack.c.bf16 %v2485_v44, %v2484_v6  ;;  %v2878_v6 = vld [vmem:[#allocation2 + $0xb0] sm:$0xff] }
 0x2dd   : > { %3014 = vmatpush1.bf16.msra.mxu0 %v10227_v58  ;;  %v10251_v58 = vld [vmem:[%s14169_s4 + $0x670] ss:$8 sps:$4 sm:$0xff]  }
 0x2de   : > { %5528 = vmatmul.mubr.bf16.gmra.mrb[48].mxu1 %v12707_v38  ;;  %3015 = vmatprep.subr.bf16.mxu0 %v10235_v37  ;;  %v12857_v38 = vpack.c.bf16 %v2465_v5, %v2464_v40  ;;  %v10256_v37 = vld [vmem:[%s14169_s4 + $0x684] ss:$8 sps:$4 sm:$0xff]   ;;  %v10262_v5 = vld [vmem:[%s14169_s4 + $0x294] ss:$8 sps:$4 sm:$0xff]  }
 0x2df   : > { %5537 = vmatprep.mubr.bf16.mxu1 %v14415_v19 }
 0x2e0   : > { %2664 = vmatmul.mubr.bf16.gmra.mrb[52].mxu0 %v12845_v51 }
 0x2e1   : > { %2673 = vmatprep.mubr.bf16.mxu0 %v14415_v19  ;;  %3016 = vmatpush1.bf16.msra.mxu0 %v10233_v12  ;;  %v12972_v12 = vpack.c.bf16 %v2487_v31, %v2486_v27  ;;  %v10263_v31 = vld [vmem:[%s14169_s4 + $0x690] ss:$8 sps:$4 sm:$0xff]   ;;  %v10280_v27 = vld [vmem:[%s14169_s4 + $0x6a4] ss:$8 sps:$4 sm:$0xff]  }
 0x2e2   : > { %3017 = vmatprep.subr.bf16.mxu0 %v10238_v53  ;;  %v2858_v53 = vld [vmem:[#allocation2 + $0x10] sm:$0xff] }
 0x2e5   : > { %3018 = vmatpush1.bf16.msra.mxu0 %v10236_v33  ;;  %v10257_v33 = vld [vmem:[%s14169_s4 + $0x280] ss:$8 sps:$4 sm:$0xff]  }
 0x2e6   : > { %5538 = vmatmul.mubr.bf16.gmra.mrb[52].mxu1 %v12719_v57  ;;  %v2469_v57 = vld [vmem:[#allocation2 + $0x6b] sm:$0xff]  ;;  %3405 = vmatprep.subr.bf16.mxu0 %v10259_v25 }
 0x2e7   : > { %5547 = vmatprep.mubr.bf16.mxu1 %v14415_v19  ;;  %v12869_v3 = vpack.c.bf16 %v2469_v57, %v2468_v41  ;;  %v10266_v41 = vld [vmem:[%s14169_s4 + $0x2a0] ss:$8 sps:$4 sm:$0xff]  }
 0x2e8   : > { %2674 = vmatmul.mubr.bf16.gmra.mrb[56].mxu0 %v12857_v38  ;;  %v2877_v25 = vld [vmem:[#allocation2 + $0xa8] sm:$0xff] }
 0x2e9   : > { %2683 = vmatprep.mubr.bf16.mxu0 %v14415_v19 }
 0x2ee   : > { %5548 = vmatmul.mubr.bf16.gmra.mrb[56].mxu1 %v12737_v54  ;;  %v12881_v54 = vpack.c.bf16 %v2473_v34, %v2472_v35  ;;  %v2862_v35 = vld [vmem:[#allocation2 + $0x30] sm:$0xff]  ;;  %v10272_v34 = vld [vmem:[%s14169_s4 + $0x2c0] ss:$8 sps:$4 sm:$0xff]  }
 0x2ef   : > { %5557 = vmatprep.mubr.bf16.mxu1 %v14415_v19 }
 0x2f0   : > { %2684 = vmatmul.mubr.bf16.gmra.mrb[60].mxu0 %v12863_v2 }
 0x2f1   : > { %2693 = vmatprep.mubr.bf16.mxu0 %v14415_v19 }
 0x2f6   : > { %5558 = vmatmul.mubr.bf16.gmra.mrb[60].mxu1 %v12758_v7  ;;  %v5300_v7 = vld [vmem:[#allocation2 + $0x112] sm:$0xff] }
 0x2f7   : > { %5567 = vmatprep.mubr.bf16.mxu1 %v14415_v19  ;;  %v5317_v23 = vpack.c.bf16 %v5301_v49, %v5300_v7  ;;  %v10286_v7 = vld [vmem:[%s14169_s4 + $0x2f4] ss:$8 sps:$4 sm:$0xff]  }
 0x2f8   : > { %2694 = vmatmul.mubr.bf16.gmra.mrb[64].mxu0 %v12869_v3 }
 0x2f9   : > { %2703 = vmatprep.mubr.bf16.mxu0 %v14415_v19 }
 0x2fe   : > { %5568 = vmatmul.mubr.bf16.gmra.mrb[0].mxu1 %v12776_v50  ;;  %v10217_v50 = vld [vmem:[%s14169_s4 + $0x614] ss:$8 sps:$4 sm:$0xff]  }
 0x2ff   : > { %5577 = vmatprep.mubr.bf16.mxu1 %v14415_v19 }
 0x300   : > { %2704 = vmatmul.mubr.bf16.gmra.mrb[68].mxu0 %v12875_v24 }
 0x301   : > { %2713 = vmatprep.mubr.bf16.mxu0 %v14415_v19 }
 0x306   : > { %5578 = vmatmul.mubr.bf16.gmra.mrb[4].mxu1 %v12788_v60  ;;  %v2480_v60 = vld [vmem:[#allocation2 + $0xc3] sm:$0xff] }
 0x307   : > { %5587 = vmatprep.mubr.bf16.mxu1 %v14415_v19  ;;  %v12921_v52 = vpack.c.bf16 %v2481_v10, %v2480_v60  ;;  %v2872_v60 = vld [vmem:[#allocation2 + $0x80] sm:$0xff] }
 0x308   : > { %2714 = vmatmul.mubr.bf16.gmra.mrb[72].mxu0 %v12881_v54 }
 0x309   : > { %2723 = vmatprep.mubr.bf16.mxu0 %v14415_v19 }
 0x30e   : > { %5588 = vmatmul.mubr.bf16.gmra.mrb[8].mxu1 %v5316_v13  ;;  %v2865_v13 = vld [vmem:[#allocation2 + $0x48] sm:$0xff] }
 0x30f   : > { %5597 = vmatprep.mubr.bf16.mxu1 %v14415_v19  ;;  %v13029_v49 = vpack.c.bf16 %v2865_v13, %v2864_v17  ;;  %v2888_v13 = vld [vmem:[#allocation2 + $0x100] sm:$0xff]  ;;  %v2889_v17 = vld [vmem:[#allocation2 + $0x108] sm:$0xff] }
 0x310   : > { %2724 = vmatmul.mubr.bf16.gmra.mrb[76].mxu0 %v12886_v8 }
 0x311   : > { %2733 = vmatprep.mubr.bf16.mxu0 %v14415_v19 }
 0x316   : > { %5598 = vmatmul.mubr.bf16.gmra.mrb[12].mxu1 %v5317_v23  ;;  %v2866_v23 = vld [vmem:[#allocation2 + $0x50] sm:$0xff] }
 0x317   : > { %5849 = vmatprep.mubr.bf16.mxu1 %v14415_v19 }
 0x318   : > { %2734 = vmatmul.mubr.bf16.gmra.mrb[80].mxu0 %v12891_v32 }
 0x319   : > { %2743 = vmatprep.mubr.bf16.mxu0 %v14415_v19 }
 0x31e   : > { %5850 = vmatmul.mubr.bf16.vlgmr.msra.gmra.mrb[16].mxu1 %v12827_v22  ;;  %v10253_v22 = vld [vmem:[%s14169_s4 + $0x674] ss:$8 sps:$4 sm:$0xff]  }
 0x31f   : > { %6220 = vmatpush1.bf16.msra.mxu1 %v10206_v62  ;;  %5859 = vmatprep.mubr.bf16.mxu1 %v14415_v19  ;;  %v2869_v62 = vld [vmem:[#allocation2 + $0x68] sm:$0xff] }
 0x320   : > { %2744 = vmatmul.mubr.bf16.gmra.mrb[84].mxu0 %v12903_v43  ;;  %6221 = vmatprep.subr.bf16.mxu1 %v10217_v50  ;;  %v13047_v50 = vpack.c.bf16 %v2869_v62, %v2868_v9  ;;  %v10316_v62 = vld [vmem:[%s14169_s4 + $0x324] ss:$8 sps:$4 sm:$0xff]  }
 0x321   : > { %2753 = vmatprep.mubr.bf16.mxu0 %v14415_v19  ;;  %v3262_v9 = vld [vmem:[#allocation2 + $0x21] sm:$0xff] }
 0x323   : > { %6222 = vmatpush1.bf16.msra.mxu1 %v10215_v28 }
 0x324   : > { %6223 = vmatprep.subr.bf16.mxu1 %v10232_v45  ;;  %v2873_v45 = vld [vmem:[#allocation2 + $0x88] sm:$0xff] }
 0x325   : > { %v13059_v10 = vpack.c.bf16 %v2873_v45, %v2872_v60  ;;  %v10317_v45 = vld [vmem:[%s14169_s4 + $0x330] ss:$8 sps:$4 sm:$0xff]   ;;  %v10322_v60 = vld [vmem:[%s14169_s4 + $0x344] ss:$8 sps:$4 sm:$0xff]  }
 0x326   : > { %5860 = vmatmul.mubr.bf16.gmra.mrb[20].mxu1 %v12845_v51  ;;  %v2859_v51 = vld [vmem:[#allocation2 + $0x18] sm:$0xff] }
 0x327   : > { %5869 = vmatprep.mubr.bf16.mxu1 %v14415_v19  ;;  %6224 = vmatpush1.bf16.msra.mxu1 %v10230_v1  ;;  %v2890_v40 = vpack.c.bf16 %v2859_v51, %v2858_v53  ;;  %v2875_v1 = vld [vmem:[#allocation2 + $0x98] sm:$0xff]  ;;  %v10278_v51 = vld [vmem:[%s14169_s4 + $0x6a0] ss:$8 sps:$4 sm:$0xff]  }
 0x328   : > { %2754 = vmatmul.mubr.bf16.gmra.mrb[88].mxu0 %v12921_v52  ;;  %6225 = vmatprep.subr.bf16.mxu1 %v10241_v15  ;;  %v2874_v15 = vld [vmem:[#allocation2 + $0x90] sm:$0xff] }
 0x329   : > { %2763 = vmatprep.mubr.bf16.mxu0 %v14415_v19  ;;  %v10289_v53 = vld [vmem:[%s14169_s4 + $0x6b4] ss:$8 sps:$4 sm:$0xff]  }
 0x32b   : > { %6226 = vmatpush1.bf16.msra.mxu1 %v10239_v29  ;;  %v5700_v29 = vld [vmem:[#allocation2 + $0x103] sm:$0xff] }
 0x32c   : > { %6227 = vmatprep.subr.bf16.mxu1 %v10244_v18  ;;  %v5701_v18 = vld [vmem:[#allocation2 + $0x10b] sm:$0xff] }
 0x32d   : > { %v5718_v48 = vpack.c.bf16 %v5701_v18, %v5700_v29  ;;  %v10325_v29 = vld [vmem:[%s14169_s4 + $0x354] ss:$8 sps:$4 sm:$0xff]   ;;  %v10323_v18 = vld [vmem:[%s14169_s4 + $0x350] ss:$8 sps:$4 sm:$0xff]  }
 0x32e   : > { %5870 = vmatmul.mubr.bf16.gmra.mrb[24].mxu1 %v12857_v38  ;;  %v10260_v38 = vld [vmem:[%s14169_s4 + $0x290] ss:$8 sps:$4 sm:$0xff]  }
 0x32f   : > { %5879 = vmatprep.mubr.bf16.mxu1 %v14415_v19  ;;  %6228 = vmatpush1.bf16.msra.mxu1 %v10242_v63  ;;  %v2876_v63 = vld [vmem:[#allocation2 + $0xa0] sm:$0xff] }
 0x330   : > { %2764 = vmatmul.mubr.bf16.gmra.mrb[92].mxu0 %v12942_v14  ;;  %6229 = vmatprep.subr.bf16.mxu1 %v10247_v20  ;;  %v13070_v20 = vpack.c.bf16 %v2877_v25, %v2876_v63  ;;  %v10331_v25 = vld [vmem:[%s14169_s4 + $0x364] ss:$8 sps:$4 sm:$0xff]  }
 0x331   : > { %2773 = vmatprep.mubr.bf16.mxu0 %v14415_v19  ;;  %v3267_v63 = vld [vmem:[#allocation2 + $0x49] sm:$0xff] }
 0x333   : > { %6230 = vmatpush1.bf16.msra.mxu1 %v10245_v16  ;;  %v2879_v16 = vld [vmem:[#allocation2 + $0xb8] sm:$0xff] }
 0x334   : > { %6231 = vmatprep.subr.bf16.mxu1 %v10250_v47  ;;  %v13075_v44 = vpack.c.bf16 %v2879_v16, %v2878_v6  ;;  %v10332_v16 = vld [vmem:[%s14169_s4 + $0x370] ss:$8 sps:$4 sm:$0xff]  }
 0x335   : > { %v3268_v6 = vld [vmem:[#allocation2 + $0x51] sm:$0xff] }
 0x336   : > { %5880 = vmatmul.mubr.bf16.gmra.mrb[28].mxu1 %v12863_v2  ;;  %v2860_v2 = vld [vmem:[#allocation2 + $0x20] sm:$0xff] }
 0x337   : > { %5889 = vmatprep.mubr.bf16.mxu1 %v14415_v19  ;;  %6232 = vmatpush1.bf16.msra.mxu1 %v10248_v42  ;;  %v2891_v57 = vpack.c.bf16 %v2861_v39, %v2860_v2  ;;  %v10254_v42 = vld [vmem:[%s14169_s4 + $0x680] ss:$8 sps:$4 sm:$0xff]  }
 0x338   : > { %2774 = vmatmul.mubr.bf16.gmra.mrb[96].mxu0 %v12960_v11  ;;  %6233 = vmatprep.subr.bf16.mxu1 %v10253_v22  ;;  %v2881_v22 = vld [vmem:[#allocation2 + $0xc8] sm:$0xff] }
 0x339   : > { %2783 = vmatprep.mubr.bf16.mxu0 %v14415_v19  ;;  %v2885_v39 = vld [vmem:[#allocation2 + $0xe8] sm:$0xff] }
 0x33a   : > { %v10290_v2 = vld [vmem:[%s14169_s4 + $0x6c0] ss:$8 sps:$4 sm:$0xff]  }
 0x33b   : > { %6234 = vmatpush1.bf16.msra.mxu1 %v10251_v58  ;;  %v2880_v58 = vld [vmem:[#allocation2 + $0xc0] sm:$0xff] }
 0x33c   : > { %6621 = vmatprep.subr.bf16.mxu1 %v10256_v37  ;;  %v13087_v37 = vpack.c.bf16 %v2881_v22, %v2880_v58  ;;  %v3270_v22 = vld [vmem:[#allocation2 + $0x61] sm:$0xff] }
 0x33e   : > { %5890 = vmatmul.mubr.bf16.gmra.mrb[32].mxu1 %v12869_v3  ;;  %v10271_v3 = vld [vmem:[%s14169_s4 + $0x2b4] ss:$8 sps:$4 sm:$0xff]  }
 0x33f   : > { %5899 = vmatprep.mubr.bf16.mxu1 %v14415_v19 }
 0x340   : > { %2784 = vmatmul.mubr.bf16.gmra.mrb[100].mxu0 %v12972_v12 }
 0x341   : > { %3035 = vmatprep.mubr.bf16.mxu0 %v14415_v19 }
 0x346   : > { %5900 = vmatmul.mubr.bf16.gmra.mrb[36].mxu1 %v12875_v24  ;;  %v2863_v24 = vld [vmem:[#allocation2 + $0x38] sm:$0xff] }
 0x347   : > { %5909 = vmatprep.mubr.bf16.mxu1 %v14415_v19 }
 0x348   : > { %3036 = vmatmul.mubr.bf16.vlgmr.msra.gmra.mrb[40].mxu0 %v2890_v40 }
 0x349   : > { %3045 = vmatprep.mubr.bf16.mxu0 %v14415_v19  ;;  %3406 = vmatpush1.bf16.msra.mxu0 %v10257_v33  ;;  %v2882_v33 = vld [vmem:[#allocation2 + $0xd0] sm:$0xff] }
 0x34a   : > { %3407 = vmatprep.subr.bf16.mxu0 %v10262_v5  ;;  %v10287_v5 = vld [vmem:[%s14169_s4 + $0x6b0] ss:$8 sps:$4 sm:$0xff]  }
 0x34d   : > { %3408 = vmatpush1.bf16.msra.mxu0 %v10260_v38  ;;  %v10292_v38 = vld [vmem:[%s14169_s4 + $0x6c4] ss:$8 sps:$4 sm:$0xff]  }
 0x34e   : > { %5910 = vmatmul.mubr.bf16.gmra.mrb[40].mxu1 %v12881_v54  ;;  %3409 = vmatprep.subr.bf16.mxu0 %v10268_v46  ;;  %v13011_v54 = vpack.c.bf16 %v2863_v24, %v2862_v35  ;;  %v10307_v46 = vld [vmem:[%s14169_s4 + $0x304] ss:$8 sps:$4 sm:$0xff]   ;;  %v2887_v24 = vld [vmem:[#allocation2 + $0xf8] sm:$0xff]  ;;  %v10296_v35 = vld [vmem:[%s14169_s4 + $0x6e0] ss:$8 sps:$4 sm:$0xff]  }
 0x34f   : > { %5919 = vmatprep.mubr.bf16.mxu1 %v14415_v19 }
 0x350   : > { %3046 = vmatmul.mubr.bf16.gmra.mrb[44].mxu0 %v2891_v57  ;;  %v2884_v57 = vld [vmem:[#allocation2 + $0xe0] sm:$0xff] }
 0x351   : > { %3055 = vmatprep.mubr.bf16.mxu0 %v14415_v19  ;;  %3410 = vmatpush1.bf16.msra.mxu0 %v10266_v41  ;;  %v10295_v41 = vld [vmem:[%s14169_s4 + $0x6d4] ss:$8 sps:$4 sm:$0xff]  }
 0x352   : > { %3411 = vmatprep.subr.bf16.mxu0 %v10271_v3  ;;  %v13126_v3 = vpack.c.bf16 %v2885_v39, %v2884_v57  ;;  %v3278_v39 = vld [vmem:[#allocation2 + $0xa1] sm:$0xff] }
 0x355   : > { %3412 = vmatpush1.bf16.msra.mxu0 %v10269_v26  ;;  %v10293_v26 = vld [vmem:[%s14169_s4 + $0x6d0] ss:$8 sps:$4 sm:$0xff]  }
 0x356   : > { %5920 = vmatmul.mubr.bf16.gmra.mrb[44].mxu1 %v12886_v8  ;;  %3413 = vmatprep.subr.bf16.mxu0 %v10274_v0  ;;  %v10281_v8 = vld [vmem:[%s14169_s4 + $0x2e0] ss:$8 sps:$4 sm:$0xff]   ;;  %v10298_v0 = vld [vmem:[%s14169_s4 + $0x6e4] ss:$8 sps:$4 sm:$0xff]  }
 0x357   : > { %5929 = vmatprep.mubr.bf16.mxu1 %v14415_v19 }
 0x358   : > { %3056 = vmatmul.mubr.bf16.gmra.mrb[48].mxu0 %v13011_v54 }
 0x359   : > { %3065 = vmatprep.mubr.bf16.mxu0 %v14415_v19  ;;  %3414 = vmatpush1.bf16.msra.mxu0 %v10272_v34  ;;  %v10301_v34 = vld [vmem:[%s14169_s4 + $0x6f4] ss:$8 sps:$4 sm:$0xff]  }
 0x35a   : > { %3415 = vmatprep.subr.bf16.mxu0 %v10277_v30 }
 0x35d   : > { %3416 = vmatpush1.bf16.msra.mxu0 %v10275_v21  ;;  %v10299_v21 = vld [vmem:[%s14169_s4 + $0x6f0] ss:$8 sps:$4 sm:$0xff]  }
 0x35e   : > { %5930 = vmatmul.mubr.bf16.gmra.mrb[48].mxu1 %v12891_v32  ;;  %3417 = vmatprep.subr.bf16.mxu0 %v10283_v4  ;;  %v13041_v32 = vpack.c.bf16 %v2867_v36, %v2866_v23  ;;  %v10304_v4 = vld [vmem:[%s14169_s4 + $0x704] ss:$8 sps:$4 sm:$0xff]   ;;  %v10310_v23 = vld [vmem:[%s14169_s4 + $0x314] ss:$8 sps:$4 sm:$0xff]  }
 0x35f   : > { %5939 = vmatprep.mubr.bf16.mxu1 %v14415_v19 }
 0x360   : > { %3066 = vmatmul.mubr.bf16.gmra.mrb[52].mxu0 %v13029_v49 }
 0x361   : > { %3075 = vmatprep.mubr.bf16.mxu0 %v14415_v19  ;;  %3418 = vmatpush1.bf16.msra.mxu0 %v10281_v8  ;;  %v13156_v8 = vpack.c.bf16 %v2889_v17, %v2888_v13  ;;  %v10311_v17 = vld [vmem:[%s14169_s4 + $0x710] ss:$8 sps:$4 sm:$0xff]  }
 0x362   : > { %3419 = vmatprep.subr.bf16.mxu0 %v10286_v7  ;;  %v3260_v7 = vld [vmem:[#allocation2 + $0x11] sm:$0xff] }
 0x365   : > { %3420 = vmatpush1.bf16.msra.mxu0 %v10284_v55  ;;  %v10305_v55 = vld [vmem:[%s14169_s4 + $0x300] ss:$8 sps:$4 sm:$0xff]  }
 0x366   : > { %5940 = vmatmul.mubr.bf16.gmra.mrb[52].mxu1 %v12903_v43  ;;  %v2870_v43 = vld [vmem:[#allocation2 + $0x70] sm:$0xff]  ;;  %3807 = vmatprep.subr.bf16.mxu0 %v10307_v46  ;;  %v6103_v46 = vld [vmem:[#allocation2 + $0x118] sm:$0xff] }
 0x367   : > { %5949 = vmatprep.mubr.bf16.mxu1 %v14415_v19  ;;  %v13053_v28 = vpack.c.bf16 %v2871_v61, %v2870_v43  ;;  %v10314_v61 = vld [vmem:[%s14169_s4 + $0x320] ss:$8 sps:$4 sm:$0xff]  }
 0x368   : > { %3076 = vmatmul.mubr.bf16.gmra.mrb[56].mxu0 %v13041_v32 }
 0x369   : > { %3085 = vmatprep.mubr.bf16.mxu0 %v14415_v19 }
 0x36e   : > { %5950 = vmatmul.mubr.bf16.gmra.mrb[56].mxu1 %v12921_v52  ;;  %v13065_v52 = vpack.c.bf16 %v2875_v1, %v2874_v15  ;;  %v3264_v1 = vld [vmem:[#allocation2 + $0x31] sm:$0xff]  ;;  %v10320_v15 = vld [vmem:[%s14169_s4 + $0x340] ss:$8 sps:$4 sm:$0xff]  }
 0x36f   : > { %5959 = vmatprep.mubr.bf16.mxu1 %v14415_v19 }
 0x370   : > { %3086 = vmatmul.mubr.bf16.gmra.mrb[60].mxu0 %v13047_v50 }
 0x371   : > { %3095 = vmatprep.mubr.bf16.mxu0 %v14415_v19 }
 0x376   : > { %5960 = vmatmul.mubr.bf16.gmra.mrb[60].mxu1 %v12942_v14  ;;  %v5702_v14 = vld [vmem:[#allocation2 + $0x113] sm:$0xff] }
 0x377   : > { %5969 = vmatprep.mubr.bf16.mxu1 %v14415_v19  ;;  %v5719_v47 = vpack.c.bf16 %v5703_v59, %v5702_v14  ;;  %v10334_v14 = vld [vmem:[%s14169_s4 + $0x374] ss:$8 sps:$4 sm:$0xff]  }
 0x378   : > { %3096 = vmatmul.mubr.bf16.gmra.mrb[64].mxu0 %v13053_v28 }
 0x379   : > { %3105 = vmatprep.mubr.bf16.mxu0 %v14415_v19 }
 0x37e   : > { %5970 = vmatmul.mubr.bf16.gmra.mrb[0].mxu1 %v12960_v11  ;;  %v10265_v11 = vld [vmem:[%s14169_s4 + $0x694] ss:$8 sps:$4 sm:$0xff]  }
 0x37f   : > { %5979 = vmatprep.mubr.bf16.mxu1 %v14415_v19 }
 0x380   : > { %3106 = vmatmul.mubr.bf16.gmra.mrb[68].mxu0 %v13059_v10 }
 0x381   : > { %3115 = vmatprep.mubr.bf16.mxu0 %v14415_v19 }
 0x386   : > { %5980 = vmatmul.mubr.bf16.gmra.mrb[4].mxu1 %v12972_v12  ;;  %v2883_v12 = vld [vmem:[#allocation2 + $0xd8] sm:$0xff] }
 0x387   : > { %5989 = vmatprep.mubr.bf16.mxu1 %v14415_v19  ;;  %v13105_v40 = vpack.c.bf16 %v2883_v12, %v2882_v33  ;;  %v3274_v12 = vld [vmem:[#allocation2 + $0x81] sm:$0xff]  ;;  %v3277_v33 = vld [vmem:[#allocation2 + $0x99] sm:$0xff] }
 0x388   : > { %3116 = vmatmul.mubr.bf16.gmra.mrb[72].mxu0 %v13065_v52 }
 0x389   : > { %3125 = vmatprep.mubr.bf16.mxu0 %v14415_v19 }
 0x38e   : > { %5990 = vmatmul.mubr.bf16.gmra.mrb[8].mxu1 %v5718_v48  ;;  %v3266_v48 = vld [vmem:[#allocation2 + $0x41] sm:$0xff] }
 0x38f   : > { %5999 = vmatprep.mubr.bf16.mxu1 %v14415_v19  ;;  %v13213_v59 = vpack.c.bf16 %v3267_v63, %v3266_v48  ;;  %v3290_v48 = vld [vmem:[#allocation2 + $0x101] sm:$0xff]  ;;  %v3291_v63 = vld [vmem:[#allocation2 + $0x109] sm:$0xff] }
 0x390   : > { %3126 = vmatmul.mubr.bf16.gmra.mrb[76].mxu0 %v13070_v20 }
 0x391   : > { %3135 = vmatprep.mubr.bf16.mxu0 %v14415_v19 }
 0x396   : > { %6000 = vmatmul.mubr.bf16.gmra.mrb[12].mxu1 %v5719_v47  ;;  %v3269_v47 = vld [vmem:[#allocation2 + $0x59] sm:$0xff] }
 0x397   : > { %6251 = vmatprep.mubr.bf16.mxu1 %v14415_v19 }
 0x398   : > { %3136 = vmatmul.mubr.bf16.gmra.mrb[80].mxu0 %v13075_v44 }
 0x399   : > { %3145 = vmatprep.mubr.bf16.mxu0 %v14415_v19 }
 0x39e   : > { %6252 = vmatmul.mubr.bf16.vlgmr.msra.gmra.mrb[16].mxu1 %v13011_v54  ;;  %v2886_v54 = vld [vmem:[#allocation2 + $0xf0] sm:$0xff] }
 0x39f   : > { %6622 = vmatpush1.bf16.msra.mxu1 %v10254_v42  ;;  %6261 = vmatprep.mubr.bf16.mxu1 %v14415_v19  ;;  %v13144_v30 = vpack.c.bf16 %v2887_v24, %v2886_v54  ;;  %v10380_v42 = vld [vmem:[%s14169_s4 + $0x384] ss:$8 sps:$4 sm:$0xff]   ;;  %v10302_v54 = vld [vmem:[%s14169_s4 + $0x700] ss:$8 sps:$4 sm:$0xff]  }
 0x3a0   : > { %3146 = vmatmul.mubr.bf16.gmra.mrb[84].mxu0 %v13087_v37  ;;  %6623 = vmatprep.subr.bf16.mxu1 %v10265_v11  ;;  %v3271_v11 = vld [vmem:[#allocation2 + $0x69] sm:$0xff] }
 0x3a1   : > { %3155 = vmatprep.mubr.bf16.mxu0 %v14415_v19  ;;  %v13234_v58 = vpack.c.bf16 %v3271_v11, %v3270_v22  ;;  %v10383_v22 = vld [vmem:[%s14169_s4 + $0x390] ss:$8 sps:$4 sm:$0xff]  }
 0x3a3   : > { %6624 = vmatpush1.bf16.msra.mxu1 %v10263_v31  ;;  %v3272_v31 = vld [vmem:[#allocation2 + $0x71] sm:$0xff] }
 0x3a4   : > { %6625 = vmatprep.subr.bf16.mxu1 %v10280_v27 }
 0x3a6   : > { %6262 = vmatmul.mubr.bf16.gmra.mrb[20].mxu1 %v13029_v49  ;;  %v3261_v49 = vld [vmem:[#allocation2 + $0x19] sm:$0xff] }
 0x3a7   : > { %6271 = vmatprep.mubr.bf16.mxu1 %v14415_v19  ;;  %6626 = vmatpush1.bf16.msra.mxu1 %v10278_v51  ;;  %v3292_v36 = vpack.c.bf16 %v3261_v49, %v3260_v7  ;;  %v3275_v51 = vld [vmem:[#allocation2 + $0x89] sm:$0xff]  ;;  %v3285_v49 = vld [vmem:[#allocation2 + $0xd9] sm:$0xff] }
 0x3a8   : > { %3156 = vmatmul.mubr.bf16.gmra.mrb[88].mxu0 %v13105_v40  ;;  %6627 = vmatprep.subr.bf16.mxu1 %v10289_v53  ;;  %v13246_v53 = vpack.c.bf16 %v3275_v51, %v3274_v12  ;;  %v10326_v7 = vld [vmem:[%s14169_s4 + $0x720] ss:$8 sps:$4 sm:$0xff]   ;;  %v3666_v12 = vld [vmem:[#allocation2 + $0x32] sm:$0xff] }
 0x3a9   : > { %3165 = vmatprep.mubr.bf16.mxu0 %v14415_v19  ;;  %v10387_v51 = vld [vmem:[%s14169_s4 + $0x3b0] ss:$8 sps:$4 sm:$0xff]  }
 0x3ab   : > { %6628 = vmatpush1.bf16.msra.mxu1 %v10287_v5 }
 0x3ac   : > { %6629 = vmatprep.subr.bf16.mxu1 %v10292_v38  ;;  %v6102_v38 = vld [vmem:[#allocation2 + $0x110] sm:$0xff] }
 0x3ae   : > { %6272 = vmatmul.mubr.bf16.gmra.mrb[24].mxu1 %v13041_v32  ;;  %v10308_v32 = vld [vmem:[%s14169_s4 + $0x310] ss:$8 sps:$4 sm:$0xff]  }
 0x3af   : > { %6281 = vmatprep.mubr.bf16.mxu1 %v14415_v19  ;;  %6630 = vmatpush1.bf16.msra.mxu1 %v10290_v2  ;;  %v3279_v2 = vld [vmem:[#allocation2 + $0xa9] sm:$0xff] }
 0x3b0   : > { %3166 = vmatmul.mubr.bf16.gmra.mrb[92].mxu0 %v13126_v3  ;;  %6631 = vmatprep.subr.bf16.mxu1 %v10295_v41  ;;  %v6120_v41 = vpack.c.bf16 %v6103_v46, %v6102_v38  ;;  %v13257_v57 = vpack.c.bf16 %v3279_v2, %v3278_v39  ;;  %v3668_v38 = vld [vmem:[#allocation2 + $0x42] sm:$0xff]  ;;  %v3669_v46 = vld [vmem:[#allocation2 + $0x4a] sm:$0xff] }
 0x3b1   : > { %3175 = vmatprep.mubr.bf16.mxu0 %v14415_v19  ;;  %v10391_v39 = vld [vmem:[%s14169_s4 + $0x3d0] ss:$8 sps:$4 sm:$0xff]   ;;  %v13391_v2 = vpack.c.bf16 %v3669_v46, %v3668_v38  ;;  %v3692_v38 = vld [vmem:[#allocation2 + $0x102] sm:$0xff] }
 0x3b2   : > { %v3693_v46 = vld [vmem:[#allocation2 + $0x10a] sm:$0xff] }
 0x3b3   : > { %6632 = vmatpush1.bf16.msra.mxu1 %v10293_v26  ;;  %v6105_v26 = vld [vmem:[#allocation2 + $0x128] sm:$0xff] }
 0x3b4   : > { %6633 = vmatprep.subr.bf16.mxu1 %v10298_v0  ;;  %v3281_v0 = vld [vmem:[#allocation2 + $0xb9] sm:$0xff] }
 0x3b6   : > { %6282 = vmatmul.mubr.bf16.gmra.mrb[28].mxu1 %v13047_v50  ;;  %v3263_v50 = vld [vmem:[#allocation2 + $0x29] sm:$0xff] }
 0x3b7   : > { %6291 = vmatprep.mubr.bf16.mxu1 %v14415_v19  ;;  %6634 = vmatpush1.bf16.msra.mxu1 %v10296_v35  ;;  %v3293_v43 = vpack.c.bf16 %v3263_v50, %v3262_v9  ;;  %v3280_v35 = vld [vmem:[#allocation2 + $0xb1] sm:$0xff]  ;;  %v3286_v9 = vld [vmem:[#allocation2 + $0xe1] sm:$0xff]  ;;  %v3287_v50 = vld [vmem:[#allocation2 + $0xe9] sm:$0xff] }
 0x3b8   : > { %3176 = vmatmul.mubr.bf16.gmra.mrb[96].mxu0 %v13144_v30  ;;  %6635 = vmatprep.subr.bf16.mxu1 %v10301_v34  ;;  %v13262_v34 = vpack.c.bf16 %v3281_v0, %v3280_v35  ;;  %v3670_v0 = vld [vmem:[#allocation2 + $0x52] sm:$0xff] }
 0x3b9   : > { %3185 = vmatprep.mubr.bf16.mxu0 %v14415_v19 }
 0x3bb   : > { %6636 = vmatpush1.bf16.msra.mxu1 %v10299_v21  ;;  %v3283_v21 = vld [vmem:[#allocation2 + $0xc9] sm:$0xff] }
 0x3bc   : > { %7023 = vmatprep.subr.bf16.mxu1 %v10304_v4  ;;  %v10313_v4 = vld [vmem:[%s14169_s4 + $0x714] ss:$8 sps:$4 sm:$0xff]  }
 0x3be   : > { %6292 = vmatmul.mubr.bf16.gmra.mrb[32].mxu1 %v13053_v28  ;;  %v10319_v28 = vld [vmem:[%s14169_s4 + $0x334] ss:$8 sps:$4 sm:$0xff]  }
 0x3bf   : > { %6301 = vmatprep.mubr.bf16.mxu1 %v14415_v19 }
 0x3c0   : > { %3186 = vmatmul.mubr.bf16.gmra.mrb[100].mxu0 %v13156_v8 }
 0x3c1   : > { %3437 = vmatprep.mubr.bf16.mxu0 %v14415_v19 }
 0x3c6   : > { %6302 = vmatmul.mubr.bf16.gmra.mrb[36].mxu1 %v13059_v10  ;;  %v3265_v10 = vld [vmem:[#allocation2 + $0x39] sm:$0xff] }
 0x3c7   : > { %6311 = vmatprep.mubr.bf16.mxu1 %v14415_v19 }
 0x3c8   : > { %3438 = vmatmul.mubr.bf16.vlgmr.msra.gmra.mrb[40].mxu0 %v3292_v36  ;;  %v3284_v36 = vld [vmem:[#allocation2 + $0xd1] sm:$0xff] }
 0x3c9   : > { %3447 = vmatprep.mubr.bf16.mxu0 %v14415_v19  ;;  %3808 = vmatpush1.bf16.msra.mxu0 %v10305_v55  ;;  %v10337_v55 = vld [vmem:[%s14169_s4 + $0x734] ss:$8 sps:$4 sm:$0xff]  }
 0x3ca   : > { %3809 = vmatprep.subr.bf16.mxu0 %v10310_v23  ;;  %v13292_v23 = vpack.c.bf16 %v3285_v49, %v3284_v36 }
 0x3cd   : > { %3810 = vmatpush1.bf16.msra.mxu0 %v10308_v32  ;;  %v10335_v32 = vld [vmem:[%s14169_s4 + $0x730] ss:$8 sps:$4 sm:$0xff]  }
 0x3ce   : > { %6312 = vmatmul.mubr.bf16.gmra.mrb[40].mxu1 %v13065_v52  ;;  %3811 = vmatprep.subr.bf16.mxu0 %v10316_v62  ;;  %v13195_v52 = vpack.c.bf16 %v3265_v10, %v3264_v1  ;;  %v10340_v62 = vld [vmem:[%s14169_s4 + $0x744] ss:$8 sps:$4 sm:$0xff]   ;;  %v3289_v10 = vld [vmem:[#allocation2 + $0xf9] sm:$0xff] }
 0x3cf   : > { %6321 = vmatprep.mubr.bf16.mxu1 %v14415_v19  ;;  %v10344_v1 = vld [vmem:[%s14169_s4 + $0x760] ss:$8 sps:$4 sm:$0xff]  }
 0x3d0   : > { %3448 = vmatmul.mubr.bf16.gmra.mrb[44].mxu0 %v3293_v43  ;;  %v10343_v43 = vld [vmem:[%s14169_s4 + $0x754] ss:$8 sps:$4 sm:$0xff]  }
 0x3d1   : > { %3457 = vmatprep.mubr.bf16.mxu0 %v14415_v19  ;;  %3812 = vmatpush1.bf16.msra.mxu0 %v10314_v61  ;;  %v10338_v61 = vld [vmem:[%s14169_s4 + $0x740] ss:$8 sps:$4 sm:$0xff]  }
 0x3d2   : > { %3813 = vmatprep.subr.bf16.mxu0 %v10319_v28  ;;  %v13310_v28 = vpack.c.bf16 %v3287_v50, %v3286_v9  ;;  %v3681_v9 = vld [vmem:[#allocation2 + $0xaa] sm:$0xff] }
 0x3d5   : > { %3814 = vmatpush1.bf16.msra.mxu0 %v10317_v45  ;;  %v10341_v45 = vld [vmem:[%s14169_s4 + $0x750] ss:$8 sps:$4 sm:$0xff]  }
 0x3d6   : > { %6322 = vmatmul.mubr.bf16.gmra.mrb[44].mxu1 %v13070_v20  ;;  %3815 = vmatprep.subr.bf16.mxu0 %v10322_v60  ;;  %v10329_v20 = vld [vmem:[%s14169_s4 + $0x360] ss:$8 sps:$4 sm:$0xff]   ;;  %v10346_v60 = vld [vmem:[%s14169_s4 + $0x764] ss:$8 sps:$4 sm:$0xff]  }
 0x3d7   : > { %6331 = vmatprep.mubr.bf16.mxu1 %v14415_v19 }
 0x3d8   : > { %3458 = vmatmul.mubr.bf16.gmra.mrb[48].mxu0 %v13195_v52 }
 0x3d9   : > { %3467 = vmatprep.mubr.bf16.mxu0 %v14415_v19  ;;  %3816 = vmatpush1.bf16.msra.mxu0 %v10320_v15  ;;  %v10349_v15 = vld [vmem:[%s14169_s4 + $0x774] ss:$8 sps:$4 sm:$0xff]  }
 0x3da   : > { %3817 = vmatprep.subr.bf16.mxu0 %v10325_v29 }
 0x3dd   : > { %3818 = vmatpush1.bf16.msra.mxu0 %v10323_v18  ;;  %v10347_v18 = vld [vmem:[%s14169_s4 + $0x770] ss:$8 sps:$4 sm:$0xff]  }
 0x3de   : > { %6332 = vmatmul.mubr.bf16.gmra.mrb[48].mxu1 %v13075_v44  ;;  %3819 = vmatprep.subr.bf16.mxu0 %v10331_v25  ;;  %v13225_v44 = vpack.c.bf16 %v3269_v47, %v3268_v6  ;;  %v10352_v25 = vld [vmem:[%s14169_s4 + $0x784] ss:$8 sps:$4 sm:$0xff]   ;;  %v10381_v47 = vld [vmem:[%s14169_s4 + $0x380] ss:$8 sps:$4 sm:$0xff]   ;;  %v10382_v6 = vld [vmem:[%s14169_s4 + $0x394] ss:$8 sps:$4 sm:$0xff]  }
 0x3df   : > { %6341 = vmatprep.mubr.bf16.mxu1 %v14415_v19 }
 0x3e0   : > { %3468 = vmatmul.mubr.bf16.gmra.mrb[52].mxu0 %v13213_v59 }
 0x3e1   : > { %3477 = vmatprep.mubr.bf16.mxu0 %v14415_v19  ;;  %3820 = vmatpush1.bf16.msra.mxu0 %v10329_v20  ;;  %v13340_v20 = vpack.c.bf16 %v3291_v63, %v3290_v48  ;;  %v10353_v48 = vld [vmem:[%s14169_s4 + $0x790] ss:$8 sps:$4 sm:$0xff]   ;;  %v10358_v63 = vld [vmem:[%s14169_s4 + $0x7a4] ss:$8 sps:$4 sm:$0xff]  }
 0x3e2   : > { %3821 = vmatprep.subr.bf16.mxu0 %v10334_v14  ;;  %v3662_v14 = vld [vmem:[#allocation2 + $0x12] sm:$0xff] }
 0x3e5   : > { %3822 = vmatpush1.bf16.msra.mxu0 %v10332_v16 }
 0x3e6   : > { %6342 = vmatmul.mubr.bf16.gmra.mrb[52].mxu1 %v13087_v37  ;;  %4209 = vmatprep.subr.bf16.mxu0 %v10380_v42  ;;  %v3273_v37 = vld [vmem:[#allocation2 + $0x79] sm:$0xff]  ;;  %v3665_v42 = vld [vmem:[#allocation2 + $0x2a] sm:$0xff] }
 0x3e7   : > { %6351 = vmatprep.mubr.bf16.mxu1 %v14415_v19  ;;  %v13240_v27 = vpack.c.bf16 %v3273_v37, %v3272_v31  ;;  %v10385_v37 = vld [vmem:[%s14169_s4 + $0x3a0] ss:$8 sps:$4 sm:$0xff]   ;;  %v10386_v31 = vld [vmem:[%s14169_s4 + $0x3b4] ss:$8 sps:$4 sm:$0xff]  }
 0x3e8   : > { %3478 = vmatmul.mubr.bf16.gmra.mrb[56].mxu0 %v13225_v44 }
 0x3e9   : > { %3487 = vmatprep.mubr.bf16.mxu0 %v14415_v19 }
 0x3ee   : > { %6352 = vmatmul.mubr.bf16.gmra.mrb[56].mxu1 %v13105_v40  ;;  %v3276_v40 = vld [vmem:[#allocation2 + $0x91] sm:$0xff] }
 0x3ef   : > { %6361 = vmatprep.mubr.bf16.mxu1 %v14415_v19  ;;  %v13252_v5 = vpack.c.bf16 %v3277_v33, %v3276_v40  ;;  %v10388_v33 = vld [vmem:[%s14169_s4 + $0x3c4] ss:$8 sps:$4 sm:$0xff]   ;;  %v10389_v40 = vld [vmem:[%s14169_s4 + $0x3c0] ss:$8 sps:$4 sm:$0xff]  }
 0x3f0   : > { %3488 = vmatmul.mubr.bf16.gmra.mrb[60].mxu0 %v13234_v58 }
 0x3f1   : > { %3497 = vmatprep.mubr.bf16.mxu0 %v14415_v19 }
 0x3f6   : > { %6362 = vmatmul.mubr.bf16.gmra.mrb[60].mxu1 %v13126_v3  ;;  %v6104_v3 = vld [vmem:[#allocation2 + $0x120] sm:$0xff] }
 0x3f7   : > { %6371 = vmatprep.mubr.bf16.mxu1 %v14415_v19  ;;  %v6121_v24 = vpack.c.bf16 %v6105_v26, %v6104_v3  ;;  %v10394_v3 = vld [vmem:[%s14169_s4 + $0x3f4] ss:$8 sps:$4 sm:$0xff]  }
 0x3f8   : > { %3498 = vmatmul.mubr.bf16.gmra.mrb[64].mxu0 %v13240_v27  ;;  %v3671_v26 = vld [vmem:[#allocation2 + $0x5a] sm:$0xff] }
 0x3f9   : > { %3507 = vmatprep.mubr.bf16.mxu0 %v14415_v19  ;;  %v13409_v35 = vpack.c.bf16 %v3671_v26, %v3670_v0  ;;  %v4067_v26 = vld [vmem:[#allocation2 + $0x2b] sm:$0xff] }
 0x3fe   : > { %6372 = vmatmul.mubr.bf16.gmra.mrb[0].mxu1 %v13144_v30  ;;  %v3282_v30 = vld [vmem:[#allocation2 + $0xc1] sm:$0xff] }
 0x3ff   : > { %6381 = vmatprep.mubr.bf16.mxu1 %v14415_v19  ;;  %v13274_v13 = vpack.c.bf16 %v3283_v21, %v3282_v30  ;;  %v3675_v21 = vld [vmem:[#allocation2 + $0x7a] sm:$0xff] }
 0x400   : > { %3508 = vmatmul.mubr.bf16.gmra.mrb[68].mxu0 %v13246_v53 }
 0x401   : > { %3517 = vmatprep.mubr.bf16.mxu0 %v14415_v19 }
 0x406   : > { %6382 = vmatmul.mubr.bf16.gmra.mrb[4].mxu1 %v13156_v8  ;;  %v10328_v8 = vld [vmem:[%s14169_s4 + $0x724] ss:$8 sps:$4 sm:$0xff]  }
 0x407   : > { %6391 = vmatprep.mubr.bf16.mxu1 %v14415_v19 }
 0x408   : > { %3518 = vmatmul.mubr.bf16.gmra.mrb[72].mxu0 %v13252_v5 }
 0x409   : > { %3527 = vmatprep.mubr.bf16.mxu0 %v14415_v19 }
 0x40e   : > { %6392 = vmatmul.mubr.bf16.gmra.mrb[8].mxu1 %v6120_v41  ;;  %v10392_v41 = vld [vmem:[%s14169_s4 + $0x3e4] ss:$8 sps:$4 sm:$0xff]  }
 0x40f   : > { %6401 = vmatprep.mubr.bf16.mxu1 %v14415_v19 }
 0x410   : > { %3528 = vmatmul.mubr.bf16.gmra.mrb[76].mxu0 %v13257_v57 }
 0x411   : > { %3537 = vmatprep.mubr.bf16.mxu0 %v14415_v19 }
 0x416   : > { %6402 = vmatmul.mubr.bf16.gmra.mrb[12].mxu1 %v6121_v24  ;;  %v10395_v24 = vld [vmem:[%s14169_s4 + $0x3f0] ss:$8 sps:$4 sm:$0xff]  }
 0x417   : > { %6653 = vmatprep.mubr.bf16.mxu1 %v14415_v19 }
 0x418   : > { %3538 = vmatmul.mubr.bf16.gmra.mrb[80].mxu0 %v13262_v34 }
 0x419   : > { %3547 = vmatprep.mubr.bf16.mxu0 %v14415_v19 }
 0x41e   : > { %6654 = vmatmul.mubr.bf16.vlgmr.msra.gmra.mrb[16].mxu1 %v13195_v52  ;;  %v3288_v52 = vld [vmem:[#allocation2 + $0xf1] sm:$0xff] }
 0x41f   : > { %7024 = vmatpush1.bf16.msra.mxu1 %v10302_v54  ;;  %6663 = vmatprep.mubr.bf16.mxu1 %v14415_v19  ;;  %v13328_v29 = vpack.c.bf16 %v3289_v10, %v3288_v52  ;;  %v3673_v54 = vld [vmem:[#allocation2 + $0x6a] sm:$0xff]  ;;  %v3682_v10 = vld [vmem:[#allocation2 + $0xb2] sm:$0xff]  ;;  %v3684_v52 = vld [vmem:[#allocation2 + $0xc2] sm:$0xff] }
 0x420   : > { %3548 = vmatmul.mubr.bf16.gmra.mrb[84].mxu0 %v13274_v13  ;;  %7025 = vmatprep.subr.bf16.mxu1 %v10313_v4  ;;  %v3674_v4 = vld [vmem:[#allocation2 + $0x72] sm:$0xff] }
 0x421   : > { %3557 = vmatprep.mubr.bf16.mxu0 %v14415_v19 }
 0x423   : > { %7026 = vmatpush1.bf16.msra.mxu1 %v10311_v17  ;;  %v3676_v17 = vld [vmem:[#allocation2 + $0x82] sm:$0xff] }
 0x424   : > { %7027 = vmatprep.subr.bf16.mxu1 %v10328_v8  ;;  %v3677_v8 = vld [vmem:[#allocation2 + $0x8a] sm:$0xff] }
 0x425   : > { %v13427_v49 = vpack.c.bf16 %v3677_v8, %v3676_v17  ;;  %v4074_v8 = vld [vmem:[#allocation2 + $0x63] sm:$0xff] }
 0x426   : > { %6664 = vmatmul.mubr.bf16.gmra.mrb[20].mxu1 %v13213_v59  ;;  %v3663_v59 = vld [vmem:[#allocation2 + $0x1a] sm:$0xff] }
 0x427   : > { %6673 = vmatprep.mubr.bf16.mxu1 %v14415_v19  ;;  %7028 = vmatpush1.bf16.msra.mxu1 %v10326_v7  ;;  %v3694_v16 = vpack.c.bf16 %v3663_v59, %v3662_v14  ;;  %v3679_v7 = vld [vmem:[#allocation2 + $0x9a] sm:$0xff] }
 0x428   : > { %3558 = vmatmul.mubr.bf16.gmra.mrb[88].mxu0 %v13292_v23  ;;  %7029 = vmatprep.subr.bf16.mxu1 %v10337_v55  ;;  %v3678_v55 = vld [vmem:[#allocation2 + $0x92] sm:$0xff]  ;;  %v10356_v59 = vld [vmem:[%s14169_s4 + $0x7a0] ss:$8 sps:$4 sm:$0xff]  }
 0x429   : > { %3567 = vmatprep.mubr.bf16.mxu0 %v14415_v19  ;;  %v13433_v36 = vpack.c.bf16 %v3679_v7, %v3678_v55  ;;  %v10361_v14 = vld [vmem:[%s14169_s4 + $0x7b4] ss:$8 sps:$4 sm:$0xff]  }
 0x42a   : > { %v4077_v55 = vld [vmem:[#allocation2 + $0x7b] sm:$0xff] }
 0x42b   : > { %7030 = vmatpush1.bf16.msra.mxu1 %v10335_v32  ;;  %v6504_v32 = vld [vmem:[#allocation2 + $0x111] sm:$0xff] }
 0x42c   : > { %7031 = vmatprep.subr.bf16.mxu1 %v10340_v62  ;;  %v3680_v62 = vld [vmem:[#allocation2 + $0xa2] sm:$0xff] }
 0x42e   : > { %6674 = vmatmul.mubr.bf16.gmra.mrb[24].mxu1 %v13225_v44  ;;  %v3664_v44 = vld [vmem:[#allocation2 + $0x22] sm:$0xff] }
 0x42f   : > { %6683 = vmatprep.mubr.bf16.mxu1 %v14415_v19  ;;  %7032 = vmatpush1.bf16.msra.mxu1 %v10338_v61  ;;  %v3695_v11 = vpack.c.bf16 %v3665_v42, %v3664_v44  ;;  %v13438_v61 = vpack.c.bf16 %v3681_v9, %v3680_v62  ;;  %v10364_v44 = vld [vmem:[%s14169_s4 + $0x7c4] ss:$8 sps:$4 sm:$0xff]  }
 0x430   : > { %3568 = vmatmul.mubr.bf16.gmra.mrb[92].mxu0 %v13310_v28  ;;  %7033 = vmatprep.subr.bf16.mxu1 %v10343_v43  ;;  %v6506_v43 = vld [vmem:[#allocation2 + $0x121] sm:$0xff]  ;;  %v4079_v62 = vld [vmem:[#allocation2 + $0x8b] sm:$0xff] }
 0x431   : > { %3577 = vmatprep.mubr.bf16.mxu0 %v14415_v19  ;;  %v3688_v42 = vld [vmem:[#allocation2 + $0xe2] sm:$0xff] }
 0x433   : > { %7034 = vmatpush1.bf16.msra.mxu1 %v10341_v45  ;;  %v3683_v45 = vld [vmem:[#allocation2 + $0xba] sm:$0xff] }
 0x434   : > { %7035 = vmatprep.subr.bf16.mxu1 %v10346_v60 }
 0x436   : > { %6684 = vmatmul.mubr.bf16.gmra.mrb[28].mxu1 %v13234_v58  ;;  %v10384_v58 = vld [vmem:[%s14169_s4 + $0x3a4] ss:$8 sps:$4 sm:$0xff]  }
 0x437   : > { %6693 = vmatprep.mubr.bf16.mxu1 %v14415_v19  ;;  %7036 = vmatpush1.bf16.msra.mxu1 %v10344_v1  ;;  %v13443_v1 = vpack.c.bf16 %v3683_v45, %v3682_v10  ;;  %v6906_v45 = vld [vmem:[#allocation2 + $0x112] sm:$0xff] }
 0x438   : > { %3578 = vmatmul.mubr.bf16.gmra.mrb[96].mxu0 %v13328_v29  ;;  %7037 = vmatprep.subr.bf16.mxu1 %v10349_v15  ;;  %v10350_v15 = vld [vmem:[%s14169_s4 + $0x780] ss:$8 sps:$4 sm:$0xff]  }
 0x439   : > { %3587 = vmatprep.mubr.bf16.mxu0 %v14415_v19  ;;  %v4083_v10 = vld [vmem:[#allocation2 + $0xab] sm:$0xff] }
 0x43b   : > { %7038 = vmatpush1.bf16.msra.mxu1 %v10347_v18  ;;  %v10355_v18 = vld [vmem:[%s14169_s4 + $0x794] ss:$8 sps:$4 sm:$0xff]  }
 0x43c   : > { %7425 = vmatprep.subr.bf16.mxu1 %v10352_v25 }
 0x43e   : > { %6694 = vmatmul.mubr.bf16.gmra.mrb[32].mxu1 %v13240_v27  ;;  %v3667_v27 = vld [vmem:[#allocation2 + $0x3a] sm:$0xff] }
 0x43f   : > { %6703 = vmatprep.mubr.bf16.mxu1 %v14415_v19 }
 0x440   : > { %3588 = vmatmul.mubr.bf16.gmra.mrb[100].mxu0 %v13340_v20 }
 0x441   : > { %3839 = vmatprep.mubr.bf16.mxu0 %v14415_v19 }
 0x446   : > { %6704 = vmatmul.mubr.bf16.gmra.mrb[36].mxu1 %v13246_v53  ;;  %v13373_v53 = vpack.c.bf16 %v3667_v27, %v3666_v12  ;;  %v10370_v27 = vld [vmem:[%s14169_s4 + $0x7e4] ss:$8 sps:$4 sm:$0xff]   ;;  %v3691_v12 = vld [vmem:[#allocation2 + $0xfa] sm:$0xff] }
 0x447   : > { %6713 = vmatprep.mubr.bf16.mxu1 %v14415_v19 }
 0x448   : > { %3840 = vmatmul.mubr.bf16.vlgmr.msra.gmra.mrb[40].mxu0 %v3694_v16  ;;  %v3686_v16 = vld [vmem:[#allocation2 + $0xd2] sm:$0xff] }
 0x449   : > { %3849 = vmatprep.mubr.bf16.mxu0 %v14415_v19  ;;  %4210 = vmatpush1.bf16.msra.mxu0 %v10381_v47 }
 0x44a   : > { %4211 = vmatprep.subr.bf16.mxu0 %v10382_v6  ;;  %v10359_v6 = vld [vmem:[%s14169_s4 + $0x7b0] ss:$8 sps:$4 sm:$0xff]  }
 0x44d   : > { %4212 = vmatpush1.bf16.msra.mxu0 %v10383_v22  ;;  %v3689_v22 = vld [vmem:[#allocation2 + $0xea] sm:$0xff] }
 0x44e   : > { %6714 = vmatmul.mubr.bf16.gmra.mrb[40].mxu1 %v13252_v5  ;;  %4213 = vmatprep.subr.bf16.mxu0 %v10384_v58  ;;  %v10390_v5 = vld [vmem:[%s14169_s4 + $0x3d4] ss:$8 sps:$4 sm:$0xff]  }
 0x44f   : > { %6723 = vmatprep.mubr.bf16.mxu1 %v14415_v19  ;;  %v10367_v58 = vld [vmem:[%s14169_s4 + $0x7d4] ss:$8 sps:$4 sm:$0xff]  }
 0x450   : > { %3850 = vmatmul.mubr.bf16.gmra.mrb[44].mxu0 %v3695_v11  ;;  %v10362_v11 = vld [vmem:[%s14169_s4 + $0x7c0] ss:$8 sps:$4 sm:$0xff]  }
 0x451   : > { %3859 = vmatprep.mubr.bf16.mxu0 %v14415_v19  ;;  %4214 = vmatpush1.bf16.msra.mxu0 %v10385_v37  ;;  %v13491_v37 = vpack.c.bf16 %v3689_v22, %v3688_v42  ;;  %v7303_v42 = vld [vmem:[#allocation2 + $0xeb] sm:$0xff] }
 0x452   : > { %4215 = vmatprep.subr.bf16.mxu0 %v10386_v31  ;;  %v10365_v31 = vld [vmem:[%s14169_s4 + $0x7d0] ss:$8 sps:$4 sm:$0xff]  }
 0x455   : > { %4216 = vmatpush1.bf16.msra.mxu0 %v10387_v51  ;;  %v10368_v51 = vld [vmem:[%s14169_s4 + $0x7e0] ss:$8 sps:$4 sm:$0xff]  }
 0x456   : > { %6724 = vmatmul.mubr.bf16.gmra.mrb[44].mxu1 %v13257_v57  ;;  %4217 = vmatprep.subr.bf16.mxu0 %v10388_v33  ;;  %v10393_v57 = vld [vmem:[%s14169_s4 + $0x3e0] ss:$8 sps:$4 sm:$0xff]   ;;  %v3690_v33 = vld [vmem:[#allocation2 + $0xf2] sm:$0xff] }
 0x457   : > { %6733 = vmatprep.mubr.bf16.mxu1 %v14415_v19 }
 0x458   : > { %3860 = vmatmul.mubr.bf16.gmra.mrb[48].mxu0 %v13373_v53 }
 0x459   : > { %3869 = vmatprep.mubr.bf16.mxu0 %v14415_v19  ;;  %4218 = vmatpush1.bf16.msra.mxu0 %v10389_v40  ;;  %v13509_v40 = vpack.c.bf16 %v3691_v12, %v3690_v33  ;;  %v7307_v33 = vld [vmem:[#allocation2 + $0x10b] sm:$0xff] }
 0x45a   : > { %4219 = vmatprep.subr.bf16.mxu0 %v10390_v5  ;;  %v10371_v5 = vld [vmem:[%s14169_s4 + $0x7f0] ss:$8 sps:$4 sm:$0xff]  }
 0x45d   : > { %4220 = vmatpush1.bf16.msra.mxu0 %v10391_v39  ;;  %v3709_v39 = vpack.c.bf16 %v3693_v46, %v3692_v38 }
 0x45e   : > { %6734 = vmatmul.mubr.bf16.gmra.mrb[48].mxu1 %v13262_v34  ;;  %4221 = vmatprep.subr.bf16.mxu0 %v10392_v41  ;;  %v3672_v34 = vld [vmem:[#allocation2 + $0x62] sm:$0xff]  ;;  %v4064_v41 = vld [vmem:[#allocation2 + $0x13] sm:$0xff] }
 0x45f   : > { %6743 = vmatprep.mubr.bf16.mxu1 %v14415_v19  ;;  %v13415_v30 = vpack.c.bf16 %v3673_v54, %v3672_v34  ;;  %v4070_v54 = vld [vmem:[#allocation2 + $0x43] sm:$0xff] }
 0x460   : > { %3870 = vmatmul.mubr.bf16.gmra.mrb[52].mxu0 %v13391_v2 }
 0x461   : > { %3879 = vmatprep.mubr.bf16.mxu0 %v14415_v19  ;;  %4222 = vmatpush1.bf16.msra.mxu0 %v10393_v57 }
 0x462   : > { %4223 = vmatprep.subr.bf16.mxu0 %v10394_v3  ;;  %v4066_v3 = vld [vmem:[#allocation2 + $0x23] sm:$0xff] }
 0x463   : > { %v4097_v0 = vpack.c.bf16 %v4067_v26, %v4066_v3 }
 0x465   : > { %4224 = vmatpush1.bf16.msra.mxu0 %v10395_v24  ;;  %v4069_v24 = vld [vmem:[#allocation2 + $0x3b] sm:$0xff] }
 0x466   : > { %6744 = vmatmul.mubr.bf16.gmra.mrb[52].mxu1 %v13274_v13  ;;  %v13421_v13 = vpack.c.bf16 %v3675_v21, %v3674_v4  ;;  %v4073_v4 = vld [vmem:[#allocation2 + $0x5b] sm:$0xff] }
 0x467   : > { %6753 = vmatprep.mubr.bf16.mxu1 %v14415_v19 }
 0x468   : > { %3880 = vmatmul.mubr.bf16.gmra.mrb[56].mxu0 %v13409_v35 }
 0x469   : > { %3889 = vmatprep.mubr.bf16.mxu0 %v14415_v19 }
 0x46e   : > { %6754 = vmatmul.mubr.bf16.gmra.mrb[56].mxu1 %v13292_v23  ;;  %v6505_v23 = vld [vmem:[#allocation2 + $0x119] sm:$0xff] }
 0x46f   : > { %6763 = vmatprep.mubr.bf16.mxu1 %v14415_v19  ;;  %v6522_v50 = vpack.c.bf16 %v6505_v23, %v6504_v32  ;;  %v4078_v32 = vld [vmem:[#allocation2 + $0x83] sm:$0xff] }
 0x470   : > { %3890 = vmatmul.mubr.bf16.gmra.mrb[60].mxu0 %v13415_v30  ;;  %v4103_v9 = vpack.c.bf16 %v4079_v62, %v4078_v32 }
 0x471   : > { %3899 = vmatprep.mubr.bf16.mxu0 %v14415_v19 }
 0x476   : > { %6764 = vmatmul.mubr.bf16.gmra.mrb[60].mxu1 %v13310_v28  ;;  %v6507_v28 = vld [vmem:[#allocation2 + $0x129] sm:$0xff] }
 0x477   : > { %6773 = vmatprep.mubr.bf16.mxu1 %v14415_v19  ;;  %v6523_v60 = vpack.c.bf16 %v6507_v28, %v6506_v43  ;;  %v6907_v28 = vld [vmem:[#allocation2 + $0x11a] sm:$0xff] }
 0x478   : > { %3900 = vmatmul.mubr.bf16.gmra.mrb[64].mxu0 %v13421_v13 }
 0x479   : > { %3909 = vmatprep.mubr.bf16.mxu0 %v14415_v19 }
 0x47e   : > { %6774 = vmatmul.mubr.bf16.gmra.mrb[0].mxu1 %v13328_v29  ;;  %v3685_v29 = vld [vmem:[#allocation2 + $0xca] sm:$0xff] }
 0x47f   : > { %6783 = vmatprep.mubr.bf16.mxu1 %v14415_v19  ;;  %v13455_v25 = vpack.c.bf16 %v3685_v29, %v3684_v52  ;;  %v6908_v52 = vld [vmem:[#allocation2 + $0x122] sm:$0xff]  ;;  %v6909_v29 = vld [vmem:[#allocation2 + $0x12a] sm:$0xff] }
 0x480   : > { %3910 = vmatmul.mubr.bf16.gmra.mrb[68].mxu0 %v13427_v49 }
 0x481   : > { %3919 = vmatprep.mubr.bf16.mxu0 %v14415_v19 }
 0x486   : > { %6784 = vmatmul.mubr.bf16.gmra.mrb[4].mxu1 %v13340_v20  ;;  %v3687_v20 = vld [vmem:[#allocation2 + $0xda] sm:$0xff] }
 0x487   : > { %6793 = vmatprep.mubr.bf16.mxu1 %v14415_v19  ;;  %v13473_v47 = vpack.c.bf16 %v3687_v20, %v3686_v16  ;;  %v4086_v20 = vld [vmem:[#allocation2 + $0xc3] sm:$0xff]  ;;  %v7301_v16 = vld [vmem:[#allocation2 + $0xdb] sm:$0xff] }
 0x488   : > { %3920 = vmatmul.mubr.bf16.gmra.mrb[72].mxu0 %v13433_v36 }
 0x489   : > { %3929 = vmatprep.mubr.bf16.mxu0 %v14415_v19 }
 0x48e   : > { %6794 = vmatmul.mubr.bf16.gmra.mrb[8].mxu1 %v6522_v50  ;;  %v4081_v50 = vld [vmem:[#allocation2 + $0x9b] sm:$0xff] }
 0x48f   : > { %6803 = vmatprep.mubr.bf16.mxu1 %v14415_v19 }
 0x490   : > { %3930 = vmatmul.mubr.bf16.gmra.mrb[76].mxu0 %v13438_v61 }
 0x491   : > { %3939 = vmatprep.mubr.bf16.mxu0 %v14415_v19 }
 0x496   : > { %6804 = vmatmul.mubr.bf16.gmra.mrb[12].mxu1 %v6523_v60  ;;  %v4082_v60 = vld [vmem:[#allocation2 + $0xa3] sm:$0xff] }
 0x497   : > { %7055 = vmatprep.mubr.bf16.mxu1 %v14415_v19 }
 0x498   : > { %3940 = vmatmul.mubr.bf16.gmra.mrb[80].mxu0 %v13443_v1 }
 0x499   : > { %3949 = vmatprep.mubr.bf16.mxu0 %v14415_v19 }
 0x49e   : > { %7056 = vmatmul.mubr.bf16.vlgmr.msra.gmra.mrb[16].mxu1 %v13373_v53  ;;  %v10373_v53 = vld [vmem:[%s14169_s4 + $0x7f4] ss:$8 sps:$4 sm:$0xff]  }
 0x49f   : > { %7426 = vmatpush1.bf16.msra.mxu1 %v10350_v15  ;;  %7065 = vmatprep.mubr.bf16.mxu1 %v14415_v19  ;;  %v4105_v15 = vpack.c.bf16 %v4083_v10, %v4082_v60 }
 0x4a0   : > { %3950 = vmatmul.mubr.bf16.gmra.mrb[84].mxu0 %v13455_v25  ;;  %7427 = vmatprep.subr.bf16.mxu1 %v10355_v18  ;;  %v4085_v18 = vld [vmem:[#allocation2 + $0xbb] sm:$0xff] }
 0x4a1   : > { %3959 = vmatprep.mubr.bf16.mxu0 %v14415_v19 }
 0x4a3   : > { %7428 = vmatpush1.bf16.msra.mxu1 %v10353_v48  ;;  %v4084_v48 = vld [vmem:[#allocation2 + $0xb3] sm:$0xff] }
 0x4a4   : > { %7429 = vmatprep.subr.bf16.mxu1 %v10358_v63  ;;  %v4106_v63 = vpack.c.bf16 %v4085_v18, %v4084_v48 }
 0x4a6   : > { %7066 = vmatmul.mubr.bf16.gmra.mrb[20].mxu1 %v13391_v2  ;;  %v4065_v2 = vld [vmem:[#allocation2 + $0x1b] sm:$0xff] }
 0x4a7   : > { %7075 = vmatprep.mubr.bf16.mxu1 %v14415_v19  ;;  %7430 = vmatpush1.bf16.msra.mxu1 %v10356_v59  ;;  %v4096_v57 = vpack.c.bf16 %v4065_v2, %v4064_v41  ;;  %v4087_v59 = vld [vmem:[#allocation2 + $0xcb] sm:$0xff]  ;;  %v7309_v2 = vld [vmem:[#allocation2 + $0x11b] sm:$0xff] }
 0x4a8   : > { %3960 = vmatmul.mubr.bf16.gmra.mrb[88].mxu0 %v13473_v47  ;;  %7431 = vmatprep.subr.bf16.mxu1 %v10361_v14  ;;  %v4107_v14 = vpack.c.bf16 %v4087_v59, %v4086_v20 }
 0x4a9   : > { %3969 = vmatprep.mubr.bf16.mxu0 %v14415_v19 }
 0x4ab   : > { %7432 = vmatpush1.bf16.msra.mxu1 %v10359_v6 }
 0x4ac   : > { %7433 = vmatprep.subr.bf16.mxu1 %v10364_v44  ;;  %v7302_v44 = vld [vmem:[#allocation2 + $0xe3] sm:$0xff] }
 0x4ad   : > { %v7323_v22 = vpack.c.bf16 %v7303_v42, %v7302_v44 }
 0x4ae   : > { %7076 = vmatmul.mubr.bf16.gmra.mrb[24].mxu1 %v13409_v35  ;;  %v4068_v35 = vld [vmem:[#allocation2 + $0x33] sm:$0xff] }
 0x4af   : > { %7085 = vmatprep.mubr.bf16.mxu1 %v14415_v19  ;;  %7434 = vmatpush1.bf16.msra.mxu1 %v10362_v11  ;;  %v13527_v34 = vpack.c.bf16 %v4069_v24, %v4068_v35  ;;  %v7305_v11 = vld [vmem:[#allocation2 + $0xfb] sm:$0xff]  ;;  %v7310_v35 = vld [vmem:[#allocation2 + $0x123] sm:$0xff] }
 0x4b0   : > { %3970 = vmatmul.mubr.bf16.gmra.mrb[92].mxu0 %v13491_v37  ;;  %7435 = vmatprep.subr.bf16.mxu1 %v10367_v58 }
 0x4b1   : > { %3979 = vmatprep.mubr.bf16.mxu0 %v14415_v19 }
 0x4b3   : > { %7436 = vmatpush1.bf16.msra.mxu1 %v10365_v31 }
 0x4b4   : > { %7437 = vmatprep.subr.bf16.mxu1 %v10370_v27 }
 0x4b6   : > { %7086 = vmatmul.mubr.bf16.gmra.mrb[28].mxu1 %v13415_v30  ;;  %v4071_v30 = vld [vmem:[#allocation2 + $0x4b] sm:$0xff] }
 0x4b7   : > { %7095 = vmatprep.mubr.bf16.mxu1 %v14415_v19  ;;  %7438 = vmatpush1.bf16.msra.mxu1 %v10368_v51  ;;  %v13533_v21 = vpack.c.bf16 %v4071_v30, %v4070_v54 }
 0x4b8   : > { %3980 = vmatmul.mubr.bf16.gmra.mrb[96].mxu0 %v13509_v40  ;;  %7439 = vmatprep.subr.bf16.mxu1 %v10373_v53  ;;  %v7306_v53 = vld [vmem:[#allocation2 + $0x103] sm:$0xff] }
 0x4b9   : > { %3989 = vmatprep.mubr.bf16.mxu0 %v14415_v19  ;;  %v7325_v38 = vpack.c.bf16 %v7307_v33, %v7306_v53 }
 0x4bb   : > { %7440 = vmatpush1.bf16.msra.mxu1 %v10371_v5 }
 0x4be   : > { %7096 = vmatmul.mubr.bf16.gmra.mrb[32].mxu1 %v13421_v13  ;;  %v4072_v13 = vld [vmem:[#allocation2 + $0x53] sm:$0xff] }
 0x4bf   : > { %7105 = vmatprep.mubr.bf16.mxu1 %v14415_v19  ;;  %v4100_v17 = vpack.c.bf16 %v4073_v4, %v4072_v13 }
 0x4c0   : > { %3990 = vmatmul.mubr.bf16.gmra.mrb[100].mxu0 %v3709_v39 }
 0x4c1   : > { %4241 = vmatprep.mubr.bf16.mxu0 %v14415_v19 }
 0x4c6   : > { %7106 = vmatmul.mubr.bf16.gmra.mrb[36].mxu1 %v13427_v49  ;;  %v4075_v49 = vld [vmem:[#allocation2 + $0x6b] sm:$0xff] }
 0x4c7   : > { %7115 = vmatprep.mubr.bf16.mxu1 %v14415_v19  ;;  %v4101_v7 = vpack.c.bf16 %v4075_v49, %v4074_v8 }
 0x4c8   : > { %4242 = vmatmul.mubr.bf16.vlgmr.msra.gmra.mrb[40].mxu0 %v4096_v57  ;;  %v7308_v57 = vld [vmem:[#allocation2 + $0x113] sm:$0xff] }
 0x4c9   : > { %4251 = vmatprep.mubr.bf16.mxu0 %v14415_v19  ;;  %v7326_v26 = vpack.c.bf16 %v7309_v2, %v7308_v57  ;;  %v7686_v57 = vsub.s32 0, %v10629_v56 }
 0x4ce   : > { %7116 = vmatmul.mubr.bf16.gmra.mrb[40].mxu1 %v13433_v36  ;;  %v4076_v36 = vld [vmem:[#allocation2 + $0x73] sm:$0xff] }
 0x4cf   : > { %7125 = vmatprep.mubr.bf16.mxu1 %v14415_v19  ;;  %v4102_v23 = vpack.c.bf16 %v4077_v55, %v4076_v36 }
 0x4d0   : > { %4252 = vmatmul.mubr.bf16.gmra.mrb[44].mxu0 %v4097_v0 }
 0x4d1   : > { %4261 = vmatprep.mubr.bf16.mxu0 %v14415_v19 }
 0x4d6   : > { %7126 = vmatmul.mubr.bf16.gmra.mrb[44].mxu1 %v13438_v61  ;;  %v4080_v61 = vld [vmem:[#allocation2 + $0x93] sm:$0xff] }
 0x4d7   : > { %7135 = vmatprep.mubr.bf16.mxu1 %v14415_v19  ;;  %v4104_v43 = vpack.c.bf16 %v4081_v50, %v4080_v61 }
 0x4d8   : > { %4262 = vmatmul.mubr.bf16.gmra.mrb[48].mxu0 %v13527_v34 }
 0x4d9   : > { %4271 = vmatprep.mubr.bf16.mxu0 %v14415_v19 }
 0x4de   : > { %7136 = vmatmul.mubr.bf16.gmra.mrb[48].mxu1 %v13443_v1  ;;  %v6924_v1 = vpack.c.bf16 %v6907_v28, %v6906_v45 }
 0x4df   : > { %7145 = vmatprep.mubr.bf16.mxu1 %v14415_v19 }
 0x4e0   : > { %4272 = vmatmul.mubr.bf16.gmra.mrb[52].mxu0 %v13533_v21 }
 0x4e1   : > { %4281 = vmatprep.mubr.bf16.mxu0 %v14415_v19 }
 0x4e6   : > { %7146 = vmatmul.mubr.bf16.gmra.mrb[52].mxu1 %v13455_v25  ;;  %v6925_v25 = vpack.c.bf16 %v6909_v29, %v6908_v52 }
 0x4e7   : > { %7155 = vmatprep.mubr.bf16.mxu1 %v14415_v19 }
 0x4e8   : > { %4282 = vmatmul.mubr.bf16.gmra.mrb[56].mxu0 %v4100_v17 }
 0x4e9   : > { %4291 = vmatprep.mubr.bf16.mxu0 %v14415_v19 }
 0x4ee   : > { %7156 = vmatmul.mubr.bf16.gmra.mrb[56].mxu1 %v13473_v47  ;;  %v7300_v47 = vld [vmem:[#allocation2 + $0xd3] sm:$0xff] }
 0x4ef   : > { %7165 = vmatprep.mubr.bf16.mxu1 %v14415_v19  ;;  %v7322_v6 = vpack.c.bf16 %v7301_v16, %v7300_v47 }
 0x4f0   : > { %4292 = vmatmul.mubr.bf16.gmra.mrb[60].mxu0 %v4101_v7 }
 0x4f1   : > { %4301 = vmatprep.mubr.bf16.mxu0 %v14415_v19 }
 0x4f6   : > { %7166 = vmatmul.mubr.bf16.gmra.mrb[60].mxu1 %v13491_v37  ;;  %v7304_v37 = vld [vmem:[#allocation2 + $0xf3] sm:$0xff] }
 0x4f7   : > { %7175 = vmatprep.mubr.bf16.mxu1 %v14415_v19  ;;  %v7324_v27 = vpack.c.bf16 %v7305_v11, %v7304_v37 }
 0x4f8   : > { %4302 = vmatmul.mubr.bf16.gmra.mrb[64].mxu0 %v4102_v23 }
 0x4f9   : > { %4311 = vmatprep.mubr.bf16.mxu0 %v14415_v19 }
 0x4fe   : > { %7176 = vmatmul.mubr.bf16.gmra.mrb[0].mxu1 %v13509_v40 }
 0x4ff   : > { %7185 = vmatprep.mubr.bf16.mxu1 %v14415_v19 }
 0x500   : > { %4312 = vmatmul.mubr.bf16.gmra.mrb[68].mxu0 %v4103_v9 }
 0x501   : > { %4321 = vmatprep.mubr.bf16.mxu0 %v14415_v19 }
 0x506   : > { %7186 = vmatmul.mubr.bf16.gmra.mrb[4].mxu1 %v3709_v39 }
 0x507   : > { %7195 = vmatprep.mubr.bf16.mxu1 %v14415_v19 }
 0x508   : > { %4322 = vmatmul.mubr.bf16.gmra.mrb[72].mxu0 %v4104_v43 }
 0x509   : > { %4331 = vmatprep.mubr.bf16.mxu0 %v14415_v19 }
 0x50e   : > { %7196 = vmatmul.mubr.bf16.gmra.mrb[8].mxu1 %v6924_v1 }
 0x50f   : > { %7205 = vmatprep.mubr.bf16.mxu1 %v14415_v19 }
 0x510   : > { %4332 = vmatmul.mubr.bf16.gmra.mrb[76].mxu0 %v4105_v15 }
 0x511   : > { %4341 = vmatprep.mubr.bf16.mxu0 %v14415_v19 }
 0x516   : > { %7206 = vmatmul.mubr.bf16.gmra.mrb[12].mxu1 %v6925_v25 }
 0x517   : > { %7457 = vmatprep.mubr.bf16.mxu1 %v14415_v19 }
 0x518   : > { %4342 = vmatmul.mubr.bf16.gmra.mrb[80].mxu0 %v4106_v63 }
 0x519   : > { %4351 = vmatprep.mubr.bf16.mxu0 %v14415_v19 }
 0x51e   : > { %7458 = vmatmul.mubr.bf16.vlgmr.msra.gmra.mrb[16].mxu1 %v13527_v34  ;;  %v7311_v34 = vld [vmem:[#allocation2 + $0x12b] sm:$0xff] }
 0x51f   : > { %7467 = vmatprep.mubr.bf16.mxu1 %v14415_v19 }
 0x520   : > { %4352 = vmatmul.mubr.bf16.gmra.mrb[84].mxu0 %v4107_v14 }
 0x526   : > { %7468 = vmatmul.mubr.bf16.gmra.mrb[20].mxu1 %v13533_v21  ;;  %v7327_v21 = vpack.c.bf16 %v7311_v34, %v7310_v35  ;;  %v7682_v35 = vld [vmem:[%s14170_s5] sm:$0x3]  ;;  %v7690_v34 = vsub.s32 1, %v10629_v56 }
 0x527   : > { %7477 = vmatprep.mubr.bf16.mxu1 %v14415_v19 }
 0x52e   : > { %7478 = vmatmul.mubr.bf16.gmra.mrb[24].mxu1 %v4100_v17 }
 0x52f   : > { %7487 = vmatprep.mubr.bf16.mxu1 %v14415_v19 }
 0x536   : > { %7488 = vmatmul.mubr.bf16.gmra.mrb[28].mxu1 %v4101_v7 }
 0x537   : > { %7497 = vmatprep.mubr.bf16.mxu1 %v14415_v19 }
 0x53e   : > { %7498 = vmatmul.mubr.bf16.gmra.mrb[32].mxu1 %v4102_v23 }
 0x53f   : > { %7507 = vmatprep.mubr.bf16.mxu1 %v14415_v19 }
 0x546   : > { %7508 = vmatmul.mubr.bf16.gmra.mrb[36].mxu1 %v4103_v9 }
 0x547   : > { %7517 = vmatprep.mubr.bf16.mxu1 %v14415_v19 }
 0x54e   : > { %7518 = vmatmul.mubr.bf16.gmra.mrb[40].mxu1 %v4104_v43 }
 0x54f   : > { %7527 = vmatprep.mubr.bf16.mxu1 %v14415_v19 }
 0x556   : > { %7528 = vmatmul.mubr.bf16.gmra.mrb[44].mxu1 %v4105_v15 }
 0x557   : > { %7537 = vmatprep.mubr.bf16.mxu1 %v14415_v19 }
 0x55e   : > { %7538 = vmatmul.mubr.bf16.gmra.mrb[48].mxu1 %v4106_v63 }
 0x55f   : > { %7547 = vmatprep.mubr.bf16.mxu1 %v14415_v19 }
 0x566   : > { %7548 = vmatmul.mubr.bf16.gmra.mrb[52].mxu1 %v4107_v14 }
 0x567   : > { %7557 = vmatprep.mubr.bf16.mxu1 %v14415_v19 }
 0x56e   : > { %7558 = vmatmul.mubr.bf16.gmra.mrb[56].mxu1 %v7322_v6 }
 0x56f   : > { %7567 = vmatprep.mubr.bf16.mxu1 %v14415_v19 }
 0x576   : > { %7568 = vmatmul.mubr.bf16.gmra.mrb[60].mxu1 %v7323_v22 }
 0x577   : > { %7577 = vmatprep.mubr.bf16.mxu1 %v14415_v19 }
 0x57b   : > { %v13570_v58 = vpop.f32.mrb[88].mxu0 }
 0x57c   : > { %14701 = vst [vmem:[#allocation3_spill] sm:$0xff] %v13570_v58  ;;  %v13572_v31 = vpop.f32.mrb[89].mxu0 }
 0x57d   : > { %14702 = vst [vmem:[#allocation4_spill] sm:$0xff] %v13572_v31  ;;  %v13574_v12 = vpop.f32.mrb[90].mxu0 }
 0x57e   : > { %14703 = vst [vmem:[#allocation5_spill] sm:$0xff] %v13574_v12  ;;  %v13576_v51 = vpop.f32.mrb[91].mxu0  ;;  %7578 = vmatmul.mubr.bf16.gmra.mrb[0].mxu1 %v7324_v27 }
 0x57f   : > { %14704 = vst [vmem:[#allocation6_spill] sm:$0xff] %v13576_v51  ;;  %7587 = vmatprep.mubr.bf16.mxu1 %v14415_v19 }
 0x583   : > { %v13579_v40 = vpop.f32.mrb[92].mxu0 }
 0x584   : > { %14705 = vst [vmem:[#allocation7_spill] sm:$0xff] %v13579_v40  ;;  %v13581_v5 = vpop.f32.mrb[93].mxu0 }
 0x585   : > { %14706 = vst [vmem:[#allocation8_spill] sm:$0xff] %v13581_v5  ;;  %v13583_v46 = vpop.f32.mrb[94].mxu0 }
 0x586   : > { %14707 = vst [vmem:[#allocation9_spill] sm:$0xff] %v13583_v46  ;;  %v13585_v39 = vpop.f32.mrb[95].mxu0  ;;  %7588 = vmatmul.mubr.bf16.gmra.mrb[4].mxu1 %v7325_v38 }
 0x587   : > { %14708 = vst [vmem:[#allocation10_spill] sm:$0xff] %v13585_v39  ;;  %7597 = vmatprep.mubr.bf16.mxu1 %v14415_v19 }
 0x58b   : > { %v13588_v41 = vpop.f32.mrb[96].mxu0 }
 0x58c   : > { %14709 = vst [vmem:[#allocation11_spill] sm:$0xff] %v13588_v41  ;;  %v13590_v3 = vpop.f32.mrb[97].mxu0 }
 0x58d   : > { %14710 = vst [vmem:[#allocation12_spill] sm:$0xff] %v13590_v3  ;;  %v13592_v0 = vpop.f32.mrb[98].mxu0 }
 0x58e   : > { %14711 = vst [vmem:[#allocation13_spill] sm:$0xff] %v13592_v0  ;;  %v13594_v24 = vpop.f32.mrb[99].mxu0  ;;  %7598 = vmatmul.mubr.bf16.gmra.mrb[8].mxu1 %v7326_v26 }
 0x58f   : > { %14712 = vst [vmem:[#allocation14_spill] sm:$0xff] %v13594_v24  ;;  %7607 = vmatprep.mubr.bf16.mxu1 %v14415_v19 }
 0x593   : > { %v13597_v54 = vpop.f32.mrb[100].mxu0 }
 0x594   : > { %14713 = vst [vmem:[#allocation15_spill] sm:$0xff] %v13597_v54  ;;  %v13599_v30 = vpop.f32.mrb[101].mxu0  ;;  %v13695_v54 = vrot.slane %v7682_v35, %v7690_v34 }
 0x595   : > { %14714 = vst [vmem:[#allocation16_spill] sm:$0xff] %v13599_v30  ;;  %v13601_v4 = vpop.f32.mrb[102].mxu0 }
 0x596   : > { %14715 = vst [vmem:[#allocation17_spill] sm:$0xff] %v13601_v4  ;;  %v13603_v13 = vpop.f32.mrb[103].mxu0  ;;  %7608 = vmatmul.mubr.bf16.gmra.mrb[12].mxu1 %v7327_v21  ;;  %v13693_v4 = vrot.slane %v7682_v35, %v7686_v57 }
 0x597   : > { %14716 = vst [vmem:[#allocation18_spill] sm:$0xff] %v13603_v13  ;;  %v7758_v13 = vld [vmem:[%s14171_s6] sm:$0x3] }
 0x598   : > { %v13697_v0 = vrot.slane %v7758_v13, %v7686_v57  ;;  %v13699_v39 = vrot.slane %v7758_v13, %v7690_v34 }
 0x59b   : > { %v4243_v17 = vpop.f32.mrb[40].mxu0 }
 0x59c   : > { %v4245_v8 = vpop.f32.mrb[41].mxu0 }
 0x59d   : > { %v4247_v49 = vpop.f32.mrb[42].mxu0 }
 0x59e   : > { %v4249_v7 = vpop.f32.mrb[43].mxu0 }
 0x5a3   : > { %v13605_v55 = vpop.f32.mrb[44].mxu0 }
 0x5a4   : > { %v13607_v36 = vpop.f32.mrb[45].mxu0 }
 0x5a5   : > { %v13609_v19 = vpop.f32.mrb[46].mxu0 }
 0x5a6   : > { %v13611_v23 = vpop.f32.mrb[47].mxu0 }
 0x5ab   : > { %v13613_v32 = vpop.f32.mrb[48].mxu0 }
 0x5ac   : > { %v13615_v62 = vpop.f32.mrb[49].mxu0 }
 0x5ad   : > { %v13617_v9 = vpop.f32.mrb[50].mxu0 }
 0x5ae   : > { %v13619_v50 = vpop.f32.mrb[51].mxu0 }
 0x5b3   : > { %v13621_v61 = vpop.f32.mrb[52].mxu0 }
 0x5b4   : > { %v13623_v43 = vpop.f32.mrb[53].mxu0 }
 0x5b5   : > { %v13625_v28 = vpop.f32.mrb[54].mxu0 }
 0x5b6   : > { %v13627_v45 = vpop.f32.mrb[55].mxu0 }
 0x5bb   : > { %v13629_v60 = vpop.f32.mrb[56].mxu0 }
 0x5bc   : > { %v13631_v10 = vpop.f32.mrb[57].mxu0 }
 0x5bd   : > { %v13633_v1 = vpop.f32.mrb[58].mxu0 }
 0x5be   : > { %v13635_v15 = vpop.f32.mrb[59].mxu0 }
 0x5c3   : > { %v13637_v52 = vpop.f32.mrb[60].mxu0 }
 0x5c4   : > { %v13639_v29 = vpop.f32.mrb[61].mxu0 }
 0x5c5   : > { %v13641_v18 = vpop.f32.mrb[62].mxu0 }
 0x5c6   : > { %v13643_v25 = vpop.f32.mrb[63].mxu0 }
 0x5cb   : > { %v13645_v48 = vpop.f32.mrb[64].mxu0 }
 0x5cc   : > { %v13647_v63 = vpop.f32.mrb[65].mxu0 }
 0x5cd   : > { %v13649_v20 = vpop.f32.mrb[66].mxu0 }
 0x5ce   : > { %v13651_v59 = vpop.f32.mrb[67].mxu0 }
 0x5d3   : > { %v13653_v14 = vpop.f32.mrb[68].mxu0 }
 0x5d4   : > { %v13655_v16 = vpop.f32.mrb[69].mxu0 }
 0x5d5   : > { %v13657_v47 = vpop.f32.mrb[70].mxu0 }
 0x5d6   : > { %v13659_v6 = vpop.f32.mrb[71].mxu0 }
 0x5db   : > { %v13661_v44 = vpop.f32.mrb[72].mxu0 }
 0x5dc   : > { %v13663_v42 = vpop.f32.mrb[73].mxu0 }
 0x5dd   : > { %v13665_v22 = vpop.f32.mrb[74].mxu0 }
 0x5de   : > { %v13667_v11 = vpop.f32.mrb[75].mxu0 }
 0x5e3   : > { %v13669_v37 = vpop.f32.mrb[76].mxu0 }
 0x5e4   : > { %v13671_v27 = vpop.f32.mrb[77].mxu0 }
 0x5e5   : > { %v13673_v53 = vpop.f32.mrb[78].mxu0 }
 0x5e6   : > { %v13675_v33 = vpop.f32.mrb[79].mxu0 }
 0x5eb   : > { %v13677_v38 = vpop.f32.mrb[80].mxu0 }
 0x5ec   : > { %v13679_v2 = vpop.f32.mrb[81].mxu0 }
 0x5ed   : > { %v13682_v26 = vpop.f32.mrb[82].mxu0 }
 0x5ee   : > { %14717 = vst [vmem:[#allocation19_spill] sm:$0xff] %v13682_v26  ;;  %v13688_v21 = vpop.f32.mrb[83].mxu0 }
 0x5ef   : > { %14718 = vst [vmem:[#allocation20_spill] sm:$0xff] %v13688_v21 }
 0x5f1   : > { %v7459_v30 = vpop.f32.mrb[16].mxu1 }
 0x5f2   : > { %v8999_v24 = vadd.f32 %v7459_v30, %v4243_v17  ;;  %v7461_v3 = vpop.f32.mrb[17].mxu1 }
 0x5f3   : > { %v9000_v41 = vadd.f32 %v7461_v3, %v4245_v8  ;;  %v13701_v46 = vpop.f32.mrb[84].mxu0  ;;  %v7463_v56 = vpop.f32.mrb[18].mxu1 }
 0x5f4   : > { %14719 = vst [vmem:[#allocation21_spill] sm:$0xff] %v13701_v46  ;;  %v7694_v5 = vmul.f32 %v8999_v24, %v13693_v4  ;;  %v9001_v40 = vadd.f32 %v7463_v56, %v4247_v49  ;;  %v13704_v51 = vpop.f32.mrb[85].mxu0  ;;  %v7465_v12 = vpop.f32.mrb[19].mxu1 }
 0x5f5   : > { %14720 = vst [vmem:[#allocation22_spill] sm:$0xff] %v13704_v51  ;;  %v7695_v31 = vmul.f32 %v9000_v41, %v13695_v54  ;;  %v9002_v35 = vadd.f32 %v7465_v12, %v4249_v7  ;;  %v13707_v58 = vpop.f32.mrb[86].mxu0  ;;  %v8026_v12 = vld [vmem:[%s14172_s7] sm:$0xff] }
 0x5f6   : > { %14721 = vst [vmem:[#allocation23_spill] sm:$0xff] %v13707_v58  ;;  %v7770_v30 = vadd.f32 %v13697_v0, %v7694_v5  ;;  %v7696_v3 = vmul.f32 %v9001_v40, %v13693_v4  ;;  %v13711_v13 = vpop.f32.mrb[87].mxu0  ;;  %v8027_v40 = vld [vmem:[%s14172_s7 + $0x8] sm:$0xff] }
 0x5f7   : > { %14722 = vst [vmem:[#allocation24_spill] sm:$0xff] %v13711_v13  ;;  %v7771_v17 = vadd.f32 %v13699_v39, %v7695_v31  ;;  %v7697_v8 = vmul.f32 %v9002_v35, %v13695_v54 }
 0x5f8   : > { %v7772_v24 = vadd.f32 %v13697_v0, %v7696_v3  ;;  %vm7834_vm5 = vcmp.gt.f32.partialorder %v7770_v30, 0.0  ;;  %v7898_v49 = vmul.f32 0.01, %v7770_v30 }
 0x5f9   : > { %v7773_v41 = vadd.f32 %v13699_v39, %v7697_v8  ;;  %v7469_v7 = vpop.f32.mrb[20].mxu1  ;;  %vm7835_vm2 = vcmp.gt.f32.partialorder %v7771_v17, 0.0  ;;  %v7899_v5 = vmul.f32 0.01, %v7771_v17 }
 0x5fa   : > { %v9003_v31 = vadd.f32 %v7469_v7, %v13605_v55  ;;  %v7471_v57 = vpop.f32.mrb[21].mxu1  ;;  %v7962_v34 = vsel %vm7834_vm5, %v7770_v30, %v7898_v49  ;;  %vm7836_vm6 = vcmp.gt.f32.partialorder %v7772_v24, 0.0  ;;  %v7900_v56 = vmul.f32 0.01, %v7772_v24  ;;  %v8029_v55 = vld [vmem:[%s14172_s7 + $0x18] sm:$0xff] }
 0x5fb   : > { %v7901_v35 = vmul.f32 0.01, %v7773_v41  ;;  %v9004_v3 = vadd.f32 %v7471_v57, %v13607_v36  ;;  %v7473_v13 = vpop.f32.mrb[22].mxu1  ;;  %v7963_v58 = vsel %vm7835_vm2, %v7771_v17, %v7899_v5  ;;  %v8090_v8 = vmul.f32 %v8026_v12, %v7962_v34  ;;  %v8028_v17 = vld [vmem:[%s14172_s7 + $0x10] sm:$0xff]  ;;  %v8031_v34 = vld [vmem:[%s14172_s7 + $0x28] sm:$0xff] }
 0x5fc   : > { %v7698_v51 = vmul.f32 %v9003_v31, %v13693_v4  ;;  %v9005_v46 = vadd.f32 %v7473_v13, %v13609_v19  ;;  %v7475_v21 = vpop.f32.mrb[23].mxu1  ;;  %v8091_v26 = vmul.f32 %v8027_v40, %v7963_v58  ;;  %vm7837_vm13 = vcmp.gt.f32.partialorder %v7773_v41, 0.0 }
 0x5fd   : > { %v7699_v30 = vmul.f32 %v9004_v3, %v13695_v54  ;;  %v9006_v49 = vadd.f32 %v7475_v21, %v13611_v23  ;;  %v7964_v7 = vsel %vm7836_vm6, %v7772_v24, %v7900_v56  ;;  %v7965_v36 = vsel %vm7837_vm13, %v7773_v41, %v7901_v35  ;;  %v8030_v41 = vld [vmem:[%s14172_s7 + $0x20] sm:$0xff] }
 0x5fe   : > { %v7774_v12 = vadd.f32 %v13697_v0, %v7698_v51  ;;  %v7700_v19 = vmul.f32 %v9005_v46, %v13693_v4  ;;  %v8155_v58 = vsel %vm8154_vm11, %v8091_v26, 0.0  ;;  %v8093_v31 = vmul.f32 %v8029_v55, %v7965_v36 }
 0x5ff   : > { %v7775_v13 = vadd.f32 %v13699_v39, %v7699_v30  ;;  %v7701_v5 = vmul.f32 %v9006_v49, %v13695_v54  ;;  %v8156_v40 = vadd.f32 %v8155_v58, %v8090_v8  ;;  %v8092_v21 = vmul.f32 %v8028_v17, %v7964_v7  ;;  %v8033_v17 = vld [vmem:[%s14172_s7 + $0x38] sm:$0xff] }
 0x600   : > { %v7776_v23 = vadd.f32 %v13697_v0, %v7700_v19  ;;  %vm7838_vm10 = vcmp.gt.f32.partialorder %v7774_v12, 0.0  ;;  %v7902_v24 = vmul.f32 0.01, %v7774_v12  ;;  %v8159_v26 = vsel %vm8154_vm11, %v8093_v31, 0.0 }
 0x601   : > { %v7777_v51 = vadd.f32 %v13699_v39, %v7701_v5  ;;  %8157 = vadd.xlane.f32.xlu0 %v8156_v40  ;;  %v7479_v46 = vpop.f32.mrb[24].mxu1  ;;  %vm7839_vm7 = vcmp.gt.f32.partialorder %v7775_v13, 0.0  ;;  %v7903_v57 = vmul.f32 0.01, %v7775_v13  ;;  %v8160_v3 = vadd.f32 %v8159_v26, %v8092_v21 }
 0x602   : > { %v9007_v56 = vadd.f32 %v7479_v46, %v13613_v32  ;;  %v7481_v35 = vpop.f32.mrb[25].mxu1  ;;  %v7966_v8 = vsel %vm7838_vm10, %v7774_v12, %v7902_v24  ;;  %vm7840_vm4 = vcmp.gt.f32.partialorder %v7776_v23, 0.0 }
 0x603   : > { %v7905_v55 = vmul.f32 0.01, %v7777_v51  ;;  %v9008_v30 = vadd.f32 %v7481_v35, %v13615_v62  ;;  %v7483_v49 = vpop.f32.mrb[26].mxu1  ;;  %v7967_v7 = vsel %vm7839_vm7, %v7775_v13, %v7903_v57  ;;  %v8094_v36 = vmul.f32 %v8030_v41, %v7966_v8  ;;  %v8032_v13 = vld [vmem:[%s14172_s7 + $0x30] sm:$0xff]  ;;  %v8034_v35 = vld [vmem:[%s14172_s7 + $0x40] sm:$0xff] }
 0x604   : > { %v7702_v19 = vmul.f32 %v9007_v56, %v13693_v4  ;;  %v9009_v58 = vadd.f32 %v7483_v49, %v13617_v9  ;;  %v7485_v5 = vpop.f32.mrb[27].mxu1  ;;  %v8095_v32 = vmul.f32 %v8031_v34, %v7967_v7  ;;  %vm7841_vm1 = vcmp.gt.f32.partialorder %v7777_v51, 0.0 }
 0x605   : > { %v7703_v12 = vmul.f32 %v9008_v30, %v13695_v54  ;;  %v9010_v40 = vadd.f32 %v7485_v5, %v13619_v50  ;;  %8161 = vadd.xlane.f32.xlu0 %v8160_v3  ;;  %v7904_v62 = vmul.f32 0.01, %v7776_v23  ;;  %v7969_v31 = vsel %vm7841_vm1, %v7777_v51, %v7905_v55  ;;  %v8035_v3 = vld [vmem:[%s14172_s7 + $0x48] sm:$0xff] }
 0x606   : > { %v7778_v21 = vadd.f32 %v13697_v0, %v7702_v19  ;;  %v7704_v24 = vmul.f32 %v9009_v58, %v13693_v4  ;;  %v8163_v9 = vsel %vm8154_vm11, %v8095_v32, 0.0  ;;  %v8097_v41 = vmul.f32 %v8033_v17, %v7969_v31 }
 0x607   : > { %v7779_v46 = vadd.f32 %v13699_v39, %v7703_v12  ;;  %v7705_v26 = vmul.f32 %v9010_v40, %v13695_v54  ;;  %v8164_v57 = vadd.f32 %v8163_v9, %v8094_v36  ;;  %v7968_v50 = vsel %vm7840_vm4, %v7776_v23, %v7904_v62 }
 0x608   : > { %v7780_v51 = vadd.f32 %v13697_v0, %v7704_v24  ;;  %v8096_v34 = vmul.f32 %v8032_v13, %v7968_v50  ;;  %v8167_v56 = vsel %vm8154_vm11, %v8097_v41, 0.0  ;;  %vm7842_vm12 = vcmp.gt.f32.partialorder %v7778_v21, 0.0 }
 0x609   : > { %v7907_v8 = vmul.f32 0.01, %v7779_v46  ;;  %v7781_v55 = vadd.f32 %v13699_v39, %v7705_v26  ;;  %8165 = vadd.xlane.f32.xlu1 %v8164_v57  ;;  %v7489_v30 = vpop.f32.mrb[28].mxu1  ;;  %vm7843_vm8 = vcmp.gt.f32.partialorder %v7779_v46, 0.0  ;;  %v7906_v23 = vmul.f32 0.01, %v7778_v21 }
 0x60a   : > { %v9011_v49 = vadd.f32 %v7489_v30, %v13621_v61  ;;  %v7491_v7 = vpop.f32.mrb[29].mxu1  ;;  %v8168_v36 = vadd.f32 %v8167_v56, %v8096_v34  ;;  %vm7844_vm14 = vcmp.gt.f32.partialorder %v7780_v51, 0.0  ;;  %v7908_v17 = vmul.f32 0.01, %v7780_v51  ;;  %v8036_v57 = vld [vmem:[%s14172_s7 + $0x50] sm:$0xff] }
 0x60b   : > { %v7909_v19 = vmul.f32 0.01, %v7781_v55  ;;  %v9012_v58 = vadd.f32 %v7491_v7, %v13623_v43  ;;  %v7493_v5 = vpop.f32.mrb[30].mxu1  ;;  %v7970_v32 = vsel %vm7842_vm12, %v7778_v21, %v7906_v23  ;;  %v7971_v12 = vsel %vm7843_vm8, %v7779_v46, %v7907_v8  ;;  %v8037_v43 = vld [vmem:[%s14172_s7 + $0x58] sm:$0xff]  ;;  %v8038_v23 = vld [vmem:[%s14172_s7 + $0x60] sm:$0xff] }
 0x60c   : > { %v7706_v40 = vmul.f32 %v9011_v49, %v13693_v4  ;;  %v9013_v62 = vadd.f32 %v7493_v5, %v13625_v28  ;;  %v7495_v31 = vpop.f32.mrb[31].mxu1  ;;  %v8098_v13 = vmul.f32 %v8034_v35, %v7970_v32  ;;  %v8099_v24 = vmul.f32 %v8035_v3, %v7971_v12  ;;  %v8039_v49 = vld [vmem:[%s14172_s7 + $0x68] sm:$0xff] }
 0x60d   : > { %v7707_v61 = vmul.f32 %v9012_v58, %v13695_v54  ;;  %v9014_v9 = vadd.f32 %v7495_v31, %v13627_v45  ;;  %8169 = vadd.xlane.f32.xlu1 %v8168_v36  ;;  %vm7845_vm9 = vcmp.gt.f32.partialorder %v7781_v55, 0.0  ;;  %v7972_v41 = vsel %vm7844_vm14, %v7780_v51, %v7908_v17 }
 0x60e   : > { %v7782_v21 = vadd.f32 %v13697_v0, %v7706_v40  ;;  %v7708_v46 = vmul.f32 %v9013_v62, %v13693_v4  ;;  %v8171_v28 = vsel %vm8154_vm11, %v8099_v24, 0.0  ;;  %v7973_v26 = vsel %vm7845_vm9, %v7781_v55, %v7909_v19 }
 0x60f   : > { %v7783_v45 = vadd.f32 %v13699_v39, %v7707_v61  ;;  %v7709_v50 = vmul.f32 %v9014_v9, %v13695_v54  ;;  %v8172_v51 = vadd.f32 %v8171_v28, %v8098_v13  ;;  %v8101_v56 = vmul.f32 %v8037_v43, %v7973_v26  ;;  %v8041_v43 = vld [vmem:[%s14172_s7 + $0x78] sm:$0xff] }
 0x610   : > { %v7784_v34 = vadd.f32 %v13697_v0, %v7708_v46  ;;  %vm7846_vm15 = vcmp.gt.f32.partialorder %v7782_v21, 0.0  ;;  %v7910_v35 = vmul.f32 0.01, %v7782_v21  ;;  %v8100_v55 = vmul.f32 %v8036_v57, %v7972_v41 }
 0x611   : > { %v7911_v3 = vmul.f32 0.01, %v7783_v45  ;;  %v7785_v8 = vadd.f32 %v13699_v39, %v7709_v50  ;;  %8173 = vadd.xlane.f32.xlu0 %v8172_v51  ;;  %v7499_v30 = vpop.f32.mrb[32].mxu1  ;;  %vm7847_vm3 = vcmp.gt.f32.partialorder %v7783_v45, 0.0  ;;  %v8175_v17 = vsel %vm8154_vm11, %v8101_v56, 0.0 }
 0x612   : > { %v9015_v7 = vadd.f32 %v7499_v30, %v13629_v60  ;;  %v7501_v36 = vpop.f32.mrb[33].mxu1  ;;  %v7974_v19 = vsel %vm7846_vm15, %v7782_v21, %v7910_v35  ;;  %vm7848_vm0 = vcmp.gt.f32.partialorder %v7784_v34, 0.0  ;;  %v8176_v32 = vadd.f32 %v8175_v17, %v8100_v55  ;;  %v8042_v35 = vld [vmem:[%s14172_s7 + $0x80] sm:$0xff] }
 0x613   : > { %v7913_v58 = vmul.f32 0.01, %v7785_v8  ;;  %v9016_v5 = vadd.f32 %v7501_v36, %v13631_v10  ;;  %v7503_v12 = vpop.f32.mrb[34].mxu1  ;;  %v7975_v40 = vsel %vm7847_vm3, %v7783_v45, %v7911_v3  ;;  %v8102_v24 = vmul.f32 %v8038_v23, %v7974_v19  ;;  %v8040_v10 = vld [vmem:[%s14172_s7 + $0x70] sm:$0xff] }
 0x614   : > { %v7710_v62 = vmul.f32 %v9015_v7, %v13693_v4  ;;  %v9017_v31 = vadd.f32 %v7503_v12, %v13633_v1  ;;  %v7505_v13 = vpop.f32.mrb[35].mxu1  ;;  %v8103_v61 = vmul.f32 %v8039_v49, %v7975_v40  ;;  %8177 = vadd.xlane.f32.xlu1 %v8176_v32  ;;  %vm7849_vm5 = vcmp.gt.f32.partialorder %v7785_v8, 0.0  ;;  %v8043_v7 = vld [vmem:[%s14172_s7 + $0x88] sm:$0xff] }
 0x615   : > { %v7711_v60 = vmul.f32 %v9016_v5, %v13695_v54  ;;  %v9018_v9 = vadd.f32 %v7505_v13, %v13635_v15  ;;  %v7912_v41 = vmul.f32 0.01, %v7784_v34  ;;  %v7977_v28 = vsel %vm7849_vm5, %v7785_v8, %v7913_v58  ;;  %v8044_v13 = vld [vmem:[%s14172_s7 + $0x90] sm:$0xff] }
 0x616   : > { %v7786_v1 = vadd.f32 %v13697_v0, %v7710_v62  ;;  %v7712_v21 = vmul.f32 %v9017_v31, %v13693_v4  ;;  %v8179_v46 = vsel %vm8154_vm11, %v8103_v61, 0.0  ;;  %v8105_v56 = vmul.f32 %v8041_v43, %v7977_v28 }
 0x617   : > { %v7787_v26 = vadd.f32 %v13699_v39, %v7711_v60  ;;  %v7713_v15 = vmul.f32 %v9018_v9, %v13695_v54  ;;  %v8180_v57 = vadd.f32 %v8179_v46, %v8102_v24  ;;  %v7976_v45 = vsel %vm7848_vm0, %v7784_v34, %v7912_v41  ;;  %v8045_v60 = vld [vmem:[%s14172_s7 + $0x98] sm:$0xff] }
 0x618   : > { %v7788_v50 = vadd.f32 %v13697_v0, %v7712_v21  ;;  %v8104_v51 = vmul.f32 %v8040_v10, %v7976_v45  ;;  %vm7850_vm2 = vcmp.gt.f32.partialorder %v7786_v1, 0.0  ;;  %v7914_v55 = vmul.f32 0.01, %v7786_v1 }
 0x619   : > { %v7915_v3 = vmul.f32 0.01, %v7787_v26  ;;  %v7789_v30 = vadd.f32 %v13699_v39, %v7713_v15  ;;  %8181 = vadd.xlane.f32.xlu0 %v8180_v57  ;;  %v7509_v8 = vpop.f32.mrb[36].mxu1  ;;  %vm7851_vm6 = vcmp.gt.f32.partialorder %v7787_v26, 0.0  ;;  %v8183_v34 = vsel %vm8154_vm11, %v8105_v56, 0.0  ;;  %v8046_v15 = vld [vmem:[%s14172_s7 + $0xa0] sm:$0xff] }
 0x61a   : > { %v9019_v23 = vadd.f32 %v7509_v8, %v13637_v52  ;;  %v7511_v49 = vpop.f32.mrb[37].mxu1  ;;  %vm7852_vm13 = vcmp.gt.f32.partialorder %v7788_v50, 0.0  ;;  %v7916_v36 = vmul.f32 0.01, %v7788_v50  ;;  %v8184_v58 = vadd.f32 %v8183_v34, %v8104_v51 }
 0x61b   : > { %v7917_v17 = vmul.f32 0.01, %v7789_v30  ;;  %v9020_v19 = vadd.f32 %v7511_v49, %v13639_v29  ;;  %v7513_v5 = vpop.f32.mrb[38].mxu1  ;;  %v7978_v32 = vsel %vm7850_vm2, %v7786_v1, %v7914_v55  ;;  %v7979_v62 = vsel %vm7851_vm6, %v7787_v26, %v7915_v3 }
 0x61c   : > { %v7714_v12 = vmul.f32 %v9019_v23, %v13693_v4  ;;  %v9021_v52 = vadd.f32 %v7513_v5, %v13641_v18  ;;  %v7515_v40 = vpop.f32.mrb[39].mxu1  ;;  %v8106_v31 = vmul.f32 %v8042_v35, %v7978_v32  ;;  %8185 = vadd.xlane.f32.xlu1 %v8184_v58  ;;  %v8107_v61 = vmul.f32 %v8043_v7, %v7979_v62  ;;  %v8048_v5 = vld [vmem:[%s14172_s7 + $0xb0] sm:$0xff] }
 0x61d   : > { %v7715_v24 = vmul.f32 %v9020_v19, %v13695_v54  ;;  %v9022_v29 = vadd.f32 %v7515_v40, %v13643_v25  ;;  %vm7853_vm10 = vcmp.gt.f32.partialorder %v7789_v30, 0.0  ;;  %v7980_v41 = vsel %vm7852_vm13, %v7788_v50, %v7916_v36 }
 0x61e   : > { %v7790_v18 = vadd.f32 %v13697_v0, %v7714_v12  ;;  %v7716_v9 = vmul.f32 %v9021_v52, %v13693_v4  ;;  %v7981_v10 = vsel %vm7853_vm10, %v7789_v30, %v7917_v17  ;;  %v8187_v21 = vsel %vm8154_vm11, %v8107_v61, 0.0  ;;  %v8047_v30 = vld [vmem:[%s14172_s7 + $0xa8] sm:$0xff]  ;;  %v8049_v52 = vld [vmem:[%s14172_s7 + $0xb8] sm:$0xff] }
 0x61f   : > { %v7791_v43 = vadd.f32 %v13699_v39, %v7715_v24  ;;  %v7717_v1 = vmul.f32 %v9022_v29, %v13695_v54  ;;  %v8108_v25 = vmul.f32 %v8044_v13, %v7980_v41  ;;  %v8188_v28 = vadd.f32 %v8187_v21, %v8106_v31 }
 0x620   : > { %v7792_v46 = vadd.f32 %v13697_v0, %v7716_v9  ;;  %v8109_v26 = vmul.f32 %v8045_v60, %v7981_v10  ;;  %vm7854_vm7 = vcmp.gt.f32.partialorder %v7790_v18, 0.0  ;;  %v7918_v51 = vmul.f32 0.01, %v7790_v18  ;;  %v8050_v9 = vld [vmem:[%s14172_s7 + $0xc0] sm:$0xff] }
 0x621   : > { %v7919_v57 = vmul.f32 0.01, %v7791_v43  ;;  %v7793_v45 = vadd.f32 %v13699_v39, %v7717_v1  ;;  %v7519_v50 = vpop.f32.mrb[40].mxu1  ;;  %vm7855_vm4 = vcmp.gt.f32.partialorder %v7791_v43, 0.0  ;;  %8189 = vadd.xlane.f32.xlu0 %v8188_v28  ;;  %v8051_v28 = vld [vmem:[%s14172_s7 + $0xc8] sm:$0xff] }
 0x622   : > { %v9023_v56 = vadd.f32 %v7519_v50, %v13645_v48  ;;  %v7521_v35 = vpop.f32.mrb[41].mxu1  ;;  %v8191_v3 = vsel %vm8154_vm11, %v8109_v26, 0.0  ;;  %vm7856_vm1 = vcmp.gt.f32.partialorder %v7792_v46, 0.0  ;;  %v7920_v8 = vmul.f32 0.01, %v7792_v46 }
 0x623   : > { %v7921_v55 = vmul.f32 0.01, %v7793_v45  ;;  %v9024_v23 = vadd.f32 %v7521_v35, %v13647_v63  ;;  %v8192_v49 = vadd.f32 %v8191_v3, %v8108_v25  ;;  %v7523_v34 = vpop.f32.mrb[42].mxu1  ;;  %v7982_v7 = vsel %vm7854_vm7, %v7790_v18, %v7918_v51 }
 0x624   : > { %v7718_v36 = vmul.f32 %v9023_v56, %v13693_v4  ;;  %v9025_v48 = vadd.f32 %v7523_v34, %v13649_v20  ;;  %v7525_v17 = vpop.f32.mrb[43].mxu1  ;;  %v7983_v19 = vsel %vm7855_vm4, %v7791_v43, %v7919_v57  ;;  %v8110_v58 = vmul.f32 %v8046_v15, %v7982_v7 }
 0x625   : > { %v7719_v32 = vmul.f32 %v9024_v23, %v13695_v54  ;;  %8193 = vadd.xlane.f32.xlu1 %v8192_v49  ;;  %v9026_v63 = vadd.f32 %v7525_v17, %v13651_v59  ;;  %v8111_v12 = vmul.f32 %v8047_v30, %v7983_v19  ;;  %vm7857_vm12 = vcmp.gt.f32.partialorder %v7793_v45, 0.0  ;;  %v8053_v49 = vld [vmem:[%s14172_s7 + $0xd8] sm:$0xff] }
 0x626   : > { %v7794_v20 = vadd.f32 %v13697_v0, %v7718_v36  ;;  %v7720_v40 = vmul.f32 %v9025_v48, %v13693_v4  ;;  %v7984_v62 = vsel %vm7856_vm1, %v7792_v46, %v7920_v8  ;;  %v7985_v31 = vsel %vm7857_vm12, %v7793_v45, %v7921_v55  ;;  %v8052_v8 = vld [vmem:[%s14172_s7 + $0xd0] sm:$0xff] }
 0x627   : > { %v7795_v13 = vadd.f32 %v13699_v39, %v7719_v32  ;;  %v7721_v24 = vmul.f32 %v9026_v63, %v13695_v54  ;;  %v8195_v29 = vsel %vm8154_vm11, %v8111_v12, 0.0  ;;  %v8112_v59 = vmul.f32 %v8048_v5, %v7984_v62  ;;  %v8054_v63 = vld [vmem:[%s14172_s7 + $0xe0] sm:$0xff] }
 0x628   : > { %v7796_v61 = vadd.f32 %v13697_v0, %v7720_v40  ;;  %v8196_v60 = vadd.f32 %v8195_v29, %v8110_v58  ;;  %v8113_v18 = vmul.f32 %v8049_v52, %v7985_v31  ;;  %vm7858_vm8 = vcmp.gt.f32.partialorder %v7794_v20, 0.0 }
 0x629   : > { %v7923_v41 = vmul.f32 0.01, %v7795_v13  ;;  %v7797_v10 = vadd.f32 %v13699_v39, %v7721_v24  ;;  %v7529_v43 = vpop.f32.mrb[44].mxu1  ;;  %vm7859_vm14 = vcmp.gt.f32.partialorder %v7795_v13, 0.0  ;;  %v7922_v1 = vmul.f32 0.01, %v7794_v20 }
 0x62a   : > { %8197 = vadd.xlane.f32.xlu0 %v8196_v60  ;;  %v9027_v21 = vadd.f32 %v7529_v43, %v13653_v14  ;;  %v7531_v25 = vpop.f32.mrb[45].mxu1  ;;  %v8199_v46 = vsel %vm8154_vm11, %v8113_v18, 0.0  ;;  %vm7860_vm9 = vcmp.gt.f32.partialorder %v7796_v61, 0.0  ;;  %v7924_v26 = vmul.f32 0.01, %v7796_v61  ;;  %v8055_v24 = vld [vmem:[%s14172_s7 + $0xe8] sm:$0xff] }
 0x62b   : > { %v7925_v15 = vmul.f32 0.01, %v7797_v10  ;;  %v9028_v57 = vadd.f32 %v7531_v25, %v13655_v16  ;;  %v8200_v45 = vadd.f32 %v8199_v46, %v8112_v59  ;;  %v7533_v50 = vpop.f32.mrb[46].mxu1  ;;  %v7986_v51 = vsel %vm7858_vm8, %v7794_v20, %v7922_v1 }
 0x62c   : > { %v7722_v56 = vmul.f32 %v9027_v21, %v13693_v4  ;;  %v9029_v14 = vadd.f32 %v7533_v50, %v13657_v47  ;;  %v7535_v35 = vpop.f32.mrb[47].mxu1  ;;  %v7987_v3 = vsel %vm7859_vm14, %v7795_v13, %v7923_v41  ;;  %v8114_v30 = vmul.f32 %v8050_v9, %v7986_v51  ;;  %v8056_v21 = vld [vmem:[%s14172_s7 + $0xf0] sm:$0xff] }
 0x62d   : > { %v7723_v55 = vmul.f32 %v9028_v57, %v13695_v54  ;;  %8201 = vadd.xlane.f32.xlu1 %v8200_v45  ;;  %v9030_v16 = vadd.f32 %v7535_v35, %v13659_v6  ;;  %v8115_v23 = vmul.f32 %v8051_v28, %v7987_v3  ;;  %vm7861_vm15 = vcmp.gt.f32.partialorder %v7797_v10, 0.0  ;;  %v8057_v28 = vld [vmem:[%s14172_s7 + $0xf8] sm:$0xff]  ;;  %v8058_v3 = vld [vmem:[%s14172_s7 + $0x100] sm:$0xff] }
 0x62e   : > { %v7798_v47 = vadd.f32 %v13697_v0, %v7722_v56  ;;  %v7724_v34 = vmul.f32 %v9029_v14, %v13693_v4  ;;  %v7988_v7 = vsel %vm7860_vm9, %v7796_v61, %v7924_v26  ;;  %v7989_v36 = vsel %vm7861_vm15, %v7797_v10, %v7925_v15 }
 0x62f   : > { %v7799_v48 = vadd.f32 %v13699_v39, %v7723_v55  ;;  %v7725_v17 = vmul.f32 %v9030_v16, %v13695_v54  ;;  %v8203_v19 = vsel %vm8154_vm11, %v8115_v23, 0.0  ;;  %v8116_v6 = vmul.f32 %v8052_v8, %v7988_v7 }
 0x630   : > { %v7800_v58 = vadd.f32 %v13697_v0, %v7724_v34  ;;  %v8204_v5 = vadd.f32 %v8203_v19, %v8114_v30  ;;  %v8117_v32 = vmul.f32 %v8053_v49, %v7989_v36  ;;  %vm7862_vm3 = vcmp.gt.f32.partialorder %v7798_v47, 0.0  ;;  %v8059_v34 = vld [vmem:[%s14172_s7 + $0x108] sm:$0xff] }
 0x631   : > { %v7927_v12 = vmul.f32 0.01, %v7799_v48  ;;  %v7801_v52 = vadd.f32 %v13699_v39, %v7725_v17  ;;  %v7539_v20 = vpop.f32.mrb[48].mxu1  ;;  %vm7863_vm0 = vcmp.gt.f32.partialorder %v7799_v48, 0.0  ;;  %v7926_v40 = vmul.f32 0.01, %v7798_v47 }
 0x632   : > { %8205 = vadd.xlane.f32.xlu0 %v8204_v5  ;;  %v9031_v62 = vadd.f32 %v7539_v20, %v13661_v44  ;;  %v7541_v31 = vpop.f32.mrb[49].mxu1  ;;  %v8207_v13 = vsel %vm8154_vm11, %v8117_v32, 0.0  ;;  %vm7864_vm5 = vcmp.gt.f32.partialorder %v7800_v58, 0.0  ;;  %v7928_v29 = vmul.f32 0.01, %v7800_v58 }
 0x633   : > { %v7929_v59 = vmul.f32 0.01, %v7801_v52  ;;  %v9032_v61 = vadd.f32 %v7541_v31, %v13663_v42  ;;  %v8208_v60 = vadd.f32 %v8207_v13, %v8116_v6  ;;  %v7543_v18 = vpop.f32.mrb[50].mxu1  ;;  %v7990_v9 = vsel %vm7862_vm3, %v7798_v47, %v7926_v40  ;;  %v8061_v40 = vld [vmem:[%s14172_s7 + $0x118] sm:$0xff] }
 0x634   : > { %v7726_v41 = vmul.f32 %v9031_v62, %v13693_v4  ;;  %v9033_v44 = vadd.f32 %v7543_v18, %v13665_v22  ;;  %v7545_v10 = vpop.f32.mrb[51].mxu1  ;;  %v7991_v43 = vsel %vm7863_vm0, %v7799_v48, %v7927_v12  ;;  %v8118_v1 = vmul.f32 %v8054_v63, %v7990_v9  ;;  %v8060_v12 = vld [vmem:[%s14172_s7 + $0x110] sm:$0xff]  ;;  %v8062_v9 = vld [vmem:[%s14172_s7 + $0x120] sm:$0xff] }
 0x635   : > { %v7727_v25 = vmul.f32 %v9032_v61, %v13695_v54  ;;  %8209 = vadd.xlane.f32.xlu1 %v8208_v60  ;;  %v9034_v42 = vadd.f32 %v7545_v10, %v13667_v11  ;;  %v8119_v46 = vmul.f32 %v8055_v24, %v7991_v43  ;;  %vm7865_vm2 = vcmp.gt.f32.partialorder %v7801_v52, 0.0 }
 0x636   : > { %v7802_v22 = vadd.f32 %v13697_v0, %v7726_v41  ;;  %v7728_v26 = vmul.f32 %v9033_v44, %v13693_v4  ;;  %v7992_v15 = vsel %vm7864_vm5, %v7800_v58, %v7928_v29  ;;  %v7993_v57 = vsel %vm7865_vm2, %v7801_v52, %v7929_v59 }
 0x637   : > { %v7803_v45 = vadd.f32 %v13699_v39, %v7727_v25  ;;  %v7729_v50 = vmul.f32 %v9034_v42, %v13695_v54  ;;  %v8211_v51 = vsel %vm8154_vm11, %v8119_v46, 0.0  ;;  %v8120_v11 = vmul.f32 %v8056_v21, %v7992_v15  ;;  %v8063_v42 = vld [vmem:[%s14172_s7 + $0x128] sm:$0xff] }
 0x638   : > { %v7804_v56 = vadd.f32 %v13697_v0, %v7728_v26  ;;  %v8212_v14 = vadd.f32 %v8211_v51, %v8118_v1  ;;  %v8121_v35 = vmul.f32 %v8057_v28, %v7993_v57  ;;  %vm7866_vm6 = vcmp.gt.f32.partialorder %v7802_v22, 0.0 }
 0x639   : > { %v7931_v30 = vmul.f32 0.01, %v7803_v45  ;;  %v7805_v8 = vadd.f32 %v13699_v39, %v7729_v50  ;;  %v7549_v55 = vpop.f32.mrb[52].mxu1  ;;  %vm7867_vm13 = vcmp.gt.f32.partialorder %v7803_v45, 0.0  ;;  %v7930_v16 = vmul.f32 0.01, %v7802_v22 }
 0x63a   : > { %8213 = vadd.xlane.f32.xlu0 %v8212_v14  ;;  %v9035_v23 = vadd.f32 %v7549_v55, %v13669_v37  ;;  %v7551_v49 = vpop.f32.mrb[53].mxu1  ;;  %v8215_v47 = vsel %vm8154_vm11, %v8121_v35, 0.0  ;;  %vm7868_vm10 = vcmp.gt.f32.partialorder %v7804_v56, 0.0  ;;  %v7932_v7 = vmul.f32 0.01, %v7804_v56  ;;  %v14723_v50 = vld [vmem:[#allocation19_spill] sm:$0xff] }
 0x63b   : > { %v7933_v36 = vmul.f32 0.01, %v7805_v8  ;;  %v9036_v48 = vadd.f32 %v7551_v49, %v13671_v27  ;;  %v8216_v17 = vadd.f32 %v8215_v47, %v8120_v11  ;;  %v7553_v19 = vpop.f32.mrb[54].mxu1  ;;  %v7994_v6 = vsel %vm7866_vm6, %v7802_v22, %v7930_v16  ;;  %v8064_v14 = vld [vmem:[%s14172_s7 + $0x130] sm:$0xff] }
 0x63c   : > { %v7730_v58 = vmul.f32 %v9035_v23, %v13693_v4  ;;  %v9037_v37 = vadd.f32 %v7553_v19, %v13673_v53  ;;  %v7555_v5 = vpop.f32.mrb[55].mxu1  ;;  %v7995_v32 = vsel %vm7867_vm13, %v7803_v45, %v7931_v30  ;;  %v8122_v63 = vmul.f32 %v8058_v3, %v7994_v6  ;;  %v8066_v6 = vld [vmem:[%s14172_s7 + $0x140] sm:$0xff] }
 0x63d   : > { %v7731_v52 = vmul.f32 %v9036_v48, %v13695_v54  ;;  %8217 = vadd.xlane.f32.xlu1 %v8216_v17  ;;  %v9038_v27 = vadd.f32 %v7555_v5, %v13675_v33  ;;  %v8123_v20 = vmul.f32 %v8059_v34, %v7995_v32  ;;  %vm7869_vm7 = vcmp.gt.f32.partialorder %v7805_v8, 0.0 }
 0x63e   : > { %v7806_v53 = vadd.f32 %v13697_v0, %v7730_v58  ;;  %v7732_v62 = vmul.f32 %v9037_v37, %v13693_v4  ;;  %v7996_v31 = vsel %vm7868_vm10, %v7804_v56, %v7932_v7  ;;  %v7997_v13 = vsel %vm7869_vm7, %v7805_v8, %v7933_v36  ;;  %v8065_v8 = vld [vmem:[%s14172_s7 + $0x138] sm:$0xff] }
 0x63f   : > { %v7807_v24 = vadd.f32 %v13699_v39, %v7731_v52  ;;  %v7733_v29 = vmul.f32 %v9038_v27, %v13695_v54  ;;  %v8219_v59 = vsel %vm8154_vm11, %v8123_v20, 0.0  ;;  %v8124_v33 = vmul.f32 %v8060_v12, %v7996_v31  ;;  %v8067_v20 = vld [vmem:[%s14172_s7 + $0x148] sm:$0xff] }
 0x640   : > { %v7808_v61 = vadd.f32 %v13697_v0, %v7732_v62  ;;  %v8220_v60 = vadd.f32 %v8219_v59, %v8122_v63  ;;  %v8125_v18 = vmul.f32 %v8061_v40, %v7997_v13  ;;  %vm7870_vm4 = vcmp.gt.f32.partialorder %v7806_v53, 0.0  ;;  %v14725_v63 = vld [vmem:[#allocation21_spill] sm:$0xff]  ;;  %v14726_v62 = vld [vmem:[#allocation22_spill] sm:$0xff] }
 0x641   : > { %v7935_v41 = vmul.f32 0.01, %v7807_v24  ;;  %v7809_v44 = vadd.f32 %v13699_v39, %v7733_v29  ;;  %v7559_v10 = vpop.f32.mrb[56].mxu1  ;;  %vm7871_vm1 = vcmp.gt.f32.partialorder %v7807_v24, 0.0  ;;  %v7934_v43 = vmul.f32 0.01, %v7806_v53 }
 0x642   : > { %8221 = vadd.xlane.f32.xlu0 %v8220_v60  ;;  %v9039_v1 = vadd.f32 %v7559_v10, %v13677_v38  ;;  %v7561_v21 = vpop.f32.mrb[57].mxu1  ;;  %v8223_v25 = vsel %vm8154_vm11, %v8125_v18, 0.0  ;;  %vm7872_vm12 = vcmp.gt.f32.partialorder %v7808_v61, 0.0  ;;  %v7936_v46 = vmul.f32 0.01, %v7808_v61  ;;  %v14728_v10 = vld [vmem:[#allocation24_spill] sm:$0xff] }
 0x643   : > { %v7937_v28 = vmul.f32 0.01, %v7809_v44  ;;  %v9040_v22 = vadd.f32 %v7561_v21, %v13679_v2  ;;  %v8224_v26 = vadd.f32 %v8223_v25, %v8124_v33  ;;  %v7563_v15 = vpop.f32.mrb[58].mxu1  ;;  %v7998_v57 = vsel %vm7870_vm4, %v7806_v53, %v7934_v43  ;;  %v14724_v2 = vld [vmem:[#allocation20_spill] sm:$0xff]  ;;  %v14727_v33 = vld [vmem:[#allocation23_spill] sm:$0xff] }
 0x644   : > { %v7734_v45 = vmul.f32 %v9039_v1, %v13693_v4  ;;  %v9041_v38 = vadd.f32 %v7563_v15, %v14723_v50  ;;  %v7565_v51 = vpop.f32.mrb[59].mxu1  ;;  %v7999_v11 = vsel %vm7871_vm1, %v7807_v24, %v7935_v41  ;;  %v8126_v56 = vmul.f32 %v8062_v9, %v7998_v57  ;;  %v8068_v41 = vld [vmem:[%s14172_s7 + $0x150] sm:$0xff]  ;;  %v8069_v21 = vld [vmem:[%s14172_s7 + $0x158] sm:$0xff] }
 0x645   : > { %v7735_v35 = vmul.f32 %v9040_v22, %v13695_v54  ;;  %8225 = vadd.xlane.f32.xlu1 %v8224_v26  ;;  %v9042_v3 = vadd.f32 %v7565_v51, %v14724_v2  ;;  %v8127_v30 = vmul.f32 %v8063_v42, %v7999_v11  ;;  %vm7873_vm8 = vcmp.gt.f32.partialorder %v7809_v44, 0.0  ;;  %v8070_v51 = vld [vmem:[%s14172_s7 + $0x160] sm:$0xff]  ;;  %v14729_v2 = vld [vmem:[#allocation3_spill] sm:$0xff] }
 0x646   : > { %v7810_v55 = vadd.f32 %v13697_v0, %v7734_v45  ;;  %v7736_v16 = vmul.f32 %v9041_v38, %v13693_v4  ;;  %v8000_v23 = vsel %vm7872_vm12, %v7808_v61, %v7936_v46  ;;  %v8001_v49 = vsel %vm7873_vm8, %v7809_v44, %v7937_v28 }
 0x647   : > { %v7811_v47 = vadd.f32 %v13699_v39, %v7735_v35  ;;  %v7737_v34 = vmul.f32 %v9042_v3, %v13695_v54  ;;  %v8227_v7 = vsel %vm8154_vm11, %v8127_v30, 0.0  ;;  %v8128_v36 = vmul.f32 %v8064_v14, %v8000_v23 }
 0x648   : > { %v7812_v48 = vadd.f32 %v13697_v0, %v7736_v16  ;;  %v8228_v17 = vadd.f32 %v8227_v7, %v8126_v56  ;;  %v8129_v19 = vmul.f32 %v8065_v8, %v8001_v49  ;;  %vm7874_vm14 = vcmp.gt.f32.partialorder %v7810_v55, 0.0  ;;  %v14730_v49 = vld [vmem:[#allocation4_spill] sm:$0xff] }
 0x649   : > { %v7939_v58 = vmul.f32 0.01, %v7811_v47  ;;  %v7813_v37 = vadd.f32 %v13699_v39, %v7737_v34  ;;  %v7569_v5 = vpop.f32.mrb[60].mxu1  ;;  %vm7875_vm9 = vcmp.gt.f32.partialorder %v7811_v47, 0.0  ;;  %v7938_v32 = vmul.f32 0.01, %v7810_v55 }
 0x64a   : > { %8229 = vadd.xlane.f32.xlu0 %v8228_v17  ;;  %v9043_v12 = vadd.f32 %v7569_v5, %v14725_v63  ;;  %v7571_v52 = vpop.f32.mrb[61].mxu1  ;;  %v8231_v27 = vsel %vm8154_vm11, %v8129_v19, 0.0  ;;  %vm7876_vm15 = vcmp.gt.f32.partialorder %v7812_v48, 0.0  ;;  %v7940_v40 = vmul.f32 0.01, %v7812_v48  ;;  %v14731_v17 = vld [vmem:[#allocation5_spill] sm:$0xff] }
 0x64b   : > { %v7941_v53 = vmul.f32 0.01, %v7813_v37  ;;  %v9044_v31 = vadd.f32 %v7571_v52, %v14726_v62  ;;  %v8232_v13 = vadd.f32 %v8231_v27, %v8128_v36  ;;  %v7573_v24 = vpop.f32.mrb[62].mxu1  ;;  %v8002_v29 = vsel %vm7874_vm14, %v7810_v55, %v7938_v32  ;;  %v8071_v55 = vld [vmem:[%s14172_s7 + $0x168] sm:$0xff]  ;;  %v8072_v5 = vld [vmem:[%s14172_s7 + $0x170] sm:$0xff]  ;;  %v8073_v27 = vld [vmem:[%s14172_s7 + $0x178] sm:$0xff] }
 0x64c   : > { %v7738_v59 = vmul.f32 %v9043_v12, %v13693_v4  ;;  %v9045_v61 = vadd.f32 %v7573_v24, %v14727_v33  ;;  %v7575_v60 = vpop.f32.mrb[63].mxu1  ;;  %v8003_v18 = vsel %vm7875_vm9, %v7811_v47, %v7939_v58  ;;  %v8130_v9 = vmul.f32 %v8066_v6, %v8002_v29  ;;  %v14732_v63 = vld [vmem:[#allocation6_spill] sm:$0xff] }
 0x64d   : > { %v7739_v44 = vmul.f32 %v9044_v31, %v13695_v54  ;;  %8233 = vadd.xlane.f32.xlu1 %v8232_v13  ;;  %v9046_v43 = vadd.f32 %v7575_v60, %v14728_v10  ;;  %v8131_v1 = vmul.f32 %v8067_v20, %v8003_v18  ;;  %vm7877_vm3 = vcmp.gt.f32.partialorder %v7813_v37, 0.0  ;;  %v8074_v60 = vld [vmem:[%s14172_s7 + $0x180] sm:$0xff]  ;;  %v14733_v10 = vld [vmem:[#allocation7_spill] sm:$0xff] }
 0x64e   : > { %v7814_v25 = vadd.f32 %v13697_v0, %v7738_v59  ;;  %v7740_v42 = vmul.f32 %v9045_v61, %v13693_v4  ;;  %v8004_v46 = vsel %vm7876_vm15, %v7812_v48, %v7940_v40  ;;  %v8005_v28 = vsel %vm7877_vm3, %v7813_v37, %v7941_v53 }
 0x64f   : > { %v7815_v22 = vadd.f32 %v13699_v39, %v7739_v44  ;;  %v7741_v26 = vmul.f32 %v9046_v43, %v13695_v54  ;;  %v8235_v15 = vsel %vm8154_vm11, %v8131_v1, 0.0  ;;  %v8132_v57 = vmul.f32 %v8068_v41, %v8004_v46 }
 0x650   : > { %v7816_v45 = vadd.f32 %v13697_v0, %v7740_v42  ;;  %v8236_v50 = vadd.f32 %v8235_v15, %v8130_v9  ;;  %v8133_v38 = vmul.f32 %v8069_v21, %v8005_v28  ;;  %vm7878_vm0 = vcmp.gt.f32.partialorder %v7814_v25, 0.0  ;;  %v14734_v28 = vld [vmem:[#allocation8_spill] sm:$0xff] }
 0x651   : > { %v7943_v11 = vmul.f32 0.01, %v7815_v22  ;;  %v7817_v56 = vadd.f32 %v13699_v39, %v7741_v26  ;;  %v7579_v14 = vpop.f32.mrb[0].mxu1  ;;  %vm7879_vm5 = vcmp.gt.f32.partialorder %v7815_v22, 0.0  ;;  %v7942_v35 = vmul.f32 0.01, %v7814_v25 }
 0x652   : > { %8237 = vadd.xlane.f32.xlu0 %v8236_v50  ;;  %v9047_v3 = vadd.f32 %v7579_v14, %v14729_v2  ;;  %v7581_v30 = vpop.f32.mrb[1].mxu1  ;;  %v8239_v8 = vsel %vm8154_vm11, %v8133_v38, 0.0  ;;  %vm7880_vm2 = vcmp.gt.f32.partialorder %v7816_v45, 0.0  ;;  %v7944_v16 = vmul.f32 0.01, %v7816_v45  ;;  %v14735_v50 = vld [vmem:[#allocation9_spill] sm:$0xff] }
 0x653   : > { %v7945_v23 = vmul.f32 0.01, %v7817_v56  ;;  %v9048_v47 = vadd.f32 %v7581_v30, %v14730_v49  ;;  %v8240_v34 = vadd.f32 %v8239_v8, %v8132_v57  ;;  %v7583_v7 = vpop.f32.mrb[2].mxu1  ;;  %v8006_v36 = vsel %vm7878_vm0, %v7814_v25, %v7942_v35  ;;  %v8075_v25 = vld [vmem:[%s14172_s7 + $0x188] sm:$0xff]  ;;  %v8076_v14 = vld [vmem:[%s14172_s7 + $0x190] sm:$0xff]  ;;  %v8077_v8 = vld [vmem:[%s14172_s7 + $0x198] sm:$0xff] }
 0x654   : > { %v7742_v48 = vmul.f32 %v9047_v3, %v13693_v4  ;;  %v9049_v19 = vadd.f32 %v7583_v7, %v14731_v17  ;;  %v7585_v6 = vpop.f32.mrb[3].mxu1  ;;  %v8007_v58 = vsel %vm7879_vm5, %v7815_v22, %v7943_v11  ;;  %v8134_v37 = vmul.f32 %v8070_v51, %v8006_v36  ;;  %v14736_v2 = vld [vmem:[#allocation10_spill] sm:$0xff] }
 0x655   : > { %v7743_v32 = vmul.f32 %v9048_v47, %v13695_v54  ;;  %8241 = vadd.xlane.f32.xlu1 %v8240_v34  ;;  %v9050_v12 = vadd.f32 %v7585_v6, %v14732_v63  ;;  %v8135_v52 = vmul.f32 %v8071_v55, %v8007_v58  ;;  %vm7881_vm6 = vcmp.gt.f32.partialorder %v7817_v56, 0.0  ;;  %v8078_v6 = vld [vmem:[%s14172_s7 + $0x1a0] sm:$0xff]  ;;  %v14737_v63 = vld [vmem:[#allocation11_spill] sm:$0xff] }
 0x656   : > { %v7818_v20 = vadd.f32 %v13697_v0, %v7742_v48  ;;  %v7744_v40 = vmul.f32 %v9049_v19, %v13693_v4  ;;  %v8008_v53 = vsel %vm7880_vm2, %v7816_v45, %v7944_v16  ;;  %v8009_v62 = vsel %vm7881_vm6, %v7817_v56, %v7945_v23 }
 0x657   : > { %v7819_v31 = vadd.f32 %v13699_v39, %v7743_v32  ;;  %v7745_v13 = vmul.f32 %v9050_v12, %v13695_v54  ;;  %v8243_v24 = vsel %vm8154_vm11, %v8135_v52, 0.0  ;;  %v8136_v29 = vmul.f32 %v8072_v5, %v8008_v53 }
 0x658   : > { %v7820_v59 = vadd.f32 %v13697_v0, %v7744_v40  ;;  %v8244_v33 = vadd.f32 %v8243_v24, %v8134_v37  ;;  %v8137_v61 = vmul.f32 %v8073_v27, %v8009_v62  ;;  %vm7882_vm13 = vcmp.gt.f32.partialorder %v7818_v20, 0.0  ;;  %v14738_v62 = vld [vmem:[#allocation12_spill] sm:$0xff] }
 0x659   : > { %v7947_v18 = vmul.f32 0.01, %v7819_v31  ;;  %v7821_v9 = vadd.f32 %v13699_v39, %v7745_v13  ;;  %v7589_v41 = vpop.f32.mrb[4].mxu1  ;;  %vm7883_vm10 = vcmp.gt.f32.partialorder %v7819_v31, 0.0  ;;  %v7946_v44 = vmul.f32 0.01, %v7818_v20 }
 0x65a   : > { %8245 = vadd.xlane.f32.xlu0 %v8244_v33  ;;  %v9051_v43 = vadd.f32 %v7589_v41, %v14733_v10  ;;  %v7591_v1 = vpop.f32.mrb[5].mxu1  ;;  %v8247_v21 = vsel %vm8154_vm11, %v8137_v61, 0.0  ;;  %vm7884_vm7 = vcmp.gt.f32.partialorder %v7820_v59, 0.0  ;;  %v7948_v42 = vmul.f32 0.01, %v7820_v59  ;;  %v14739_v33 = vld [vmem:[#allocation13_spill] sm:$0xff] }
 0x65b   : > { %v7949_v46 = vmul.f32 0.01, %v7821_v9  ;;  %v9052_v22 = vadd.f32 %v7591_v1, %v14734_v28  ;;  %v8248_v26 = vadd.f32 %v8247_v21, %v8136_v29  ;;  %v7593_v15 = vpop.f32.mrb[6].mxu1  ;;  %v8010_v57 = vsel %vm7882_vm13, %v7818_v20, %v7946_v44  ;;  %v8079_v20 = vld [vmem:[%s14172_s7 + $0x1a8] sm:$0xff]  ;;  %v8080_v41 = vld [vmem:[%s14172_s7 + $0x1b0] sm:$0xff]  ;;  %v8081_v21 = vld [vmem:[%s14172_s7 + $0x1b8] sm:$0xff] }
 0x65c   : > { %v7746_v45 = vmul.f32 %v9051_v43, %v13693_v4  ;;  %v9053_v38 = vadd.f32 %v7593_v15, %v14735_v50  ;;  %v7595_v51 = vpop.f32.mrb[7].mxu1  ;;  %v8011_v11 = vsel %vm7883_vm10, %v7819_v31, %v7947_v18  ;;  %v8138_v56 = vmul.f32 %v8074_v60, %v8010_v57  ;;  %v14740_v10 = vld [vmem:[#allocation14_spill] sm:$0xff] }
 0x65d   : > { %v7747_v35 = vmul.f32 %v9052_v22, %v13695_v54  ;;  %8249 = vadd.xlane.f32.xlu1 %v8248_v26  ;;  %v9054_v3 = vadd.f32 %v7595_v51, %v14736_v2  ;;  %v8139_v30 = vmul.f32 %v8075_v25, %v8011_v11  ;;  %vm7885_vm4 = vcmp.gt.f32.partialorder %v7821_v9, 0.0  ;;  %v8082_v51 = vld [vmem:[%s14172_s7 + $0x1c0] sm:$0xff]  ;;  %v14741_v2 = vld [vmem:[#allocation15_spill] sm:$0xff] }
 0x65e   : > { %v7822_v55 = vadd.f32 %v13697_v0, %v7746_v45  ;;  %v7748_v16 = vmul.f32 %v9053_v38, %v13693_v4  ;;  %v8012_v23 = vsel %vm7884_vm7, %v7820_v59, %v7948_v42  ;;  %v8013_v49 = vsel %vm7885_vm4, %v7821_v9, %v7949_v46 }
 0x65f   : > { %v7823_v47 = vadd.f32 %v13699_v39, %v7747_v35  ;;  %v7749_v34 = vmul.f32 %v9054_v3, %v13695_v54  ;;  %v8251_v7 = vsel %vm8154_vm11, %v8139_v30, 0.0  ;;  %v8140_v36 = vmul.f32 %v8076_v14, %v8012_v23 }
 0x660   : > { %v7824_v48 = vadd.f32 %v13697_v0, %v7748_v16  ;;  %v8252_v17 = vadd.f32 %v8251_v7, %v8138_v56  ;;  %v8141_v19 = vmul.f32 %v8077_v8, %v8013_v49  ;;  %vm7886_vm1 = vcmp.gt.f32.partialorder %v7822_v55, 0.0  ;;  %v14742_v49 = vld [vmem:[#allocation16_spill] sm:$0xff] }
 0x661   : > { %v7951_v58 = vmul.f32 0.01, %v7823_v47  ;;  %v7825_v37 = vadd.f32 %v13699_v39, %v7749_v34  ;;  %v7599_v5 = vpop.f32.mrb[8].mxu1  ;;  %vm7887_vm12 = vcmp.gt.f32.partialorder %v7823_v47, 0.0  ;;  %v7950_v32 = vmul.f32 0.01, %v7822_v55 }
 0x662   : > { %8253 = vadd.xlane.f32.xlu0 %v8252_v17  ;;  %v9055_v12 = vadd.f32 %v7599_v5, %v14737_v63  ;;  %v7601_v52 = vpop.f32.mrb[9].mxu1  ;;  %v8255_v27 = vsel %vm8154_vm11, %v8141_v19, 0.0  ;;  %vm7888_vm8 = vcmp.gt.f32.partialorder %v7824_v48, 0.0  ;;  %v7952_v40 = vmul.f32 0.01, %v7824_v48  ;;  %v14743_v17 = vld [vmem:[#allocation17_spill] sm:$0xff] }
 0x663   : > { %v7953_v53 = vmul.f32 0.01, %v7825_v37  ;;  %v9056_v31 = vadd.f32 %v7601_v52, %v14738_v62  ;;  %v8256_v13 = vadd.f32 %v8255_v27, %v8140_v36  ;;  %v7603_v24 = vpop.f32.mrb[10].mxu1  ;;  %v8014_v29 = vsel %vm7886_vm1, %v7822_v55, %v7950_v32  ;;  %v8083_v55 = vld [vmem:[%s14172_s7 + $0x1c8] sm:$0xff]  ;;  %v8084_v5 = vld [vmem:[%s14172_s7 + $0x1d0] sm:$0xff]  ;;  %v8085_v27 = vld [vmem:[%s14172_s7 + $0x1d8] sm:$0xff] }
 0x664   : > { %v7750_v59 = vmul.f32 %v9055_v12, %v13693_v4  ;;  %v9057_v61 = vadd.f32 %v7603_v24, %v14739_v33  ;;  %v7605_v60 = vpop.f32.mrb[11].mxu1  ;;  %v8015_v18 = vsel %vm7887_vm12, %v7823_v47, %v7951_v58  ;;  %v8142_v9 = vmul.f32 %v8078_v6, %v8014_v29  ;;  %v14744_v63 = vld [vmem:[#allocation18_spill] sm:$0xff] }
 0x665   : > { %v7751_v44 = vmul.f32 %v9056_v31, %v13695_v54  ;;  %8257 = vadd.xlane.f32.xlu1 %v8256_v13  ;;  %v9058_v43 = vadd.f32 %v7605_v60, %v14740_v10  ;;  %v8143_v1 = vmul.f32 %v8079_v20, %v8015_v18  ;;  %vm7889_vm14 = vcmp.gt.f32.partialorder %v7825_v37, 0.0 }
 0x666   : > { %v7826_v25 = vadd.f32 %v13697_v0, %v7750_v59  ;;  %v7752_v42 = vmul.f32 %v9057_v61, %v13693_v4  ;;  %v8016_v46 = vsel %vm7888_vm8, %v7824_v48, %v7952_v40  ;;  %v8017_v28 = vsel %vm7889_vm14, %v7825_v37, %v7953_v53 }
 0x667   : > { %v7827_v22 = vadd.f32 %v13699_v39, %v7751_v44  ;;  %v7753_v26 = vmul.f32 %v9058_v43, %v13695_v54  ;;  %v8259_v15 = vsel %vm8154_vm11, %v8143_v1, 0.0  ;;  %v8144_v57 = vmul.f32 %v8080_v41, %v8016_v46  ;;  %v8086_v41 = vld [vmem:[%s14172_s7 + $0x1e0] sm:$0xff] }
 0x668   : > { %v7828_v45 = vadd.f32 %v13697_v0, %v7752_v42  ;;  %v8260_v50 = vadd.f32 %v8259_v15, %v8142_v9  ;;  %v8145_v38 = vmul.f32 %v8081_v21, %v8017_v28  ;;  %vm7890_vm9 = vcmp.gt.f32.partialorder %v7826_v25, 0.0  ;;  %v8087_v9 = vld [vmem:[%s14172_s7 + $0x1e8] sm:$0xff]  ;;  %v8088_v42 = vld [vmem:[%s14172_s7 + $0x1f0] sm:$0xff] }
 0x669   : > { %v7955_v11 = vmul.f32 0.01, %v7827_v22  ;;  %v7829_v56 = vadd.f32 %v13699_v39, %v7753_v26  ;;  %v7609_v14 = vpop.f32.mrb[12].mxu1  ;;  %vm7891_vm15 = vcmp.gt.f32.partialorder %v7827_v22, 0.0  ;;  %v7954_v35 = vmul.f32 0.01, %v7826_v25 }
 0x66a   : > { %8261 = vadd.xlane.f32.xlu0 %v8260_v50  ;;  %v9059_v3 = vadd.f32 %v7609_v14, %v14741_v2  ;;  %v7611_v30 = vpop.f32.mrb[13].mxu1  ;;  %v8263_v8 = vsel %vm8154_vm11, %v8145_v38, 0.0  ;;  %vm7892_vm3 = vcmp.gt.f32.partialorder %v7828_v45, 0.0  ;;  %v7956_v16 = vmul.f32 0.01, %v7828_v45 }
 0x66b   : > { %v7957_v23 = vmul.f32 0.01, %v7829_v56  ;;  %v9060_v47 = vadd.f32 %v7611_v30, %v14742_v49  ;;  %v8264_v34 = vadd.f32 %v8263_v8, %v8144_v57  ;;  %v7613_v7 = vpop.f32.mrb[14].mxu1  ;;  %v8018_v36 = vsel %vm7890_vm9, %v7826_v25, %v7954_v35 }
 0x66c   : > { %v7754_v48 = vmul.f32 %v9059_v3, %v13693_v4  ;;  %v9061_v19 = vadd.f32 %v7613_v7, %v14743_v17  ;;  %v7615_v6 = vpop.f32.mrb[15].mxu1  ;;  %v8019_v58 = vsel %vm7891_vm15, %v7827_v22, %v7955_v11  ;;  %v8146_v37 = vmul.f32 %v8082_v51, %v8018_v36 }
 0x66d   : > { %v7755_v32 = vmul.f32 %v9060_v47, %v13695_v54  ;;  %8265 = vadd.xlane.f32.xlu1 %v8264_v34  ;;  %v9062_v12 = vadd.f32 %v7615_v6, %v14744_v63  ;;  %v8147_v52 = vmul.f32 %v8083_v55, %v8019_v58  ;;  %vm7893_vm0 = vcmp.gt.f32.partialorder %v7829_v56, 0.0 }
 0x66e   : > { %v7830_v20 = vadd.f32 %v13697_v0, %v7754_v48  ;;  %v7756_v40 = vmul.f32 %v9061_v19, %v13693_v4  ;;  %v8020_v53 = vsel %vm7892_vm3, %v7828_v45, %v7956_v16  ;;  %v8021_v62 = vsel %vm7893_vm0, %v7829_v56, %v7957_v23 }
 0x66f   : > { %v7831_v31 = vadd.f32 %v13699_v39, %v7755_v32  ;;  %v7757_v13 = vmul.f32 %v9062_v12, %v13695_v54  ;;  %v8267_v24 = vsel %vm8154_vm11, %v8147_v52, 0.0  ;;  %v8148_v29 = vmul.f32 %v8084_v5, %v8020_v53 }
 0x670   : > { %v7832_v59 = vadd.f32 %v13697_v0, %v7756_v40  ;;  %v8268_v33 = vadd.f32 %v8267_v24, %v8146_v37  ;;  %v8149_v61 = vmul.f32 %v8085_v27, %v8021_v62  ;;  %vm7894_vm5 = vcmp.gt.f32.partialorder %v7830_v20, 0.0 }
 0x671   : > { %v7959_v60 = vmul.f32 0.01, %v7831_v31  ;;  %v7833_v18 = vadd.f32 %v13699_v39, %v7757_v13  ;;  %vm7895_vm2 = vcmp.gt.f32.partialorder %v7831_v31, 0.0  ;;  %v7958_v4 = vmul.f32 0.01, %v7830_v20  ;;  %v8089_v39 = vld [vmem:[%s14172_s7 + $0x1f8] sm:$0xff] }
 0x672   : > { %8269 = vadd.xlane.f32.xlu0 %v8268_v33  ;;  %v8271_v54 = vsel %vm8154_vm11, %v8149_v61, 0.0  ;;  %vm7896_vm6 = vcmp.gt.f32.partialorder %v7832_v59, 0.0  ;;  %v7960_v0 = vmul.f32 0.01, %v7832_v59 }
 0x673   : > { %v7961_v44 = vmul.f32 0.01, %v7833_v18  ;;  %v8272_v10 = vadd.f32 %v8271_v54, %v8148_v29  ;;  %v8022_v43 = vsel %vm7894_vm5, %v7830_v20, %v7958_v4  ;;  %v8023_v1 = vsel %vm7895_vm2, %v7831_v31, %v7959_v60 }
 0x674   : > { %v8151_v21 = vmul.f32 %v8087_v9, %v8023_v1  ;;  %vm7897_vm13 = vcmp.gt.f32.partialorder %v7833_v18, 0.0  ;;  %v8024_v25 = vsel %vm7896_vm6, %v7832_v59, %v7960_v0  ;;  %v8150_v46 = vmul.f32 %v8086_v41, %v8022_v43 }
 0x675   : > { %8273 = vadd.xlane.f32.xlu1 %v8272_v10  ;;  %v8025_v28 = vsel %vm7897_vm13, %v7833_v18, %v7961_v44  ;;  %v8152_v57 = vmul.f32 %v8088_v42, %v8024_v25 }
 0x676   : > { %v8275_v22 = vsel %vm8154_vm11, %v8151_v21, 0.0  ;;  %v8153_v26 = vmul.f32 %v8089_v39, %v8025_v28 }
 0x677   : > { %v8276_v15 = vadd.f32 %v8275_v22, %v8150_v46 }
 0x678   : > { %v8279_v45 = vsel %vm8154_vm11, %v8153_v26, 0.0 }
 0x679   : > { %8277 = vadd.xlane.f32.xlu0 %v8276_v15  ;;  %v8280_v50 = vadd.f32 %v8279_v45, %v8152_v57 }
 0x67b   : > { %8281 = vadd.xlane.f32.xlu1 %v8280_v50 }
 0x68e   : > { %v8158_v38 = vpop.xlane.xlu0 %8157 }
 0x692   : > { %v8162_v11 = vpop.xlane.xlu0 %8161 }
 0x693   : > { %v8283_v56 = vadd.f32 %v8162_v11, %v8158_v38 }
 0x696   : > { %v8166_v51 = vpop.xlane.xlu1 %8165 }
 0x697   : > { %v8284_v35 = vadd.f32 %v8283_v56, %v8166_v51 }
 0x69a   : > { %v8170_v14 = vpop.xlane.xlu1 %8169 }
 0x69b   : > { %v8285_v3 = vadd.f32 %v8284_v35, %v8170_v14 }
 0x69e   : > { %v8174_v2 = vpop.xlane.xlu0 %8173 }
 0x69f   : > { %v8286_v30 = vadd.f32 %v8285_v3, %v8174_v2 }
 0x6a1   : > { %v8178_v8 = vpop.xlane.xlu1 %8177 }
 0x6a2   : > { %v8287_v16 = vadd.f32 %v8286_v30, %v8178_v8 }
 0x6a6   : > { %v8182_v55 = vpop.xlane.xlu0 %8181 }
 0x6a7   : > { %v8288_v23 = vadd.f32 %v8287_v16, %v8182_v55 }
 0x6a9   : > { %v8186_v49 = vpop.xlane.xlu1 %8185 }
 0x6aa   : > { %v8289_v34 = vadd.f32 %v8288_v23, %v8186_v49 }
 0x6ae   : > { %v8190_v47 = vpop.xlane.xlu0 %8189 }
 0x6af   : > { %v8290_v7 = vadd.f32 %v8289_v34, %v8190_v47 }
 0x6b2   : > { %v8194_v36 = vpop.xlane.xlu1 %8193 }
 0x6b3   : > { %v8291_v17 = vadd.f32 %v8290_v7, %v8194_v36 }
 0x6b7   : > { %v8198_v48 = vpop.xlane.xlu0 %8197 }
 0x6b8   : > { %v8292_v19 = vadd.f32 %v8291_v17, %v8198_v48 }
 0x6ba   : > { %v8202_v6 = vpop.xlane.xlu1 %8201 }
 0x6bb   : > { %v8293_v37 = vadd.f32 %v8292_v19, %v8202_v6 }
 0x6bf   : > { %v8206_v58 = vpop.xlane.xlu0 %8205 }
 0x6c0   : > { %v8294_v5 = vadd.f32 %v8293_v37, %v8206_v58 }
 0x6c2   : > { %v8210_v32 = vpop.xlane.xlu1 %8209 }
 0x6c3   : > { %v8295_v12 = vadd.f32 %v8294_v5, %v8210_v32 }
 0x6c7   : > { %v8214_v63 = vpop.xlane.xlu0 %8213 }
 0x6c8   : > { %v8296_v52 = vadd.f32 %v8295_v12, %v8214_v63 }
 0x6ca   : > { %v8218_v27 = vpop.xlane.xlu1 %8217 }
 0x6cb   : > { %v8297_v40 = vadd.f32 %v8296_v52, %v8218_v27 }
 0x6cf   : > { %v8222_v20 = vpop.xlane.xlu0 %8221 }
 0x6d0   : > { %v8298_v53 = vadd.f32 %v8297_v40, %v8222_v20 }
 0x6d2   : > { %v8226_v62 = vpop.xlane.xlu1 %8225 }
 0x6d3   : > { %v8299_v13 = vadd.f32 %v8298_v53, %v8226_v62 }
 0x6d7   : > { %v8230_v31 = vpop.xlane.xlu0 %8229 }
 0x6d8   : > { %v8300_v24 = vadd.f32 %v8299_v13, %v8230_v31 }
 0x6da   : > { %v8234_v29 = vpop.xlane.xlu1 %8233 }
 0x6db   : > { %v8301_v33 = vadd.f32 %v8300_v24, %v8234_v29 }
 0x6df   : > { %v8238_v59 = vpop.xlane.xlu0 %8237 }
 0x6e0   : > { %v8302_v61 = vadd.f32 %v8301_v33, %v8238_v59 }
 0x6e2   : > { %v8242_v60 = vpop.xlane.xlu1 %8241 }
 0x6e3   : > { %v8303_v4 = vadd.f32 %v8302_v61, %v8242_v60 }
 0x6e7   : > { %v8246_v18 = vpop.xlane.xlu0 %8245 }
 0x6e8   : > { %v8304_v9 = vadd.f32 %v8303_v4, %v8246_v18 }
 0x6ea   : > { %v8250_v54 = vpop.xlane.xlu1 %8249 }
 0x6eb   : > { %v8305_v0 = vadd.f32 %v8304_v9, %v8250_v54 }
 0x6ef   : > { %v8254_v41 = vpop.xlane.xlu0 %8253 }
 0x6f0   : > { %v8306_v44 = vadd.f32 %v8305_v0, %v8254_v41 }
 0x6f2   : > { %v8258_v10 = vpop.xlane.xlu1 %8257 }
 0x6f3   : > { %v8307_v1 = vadd.f32 %v8306_v44, %v8258_v10 }
 0x6f7   : > { %v8262_v43 = vpop.xlane.xlu0 %8261 }
 0x6f8   : > { %v8308_v39 = vadd.f32 %v8307_v1, %v8262_v43 }
 0x6fa   : > { %v8266_v21 = vpop.xlane.xlu1 %8265 }
 0x6fb   : > { %v8309_v25 = vadd.f32 %v8308_v39, %v8266_v21 }
 0x6ff   : > { %v8270_v42 = vpop.xlane.xlu0 %8269 }
 0x700   : > { %v8310_v46 = vadd.f32 %v8309_v25, %v8270_v42 }
 0x702   : > { %v8274_v28 = vpop.xlane.xlu1 %8273 }
 0x703   : > { %v8311_v22 = vadd.f32 %v8310_v46, %v8274_v28 }
 0x706   : > { %v8278_v26 = vpop.xlane.xlu0 %8277 }
 0x707   : > { %v8312_v15 = vadd.f32 %v8311_v22, %v8278_v26 }
 0x708   : > { %v8282_v57 = vpop.xlane.xlu1 %8281 }
 0x709   : > { %v8313_v45 = vadd.f32 %v8312_v15, %v8282_v57 }
 0x70b   : > { %v8314_v50 = vrot.slane %v8313_v45, 4 }
 0x70d   : > { %v8315_v38 = vadd.f32 %v8314_v50, %v8313_v45 }
 0x70f   : > { %v8316_v51 = vrot.slane %v8315_v38, 2 }
 0x711   : > { %v8317_v11 = vadd.f32 %v8316_v51, %v8315_v38 }
 0x713   : > { %v8318_v56 = vrot.slane %v8317_v11, 1 }
 0x715   : > { %v8319_v14 = vadd.f32 %v8318_v56, %v8317_v11 }
 0x717   : > { %v8320_v35 = vsub.f32 0.0, %v8319_v14 }
 0x719   : > { %v8321_v2 = vmul.f32 1.442695, %v8320_v35 }
 0x71b   : > { %10374 = vpow2.f32 %v8321_v2 }
 0x725   : > { %v10375_v3 = vpop.eup %10374 }
 0x726   : > { %v8323_v30 = vadd.f32 1.0, %v10375_v3 }
 0x728   : > { %10376 = vrcp.f32 %v8323_v30 }
 0x732   : > { %v10377_v8 = vpop.eup %10376 }
 0x733   : > { %8325 = vst [vmem:[%s301_s19] sm:$0x1] %v10377_v8 }
 0x734 PF: > { %s18_s27 = sadd.s32 1, %s10420_s27  }
 0x735   : > { %p15_p4 = scmp.ge.s32.totalorder %s18_s27, 4  }
 0x737   :  { %17 = sbr.rel (!%p15_p4) target bundleno = 1 (0x1), region = 97 }

</bundles_post_ra>
